<compile_context>
chip_gen: v6e
topology: v6e:2x2x1
jax: 0.10.0
libtpu: 0.0.40
codegen_flags: <defaults>
</compile_context>

<pallas_src>
import functools
import math

import numpy as np
import jax
import jax.numpy as jnp
from jax.experimental import pallas as pl
from jax.experimental.pallas import tpu as pltpu


# ----------------------------- static structure -----------------------------

def _stage_dims(g, out_res):
    """Per-ResBlock (H, W, Cin, Cout) at the block input."""
    blocks = [(4, 4, 4 * g, 2 * g), (8, 8, 2 * g, g), (16, 16, g, g)]
    if out_res == 64:
        blocks.append((32, 32, g, g))
    return blocks


def _pad_out_channels(out_channels):
    return ((out_channels + 3) // 4) * 4       # keeps R*ocp a multiple of 128


class _Layout:
    """Row-packed layout of 2-D pieces inside one slab (static Python ints)."""

    def __init__(self):
        self.entries = {}
        self.rows = 0
        self.width = 0

    def add(self, key, r, c):
        self.entries[key] = (self.rows, r, c)
        self.rows += ((r + 7) // 8) * 8
        self.width = max(self.width, c)

    def shape(self):
        rows = max(((self.rows + 7) // 8) * 8, 8)
        width = max(((self.width + 127) // 128) * 128, 128)
        return rows, width


def _build_layout(B, z_dim, gen_size, out_channels_pad, out_res):
    blocks = _stage_dims(gen_size, out_res)
    mats, fold, bcast, dup, bias = (_Layout() for _ in range(5))
    g4 = 4 * gen_size
    mats.add('stem', 4 * z_dim, 4 * g4)
    bias.add('stem', 1, 4 * g4)
    for i, (H, W, Cin, Cout) in enumerate(blocks):
        K1, N = W * Cin, 2 * W * Cout
        mats.add(f'rb{i}_a', K1, 4 * N)        # [em1_dy0 | em1_dy1 | em1_dy2 | eb]
        mats.add(f'rb{i}_b', N, 3 * N)         # [m2_dy0  | m2_dy1  | m2_dy2 ]
        fold.add(f'rb{i}_in', K1, Cin)
        bcast.add(f'rb{i}_in', Cin, K1)
        fold.add(f'rb{i}_mid', N, Cout)
        bcast.add(f'rb{i}_mid', Cout, N)
        dup.add(f'rb{i}', 2 * B * H, B * H)
        bias.add(f'rb{i}_b1', 1, N)
        bias.add(f'rb{i}_b2', 1, N)
        bias.add(f'rb{i}_bb', 1, N)
    R = out_res
    mats.add('final', R * gen_size, 3 * R * out_channels_pad)
    fold.add('final', R * gen_size, gen_size)
    bcast.add('final', gen_size, R * gen_size)
    bias.add('final', 1, R * out_channels_pad)
    return dict(mats=mats, fold=fold, bcast=bcast, dup=dup, bias=bias)


# --------------------- weight-derived matrices (numpy) ----------------------

def _col_structure(w_in, w_out, upsample):
    """T[xi, xo, dx] = 1 if conv tap dx at output col xo reads input col xi
    (horizontal zero pad and, if `upsample`, nearest-2x column map folded in)."""
    T = np.zeros((w_in, w_out, 3), np.float32)
    for xo in range(w_out):
        for dx in range(3):
            j = xo + dx - 1
            if 0 <= j < w_out:
                xi = j // 2 if upsample else j
                T[xi, xo, dx] = 1.0
    return T


def _band_cat(w_conv, w_in, w_out, upsample):
    """(3,3,cin,cout) weight -> (w_in*cin, 3*w_out*cout): the three kernel-row
    (dy) banded matrices concatenated along columns."""
    T = _col_structure(w_in, w_out, upsample)
    cin, cout = w_conv.shape[2], w_conv.shape[3]
    band = np.einsum('abd,edio->eaibo', T, w_conv)
    band = band.reshape(3, w_in * cin, w_out * cout)
    return np.concatenate([band[0], band[1], band[2]], axis=1)


def _bypass_matrix(w1, w_in):
    """Nearest-2x column upsample (+ optional 1x1 conv; identity if none)
    as one (w_in*cin, 2*w_in*cout) matrix."""
    cin, cout = w1.shape
    U = np.zeros((w_in, 2 * w_in), np.float32)
    for xo in range(2 * w_in):
        U[xo // 2, xo] = 1.0
    return np.einsum('ab,io->aibo', U, w1).reshape(w_in * cin, 2 * w_in * cout)


def _fold(w, c):
    return np.tile(np.eye(c, dtype=np.float32), (w, 1))      # (w*c, c)


def _bcast(w, c):
    return np.tile(np.eye(c, dtype=np.float32), (1, w))      # (c, w*c)


def _dup_mat(h, batch):
    """(2*B*h, B*h) nearest-2x row duplication, block-diagonal over the batch."""
    P = np.zeros((2 * h, h), np.float32)
    for yo in range(2 * h):
        P[yo, yo // 2] = 1.0
    return np.kron(np.eye(batch, dtype=np.float32), P)


def build_constants(params, *, batch, z_dim, gen_size, out_channels, out_res):
    """Build the packed weight-derived slabs ONCE (per weight update)."""
    p = jax.tree_util.tree_map(lambda a: np.asarray(a, np.float32), params)
    ocp = _pad_out_channels(out_channels)
    layout = _build_layout(batch, z_dim, gen_size, ocp, out_res)
    blocks = _stage_dims(gen_size, out_res)
    g4 = 4 * gen_size

    slabs = {k: np.zeros(layout[k].shape(), np.float32)
             for k in ('mats', 'fold', 'bcast', 'dup', 'bias')}

    def put(which, key, arr):
        r0, r, c = layout[which].entries[key]
        assert arr.shape == (r, c), (which, key, arr.shape, (r, c))
        slabs[which][r0:r0 + r, :c] = arr

    # stem: ConvTranspose2d(z_dim, 4g, 4, stride=1) on a 1x1 input == matmul.
    wt = np.transpose(p['convT_w'], (0, 2, 1, 3)).reshape(4 * z_dim, 4 * g4)
    put('mats', 'stem', wt)
    put('bias', 'stem', np.tile(p['convT_b'], 4)[None, :])

    rb_names = ['rb1', 'rb2', 'rb3', 'rb4'][:len(blocks)]
    for i, (name, (H, W, Cin, Cout)) in enumerate(zip(rb_names, blocks)):
        bp = p[name]
        em1 = _band_cat(bp['w1'], W, 2 * W, True)               # (W*Cin, 3N)
        if 'wb' in bp:
            wb, bb = bp['wb'], bp['bb']
        else:                                                   # Cin == Cout
            wb, bb = np.eye(Cin, dtype=np.float32), np.zeros((Cout,), np.float32)
        eb = _bypass_matrix(wb, W)                              # (W*Cin, N)
        put('mats', f'rb{i}_a', np.concatenate([em1, eb], axis=1))
        put('mats', f'rb{i}_b', _band_cat(bp['w2'], 2 * W, 2 * W, False))
        put('fold', f'rb{i}_in', _fold(W, Cin))
        put('bcast', f'rb{i}_in', _bcast(W, Cin))
        put('fold', f'rb{i}_mid', _fold(2 * W, Cout))
        put('bcast', f'rb{i}_mid', _bcast(2 * W, Cout))
        put('dup', f'rb{i}', _dup_mat(H, batch))
        put('bias', f'rb{i}_b1', np.tile(bp['b1'], 2 * W)[None, :])
        put('bias', f'rb{i}_b2', np.tile(bp['b2'], 2 * W)[None, :])
        put('bias', f'rb{i}_bb', np.tile(bb, 2 * W)[None, :])

    R = out_res
    wf = np.zeros((3, 3, gen_size, ocp), np.float32)
    wf[:, :, :, :out_channels] = p['final_w']
    bf = np.zeros((ocp,), np.float32)
    bf[:out_channels] = p['final_b']
    put('mats', 'final', _band_cat(wf, R, R, False))
    put('fold', 'final', _fold(R, gen_size))
    put('bcast', 'final', _bcast(R, gen_size))
    put('bias', 'final', np.tile(bf, R)[None, :])

    return (jnp.asarray(slabs['mats'], jnp.bfloat16),
            jnp.asarray(slabs['fold'], jnp.bfloat16),
            jnp.asarray(slabs['bcast'], jnp.bfloat16),
            jnp.asarray(slabs['dup'], jnp.bfloat16),
            jnp.asarray(slabs['bias'], jnp.float32))


# ------------------------------- fused kernel --------------------------------

def _make_kernel(B, z_dim, gen_size, out_channels_pad, out_res):
    blocks = _stage_dims(gen_size, out_res)
    layout = _build_layout(B, z_dim, gen_size, out_channels_pad, out_res)
    f32, bf16 = jnp.float32, jnp.bfloat16

    def kernel(z_ref, mats_ref, fold_ref, bcast_ref, dup_ref, bias_ref, out_ref):

        def piece(ref, which, key):
            r0, r, c = layout[which].entries[key]
            return ref[r0:r0 + r, 0:c]

        def brow(key):
            return piece(bias_ref, 'bias', key)

        def mm(a, b):                                   # bf16 MXU, f32 accumulate
            return jnp.dot(a.astype(bf16), b.astype(bf16),
                           preferred_element_type=f32)

        def bn_relu(x, key, count):
            # training-mode BatchNorm (gamma=1, beta=0, eps=1e-5) + ReLU.
            s = jnp.concatenate([jnp.sum(x, axis=0, keepdims=True),
                                 jnp.sum(x * x, axis=0, keepdims=True)], axis=0)
            st = mm(s, piece(fold_ref, 'fold', key)) * (1.0 / float(count))  # (2, C)
            mean = st[0:1, :]
            var = jnp.maximum(st[1:2, :] - mean * mean, 0.0)
            inv_std = jax.lax.rsqrt(var + 1e-5)
            ss = jnp.concatenate([inv_std, -mean * inv_std], axis=0)         # (2, C)
            sb = mm(ss, piece(bcast_ref, 'bcast', key))                      # (2, WC)
            return jnp.maximum(x * sb[0:1, :] + sb[1:2, :], 0.0)

        def row_mix(p0, p1, p2, himg):
            # Sum of the three kernel-row (dy) terms: +/-1 row shift with
            # per-image zero padding, done via XLU roll + VPU mask (no MXU).
            rid = jax.lax.broadcasted_iota(jnp.int32, p0.shape, 0) % himg
            dn = pltpu.roll(p0, 1, axis=0)                    # out[r] = p0[r-1]
            up = pltpu.roll(p2, p2.shape[0] - 1, axis=0)      # out[r] = p2[r+1]
            t0 = jnp.where(rid == 0, 0.0, dn)
            t2 = jnp.where(rid == himg - 1, 0.0, up)
            return t0 + p1 + t2

        # --- stem: ConvTranspose(z_dim, 4g, 4, stride=1) on 1x1 == one matmul ---
        x = mm(z_ref[...], piece(mats_ref, 'mats', 'stem')) + brow('stem')

        # --- ResBlocks ---
        for i, (H, W, Cin, Cout) in enumerate(blocks):
            N = 2 * W * Cout
            rb_a = piece(mats_ref, 'mats', f'rb{i}_a')        # (W*Cin, 4N)
            h = bn_relu(x, f'rb{i}_in', B * H * W)
            pre = mm(h, rb_a[:, 0:3 * N])                     # conv1 bands (pre-upsample rows)
            byp = mm(x, rb_a[:, 3 * N:4 * N])                 # bypass (col upsample [+1x1 conv])
            dupd = mm(piece(dup_ref, 'dup', f'rb{i}'),
                      jnp.concatenate([pre, byp], axis=1))    # nearest-2x row duplication
            y1 = row_mix(dupd[:, 0:N], dupd[:, N:2 * N], dupd[:, 2 * N:3 * N],
                         2 * H) + brow(f'rb{i}_b1')
            h1 = bn_relu(y1, f'rb{i}_mid', B * 2 * H * 2 * W)
            q = mm(h1, piece(mats_ref, 'mats', f'rb{i}_b'))   # conv2 bands
            y2 = row_mix(q[:, 0:N], q[:, N:2 * N], q[:, 2 * N:3 * N],
                         2 * H) + brow(f'rb{i}_b2')
            x = y2 + dupd[:, 3 * N:4 * N] + brow(f'rb{i}_bb')

        # --- final: BN -> ReLU -> conv3x3 -> tanh (out channels lane-padded) ---
        R = out_res
        Nf = R * out_channels_pad
        h = bn_relu(x, 'final', B * R * R)
        q = mm(h, piece(mats_ref, 'mats', 'final'))
        y = row_mix(q[:, 0:Nf], q[:, Nf:2 * Nf], q[:, 2 * Nf:3 * Nf], R) + brow('final')
        out_ref[...] = jnp.tanh(y)

    return kernel


# --------------------------------- forward -----------------------------------

def reconstructor_forward(z, consts, *, z_dim, gen_size, out_channels, out_res):
    """z: (B, z_dim) f32; consts: output of build_constants.  Returns NHWC."""
    B = z.shape[0]
    R = out_res
    ocp = _pad_out_channels(out_channels)

    # z -> block-structured stem operand (B*4, 4*z_dim): row b*4+y holds z[b] in
    # column block y, so the whole ConvTranspose is one lane-dense bf16 matmul.
    eye4 = jnp.eye(4, dtype=z.dtype)
    zblk = jnp.einsum('bk,yj->byjk', z, eye4).reshape(B * 4, 4 * z_dim)
    zblk = zblk.astype(jnp.bfloat16)

    kernel = _make_kernel(B, z_dim, gen_size, ocp, out_res)
    out2d = pl.pallas_call(
        kernel,
        out_shape=jax.ShapeDtypeStruct((B * R, R * ocp), jnp.float32),
    )(zblk, *consts)
    return out2d.reshape(B, R, R, ocp)[..., :out_channels]    # NHWC


# ----------------------------- parameter init --------------------------------

def init_params(key, z_dim, gen_size, out_channels, out_res):
    g4, g2 = gen_size * 4, gen_size * 2
    keys = iter(jax.random.split(key, 64))

    def u(shape, bound):
        return jax.random.uniform(next(keys), shape, jnp.float32, -bound, bound)

    def conv3_w(cin, cout):                  # kaiming_uniform, fan_in, relu gain
        fan_in = cin * 9
        return u((3, 3, cin, cout), math.sqrt(2.0) * math.sqrt(3.0 / fan_in))

    def conv3_b(cin, cout):
        return u((cout,), 1.0 / math.sqrt(cin * 9))

    def lin_w(cin, cout, gain=math.sqrt(2.0)):
        return u((cin, cout), gain * math.sqrt(3.0 / cin))

    def lin_b(cin, cout):
        return u((cout,), 1.0 / math.sqrt(cin))

    params = {}
    fan_in_t = g4 * 16                       # torch fan_in for (z, 4g, 4, 4) weight
    params['convT_w'] = u((4, 4, z_dim, g4), math.sqrt(3.0 / fan_in_t))  # linear gain
    params['convT_b'] = u((g4,), 1.0 / math.sqrt(fan_in_t))

    def rb(cin, cout):
        p = {'w1': conv3_w(cin, cout), 'b1': conv3_b(cin, cout),
             'w2': conv3_w(cout, cout), 'b2': conv3_b(cout, cout)}
        if cin != cout:                       # 1x1 bypass conv
            p['wb'] = lin_w(cin, cout)
            p['bb'] = lin_b(cin, cout)
        return p

    params['rb1'] = rb(g4, g2)
    params['rb2'] = rb(g2, gen_size)
    params['rb3'] = rb(gen_size, gen_size)
    if out_res == 64:
        params['rb4'] = rb(gen_size, gen_size)

    gain = 5.0 / 3.0                          # xavier_uniform with tanh gain
    fan_in, fan_out = gen_size * 9, out_channels * 9
    bound = gain * math.sqrt(6.0 / (fan_in + fan_out))
    params['final_w'] = u((3, 3, gen_size, out_channels), bound)
    params['final_b'] = u((out_channels,), 1.0 / math.sqrt(gen_size * 9))
    return params


# --------------------------- pure-JAX reference -------------------------------

def _reference_forward(z, params, *, gen_size, out_channels, out_res):
    def bn_relu(x):
        mean = jnp.mean(x, axis=(0, 1, 2))
        var = jnp.var(x, axis=(0, 1, 2))
        return jax.nn.relu((x - mean) * jax.lax.rsqrt(var + 1e-5))

    def conv3(x, w, b):
        y = jax.lax.conv_general_dilated(
            x, w, window_strides=(1, 1), padding='SAME',
            dimension_numbers=('NHWC', 'HWIO', 'NHWC'))
        return y + b

    def up2(x):
        return jnp.repeat(jnp.repeat(x, 2, axis=1), 2, axis=2)

    x = jnp.einsum('bk,yxkc->byxc', z, params['convT_w']) + params['convT_b']
    blocks = _stage_dims(gen_size, out_res)
    for name in ['rb1', 'rb2', 'rb3', 'rb4'][:len(blocks)]:
        p = params[name]
        h = conv3(up2(bn_relu(x)), p['w1'], p['b1'])
        h = conv3(bn_relu(h), p['w2'], p['b2'])
        byp = up2(x)
        if 'wb' in p:
            byp = jnp.einsum('byxi,io->byxo', byp, p['wb']) + p['bb']
        x = h + byp
    y = conv3(bn_relu(x), params['final_w'], params['final_b'])
    return jnp.tanh(y)


# ----------------------------------- main -------------------------------------

if __name__ == "__main__":
    z_dim, gen_size, out_channels, out_res = 32, 8, 3, 32
    assert out_res in (32, 64)
    batch = 2

    key = jax.random.PRNGKey(0)
    kp, kz = jax.random.split(key)
    params = init_params(kp, z_dim, gen_size, out_channels, out_res)
    z = jax.random.normal(kz, (batch, z_dim), jnp.float32)

    # Weight-derived packed constants: built once per weight update, NOT per
    # forward call (hoisted out of the hot path per the performance review).
    consts = build_constants(params, batch=batch, z_dim=z_dim, gen_size=gen_size,
                             out_channels=out_channels, out_res=out_res)

    fwd = jax.jit(functools.partial(reconstructor_forward, z_dim=z_dim,
                                    gen_size=gen_size, out_channels=out_channels,
                                    out_res=out_res))
    out = fwd(z, consts)
    jax.block_until_ready(out)

    assert out.shape == (batch, out_res, out_res, out_channels), out.shape
    assert bool(jnp.all(jnp.isfinite(out)))
    assert bool(jnp.all(jnp.abs(out) <= 1.0 + 1e-6))         # tanh output range

    # loose functional check against a pure-JAX/XLA reference (bf16 MXU inputs
    # and batch-stat BN in the kernel -> small, bounded deviation expected)
    ref = _reference_forward(z, params, gen_size=gen_size,
                             out_channels=out_channels, out_res=out_res)
    err = float(jnp.max(jnp.abs(out - ref)))
    assert err < 0.25, f"max |kernel - reference| = {err}"

    print("KERNEL_OK")
</pallas_src>

<mosaic_0001>
module attributes {stable_mosaic.version = 11 : i64} {
  func.func @kernel(%arg0: memref<8x128xbf16, #tpu.memory_space<vmem>>, %arg1: memref<1280x1024xbf16, #tpu.memory_space<vmem>>, %arg2: memref<1152x128xbf16, #tpu.memory_space<vmem>>, %arg3: memref<96x256xbf16, #tpu.memory_space<vmem>>, %arg4: memref<112x128xbf16, #tpu.memory_space<vmem>>, %arg5: memref<88x256xf32, #tpu.memory_space<vmem>>, %arg6: memref<64x128xf32, #tpu.memory_space<vmem>>) attributes {dimension_semantics = [], scalar_prefetch = 0 : i64, scratch_operands = 0 : i64, tpu.core_type = #tpu.core_type<tc>} {
    %c0 = arith.constant 0 : index
    %c0_0 = arith.constant 0 : index
    %0 = vector.load %arg0[%c0, %c0_0] : memref<8x128xbf16, #tpu.memory_space<vmem>>, vector<8x128xbf16>
    %c0_1 = arith.constant 0 : index
    %c0_2 = arith.constant 0 : index
    %1 = vector.load %arg1[%c0_1, %c0_2] : memref<1280x1024xbf16, #tpu.memory_space<vmem>>, vector<128x128xbf16>
    %cst = arith.constant dense<0.000000e+00> : vector<8x128xf32>
    %2 = tpu.matmul %0, %1, %cst {dimension_numbers = #tpu.dot_dimension_numbers<[1], [0], [0], [1], [0, 0, 1, 1], [], []>} : vector<8x128xbf16>, vector<128x128xbf16>, vector<8x128xf32> -> vector<8x128xf32>
    %c0_3 = arith.constant 0 : index
    %c0_4 = arith.constant 0 : index
    %3 = vector.load %arg5[%c0_3, %c0_4] : memref<88x256xf32, #tpu.memory_space<vmem>>, vector<1x128xf32>
    %4 = vector.broadcast %3 : vector<1x128xf32> to vector<8x128xf32>
    %5 = arith.addf %2, %4 : vector<8x128xf32>
    %c128 = arith.constant 128 : index
    %c0_5 = arith.constant 0 : index
    %6 = vector.load %arg1[%c128, %c0_5] : memref<1280x1024xbf16, #tpu.memory_space<vmem>>, vector<128x512xbf16>
    %cst_6 = arith.constant dense<0.000000e+00> : vector<128xf32>
    %7 = vector.multi_reduction <add>, %5, %cst_6 [0] : vector<8x128xf32> to vector<128xf32>
    %8 = vector.shape_cast %7 : vector<128xf32> to vector<1x128xf32>
    %9 = arith.mulf %5, %5 : vector<8x128xf32>
    %cst_7 = arith.constant dense<0.000000e+00> : vector<128xf32>
    %10 = vector.multi_reduction <add>, %9, %cst_7 [0] : vector<8x128xf32> to vector<128xf32>
    %11 = vector.shape_cast %10 : vector<128xf32> to vector<1x128xf32>
    %12 = tpu.concatenate %8, %11 in 0 : vector<1x128xf32>, vector<1x128xf32> -> vector<2x128xf32>
    %c0_8 = arith.constant 0 : index
    %c0_9 = arith.constant 0 : index
    %13 = vector.load %arg2[%c0_8, %c0_9] : memref<1152x128xbf16, #tpu.memory_space<vmem>>, vector<128x32xbf16>
    %14 = arith.truncf %12 : vector<2x128xf32> to vector<2x128xbf16>
    %cst_10 = arith.constant dense<0.000000e+00> : vector<2x32xf32>
    %15 = tpu.matmul %14, %13, %cst_10 {dimension_numbers = #tpu.dot_dimension_numbers<[1], [0], [0], [1], [0, 0, 1, 1], [], []>} : vector<2x128xbf16>, vector<128x32xbf16>, vector<2x32xf32> -> vector<2x32xf32>
    %cst_11 = arith.constant 3.125000e-02 : f32
    %16 = vector.broadcast %cst_11 : f32 to vector<2x32xf32>
    %17 = arith.mulf %15, %16 : vector<2x32xf32>
    %18 = vector.extract_strided_slice %17 {offsets = [0, 0], sizes = [1, 32], strides = [1, 1]} : vector<2x32xf32> to vector<1x32xf32>
    %19 = vector.extract_strided_slice %17 {offsets = [1, 0], sizes = [1, 32], strides = [1, 1]} : vector<2x32xf32> to vector<1x32xf32>
    %20 = arith.mulf %18, %18 : vector<1x32xf32>
    %21 = arith.subf %19, %20 : vector<1x32xf32>
    %cst_12 = arith.constant 0.000000e+00 : f32
    %22 = vector.broadcast %cst_12 : f32 to vector<1x32xf32>
    %23 = arith.maximumf %21, %22 : vector<1x32xf32>
    %cst_13 = arith.constant 9.99999974E-6 : f32
    %24 = vector.broadcast %cst_13 : f32 to vector<1x32xf32>
    %25 = arith.addf %23, %24 : vector<1x32xf32>
    %26 = math.rsqrt %25 : vector<1x32xf32>
    %cst_14 = arith.constant 0.000000e+00 : f32
    %27 = vector.broadcast %cst_14 : f32 to vector<1x32xf32>
    %28 = arith.subf %27, %18 : vector<1x32xf32>
    %29 = arith.mulf %28, %26 : vector<1x32xf32>
    %30 = tpu.concatenate %26, %29 in 0 : vector<1x32xf32>, vector<1x32xf32> -> vector<2x32xf32>
    %c0_15 = arith.constant 0 : index
    %c0_16 = arith.constant 0 : index
    %31 = vector.load %arg3[%c0_15, %c0_16] : memref<96x256xbf16, #tpu.memory_space<vmem>>, vector<32x128xbf16>
    %32 = arith.truncf %30 : vector<2x32xf32> to vector<2x32xbf16>
    %cst_17 = arith.constant dense<0.000000e+00> : vector<2x128xf32>
    %33 = tpu.matmul %32, %31, %cst_17 {dimension_numbers = #tpu.dot_dimension_numbers<[1], [0], [0], [1], [0, 0, 1, 1], [], []>} : vector<2x32xbf16>, vector<32x128xbf16>, vector<2x128xf32> -> vector<2x128xf32>
    %34 = vector.extract_strided_slice %33 {offsets = [0, 0], sizes = [1, 128], strides = [1, 1]} : vector<2x128xf32> to vector<1x128xf32>
    %35 = vector.broadcast %34 : vector<1x128xf32> to vector<8x128xf32>
    %36 = arith.mulf %5, %35 : vector<8x128xf32>
    %37 = vector.extract_strided_slice %33 {offsets = [1, 0], sizes = [1, 128], strides = [1, 1]} : vector<2x128xf32> to vector<1x128xf32>
    %38 = vector.broadcast %37 : vector<1x128xf32> to vector<8x128xf32>
    %39 = arith.addf %36, %38 : vector<8x128xf32>
    %cst_18 = arith.constant 0.000000e+00 : f32
    %40 = vector.broadcast %cst_18 : f32 to vector<8x128xf32>
    %41 = arith.maximumf %39, %40 : vector<8x128xf32>
    %42 = vector.extract_strided_slice %6 {offsets = [0, 0], sizes = [128, 384], strides = [1, 1]} : vector<128x512xbf16> to vector<128x384xbf16>
    %43 = arith.truncf %41 : vector<8x128xf32> to vector<8x128xbf16>
    %cst_19 = arith.constant dense<0.000000e+00> : vector<8x384xf32>
    %44 = tpu.matmul %43, %42, %cst_19 {dimension_numbers = #tpu.dot_dimension_numbers<[1], [0], [0], [1], [0, 0, 1, 1], [], []>} : vector<8x128xbf16>, vector<128x384xbf16>, vector<8x384xf32> -> vector<8x384xf32>
    %45 = vector.extract_strided_slice %6 {offsets = [0, 384], sizes = [128, 128], strides = [1, 1]} : vector<128x512xbf16> to vector<128x128xbf16>
    %46 = arith.truncf %5 : vector<8x128xf32> to vector<8x128xbf16>
    %cst_20 = arith.constant dense<0.000000e+00> : vector<8x128xf32>
    %47 = tpu.matmul %46, %45, %cst_20 {dimension_numbers = #tpu.dot_dimension_numbers<[1], [0], [0], [1], [0, 0, 1, 1], [], []>} : vector<8x128xbf16>, vector<128x128xbf16>, vector<8x128xf32> -> vector<8x128xf32>
    %c0_21 = arith.constant 0 : index
    %c0_22 = arith.constant 0 : index
    %48 = vector.load %arg4[%c0_21, %c0_22] : memref<112x128xbf16, #tpu.memory_space<vmem>>, vector<16x8xbf16>
    %49 = tpu.concatenate %44, %47 in 1 : vector<8x384xf32>, vector<8x128xf32> -> vector<8x512xf32>
    %50 = arith.truncf %49 : vector<8x512xf32> to vector<8x512xbf16>
    %cst_23 = arith.constant dense<0.000000e+00> : vector<16x512xf32>
    %51 = tpu.matmul %48, %50, %cst_23 {dimension_numbers = #tpu.dot_dimension_numbers<[1], [0], [0], [1], [0, 0, 1, 1], [], []>} : vector<16x8xbf16>, vector<8x512xbf16>, vector<16x512xf32> -> vector<16x512xf32>
    %52 = vector.extract_strided_slice %51 {offsets = [0, 0], sizes = [16, 128], strides = [1, 1]} : vector<16x512xf32> to vector<16x128xf32>
    %53 = vector.extract_strided_slice %51 {offsets = [0, 128], sizes = [16, 128], strides = [1, 1]} : vector<16x512xf32> to vector<16x128xf32>
    %54 = vector.extract_strided_slice %51 {offsets = [0, 256], sizes = [16, 128], strides = [1, 1]} : vector<16x512xf32> to vector<16x128xf32>
    %55 = tpu.iota {dimensions = array<i32: 0>} : vector<16x128xi32>
    %c8_i32 = arith.constant 8 : i32
    %c0_i32 = arith.constant 0 : i32
    %56 = arith.cmpi eq, %c8_i32, %c0_i32 : i32
    %c1_i32 = arith.constant 1 : i32
    %57 = arith.select %56, %c1_i32, %c8_i32 : i32
    %58 = vector.broadcast %57 : i32 to vector<16x128xi32>
    %59 = arith.remsi %55, %58 : vector<16x128xi32>
    %c0_i32_24 = arith.constant 0 : i32
    %60 = vector.broadcast %c0_i32_24 : i32 to vector<16x128xi32>
    %61 = arith.cmpi ne, %59, %60 : vector<16x128xi32>
    %c0_i32_25 = arith.constant 0 : i32
    %62 = vector.broadcast %c0_i32_25 : i32 to vector<16x128xi32>
    %63 = arith.cmpi slt, %59, %62 : vector<16x128xi32>
    %c0_i32_26 = arith.constant 0 : i32
    %64 = arith.cmpi slt, %57, %c0_i32_26 : i32
    %65 = vector.broadcast %64 : i1 to vector<16x128xi1>
    %66 = vector.broadcast %65 : vector<16x128xi1> to vector<16x128xi1>
    %67 = arith.xori %63, %66 : vector<16x128xi1>
    %68 = arith.andi %67, %61 : vector<16x128xi1>
    %69 = vector.broadcast %57 : i32 to vector<16x128xi32>
    %70 = arith.addi %59, %69 : vector<16x128xi32>
    %71 = arith.select %68, %70, %59 : vector<16x128xi1>, vector<16x128xi32>
    %c1_i32_27 = arith.constant 1 : i32
    %72 = tpu.dynamic_rotate %52 by %c1_i32_27 dim 0 : vector<16x128xf32>, i32 -> vector<16x128xf32>
    %c15_i32 = arith.constant 15 : i32
    %73 = tpu.dynamic_rotate %54 by %c15_i32 dim 0 : vector<16x128xf32>, i32 -> vector<16x128xf32>
    %c0_i32_28 = arith.constant 0 : i32
    %74 = vector.broadcast %c0_i32_28 : i32 to vector<16x128xi32>
    %75 = arith.cmpi eq, %71, %74 : vector<16x128xi32>
    %cst_29 = arith.constant 0.000000e+00 : f32
    %76 = vector.broadcast %cst_29 : f32 to vector<16x128xf32>
    %77 = arith.select %75, %76, %72 : vector<16x128xi1>, vector<16x128xf32>
    %c7_i32 = arith.constant 7 : i32
    %78 = vector.broadcast %c7_i32 : i32 to vector<16x128xi32>
    %79 = arith.cmpi eq, %71, %78 : vector<16x128xi32>
    %cst_30 = arith.constant 0.000000e+00 : f32
    %80 = vector.broadcast %cst_30 : f32 to vector<16x128xf32>
    %81 = arith.select %79, %80, %73 : vector<16x128xi1>, vector<16x128xf32>
    %82 = arith.addf %77, %53 : vector<16x128xf32>
    %83 = arith.addf %82, %81 : vector<16x128xf32>
    %c8 = arith.constant 8 : index
    %c0_31 = arith.constant 0 : index
    %84 = vector.load %arg5[%c8, %c0_31] : memref<88x256xf32, #tpu.memory_space<vmem>>, vector<1x128xf32>
    %85 = vector.broadcast %84 : vector<1x128xf32> to vector<16x128xf32>
    %86 = arith.addf %83, %85 : vector<16x128xf32>
    %cst_32 = arith.constant dense<0.000000e+00> : vector<128xf32>
    %87 = vector.multi_reduction <add>, %86, %cst_32 [0] : vector<16x128xf32> to vector<128xf32>
    %88 = vector.shape_cast %87 : vector<128xf32> to vector<1x128xf32>
    %89 = arith.mulf %86, %86 : vector<16x128xf32>
    %cst_33 = arith.constant dense<0.000000e+00> : vector<128xf32>
    %90 = vector.multi_reduction <add>, %89, %cst_33 [0] : vector<16x128xf32> to vector<128xf32>
    %91 = vector.shape_cast %90 : vector<128xf32> to vector<1x128xf32>
    %92 = tpu.concatenate %88, %91 in 0 : vector<1x128xf32>, vector<1x128xf32> -> vector<2x128xf32>
    %c128_34 = arith.constant 128 : index
    %c0_35 = arith.constant 0 : index
    %93 = vector.load %arg2[%c128_34, %c0_35] : memref<1152x128xbf16, #tpu.memory_space<vmem>>, vector<128x16xbf16>
    %94 = arith.truncf %92 : vector<2x128xf32> to vector<2x128xbf16>
    %cst_36 = arith.constant dense<0.000000e+00> : vector<2x16xf32>
    %95 = tpu.matmul %94, %93, %cst_36 {dimension_numbers = #tpu.dot_dimension_numbers<[1], [0], [0], [1], [0, 0, 1, 1], [], []>} : vector<2x128xbf16>, vector<128x16xbf16>, vector<2x16xf32> -> vector<2x16xf32>
    %cst_37 = arith.constant 7.812500e-03 : f32
    %96 = vector.broadcast %cst_37 : f32 to vector<2x16xf32>
    %97 = arith.mulf %95, %96 : vector<2x16xf32>
    %98 = vector.extract_strided_slice %97 {offsets = [0, 0], sizes = [1, 16], strides = [1, 1]} : vector<2x16xf32> to vector<1x16xf32>
    %99 = vector.extract_strided_slice %97 {offsets = [1, 0], sizes = [1, 16], strides = [1, 1]} : vector<2x16xf32> to vector<1x16xf32>
    %100 = arith.mulf %98, %98 : vector<1x16xf32>
    %101 = arith.subf %99, %100 : vector<1x16xf32>
    %cst_38 = arith.constant 0.000000e+00 : f32
    %102 = vector.broadcast %cst_38 : f32 to vector<1x16xf32>
    %103 = arith.maximumf %101, %102 : vector<1x16xf32>
    %cst_39 = arith.constant 9.99999974E-6 : f32
    %104 = vector.broadcast %cst_39 : f32 to vector<1x16xf32>
    %105 = arith.addf %103, %104 : vector<1x16xf32>
    %106 = math.rsqrt %105 : vector<1x16xf32>
    %cst_40 = arith.constant 0.000000e+00 : f32
    %107 = vector.broadcast %cst_40 : f32 to vector<1x16xf32>
    %108 = arith.subf %107, %98 : vector<1x16xf32>
    %109 = arith.mulf %108, %106 : vector<1x16xf32>
    %110 = tpu.concatenate %106, %109 in 0 : vector<1x16xf32>, vector<1x16xf32> -> vector<2x16xf32>
    %c32 = arith.constant 32 : index
    %c0_41 = arith.constant 0 : index
    %111 = vector.load %arg3[%c32, %c0_41] : memref<96x256xbf16, #tpu.memory_space<vmem>>, vector<16x128xbf16>
    %112 = arith.truncf %110 : vector<2x16xf32> to vector<2x16xbf16>
    %cst_42 = arith.constant dense<0.000000e+00> : vector<2x128xf32>
    %113 = tpu.matmul %112, %111, %cst_42 {dimension_numbers = #tpu.dot_dimension_numbers<[1], [0], [0], [1], [0, 0, 1, 1], [], []>} : vector<2x16xbf16>, vector<16x128xbf16>, vector<2x128xf32> -> vector<2x128xf32>
    %114 = vector.extract_strided_slice %113 {offsets = [0, 0], sizes = [1, 128], strides = [1, 1]} : vector<2x128xf32> to vector<1x128xf32>
    %115 = vector.broadcast %114 : vector<1x128xf32> to vector<16x128xf32>
    %116 = arith.mulf %86, %115 : vector<16x128xf32>
    %117 = vector.extract_strided_slice %113 {offsets = [1, 0], sizes = [1, 128], strides = [1, 1]} : vector<2x128xf32> to vector<1x128xf32>
    %118 = vector.broadcast %117 : vector<1x128xf32> to vector<16x128xf32>
    %119 = arith.addf %116, %118 : vector<16x128xf32>
    %cst_43 = arith.constant 0.000000e+00 : f32
    %120 = vector.broadcast %cst_43 : f32 to vector<16x128xf32>
    %121 = arith.maximumf %119, %120 : vector<16x128xf32>
    %c256 = arith.constant 256 : index
    %c0_44 = arith.constant 0 : index
    %122 = vector.load %arg1[%c256, %c0_44] : memref<1280x1024xbf16, #tpu.memory_space<vmem>>, vector<128x384xbf16>
    %123 = arith.truncf %121 : vector<16x128xf32> to vector<16x128xbf16>
    %cst_45 = arith.constant dense<0.000000e+00> : vector<16x384xf32>
    %124 = tpu.matmul %123, %122, %cst_45 {dimension_numbers = #tpu.dot_dimension_numbers<[1], [0], [0], [1], [0, 0, 1, 1], [], []>} : vector<16x128xbf16>, vector<128x384xbf16>, vector<16x384xf32> -> vector<16x384xf32>
    %125 = vector.extract_strided_slice %124 {offsets = [0, 0], sizes = [16, 128], strides = [1, 1]} : vector<16x384xf32> to vector<16x128xf32>
    %126 = vector.extract_strided_slice %124 {offsets = [0, 128], sizes = [16, 128], strides = [1, 1]} : vector<16x384xf32> to vector<16x128xf32>
    %127 = vector.extract_strided_slice %124 {offsets = [0, 256], sizes = [16, 128], strides = [1, 1]} : vector<16x384xf32> to vector<16x128xf32>
    %128 = tpu.iota {dimensions = array<i32: 0>} : vector<16x128xi32>
    %c8_i32_46 = arith.constant 8 : i32
    %c0_i32_47 = arith.constant 0 : i32
    %129 = arith.cmpi eq, %c8_i32_46, %c0_i32_47 : i32
    %c1_i32_48 = arith.constant 1 : i32
    %130 = arith.select %129, %c1_i32_48, %c8_i32_46 : i32
    %131 = vector.broadcast %130 : i32 to vector<16x128xi32>
    %132 = arith.remsi %128, %131 : vector<16x128xi32>
    %c0_i32_49 = arith.constant 0 : i32
    %133 = vector.broadcast %c0_i32_49 : i32 to vector<16x128xi32>
    %134 = arith.cmpi ne, %132, %133 : vector<16x128xi32>
    %c0_i32_50 = arith.constant 0 : i32
    %135 = vector.broadcast %c0_i32_50 : i32 to vector<16x128xi32>
    %136 = arith.cmpi slt, %132, %135 : vector<16x128xi32>
    %c0_i32_51 = arith.constant 0 : i32
    %137 = arith.cmpi slt, %130, %c0_i32_51 : i32
    %138 = vector.broadcast %137 : i1 to vector<16x128xi1>
    %139 = vector.broadcast %138 : vector<16x128xi1> to vector<16x128xi1>
    %140 = arith.xori %136, %139 : vector<16x128xi1>
    %141 = arith.andi %140, %134 : vector<16x128xi1>
    %142 = vector.broadcast %130 : i32 to vector<16x128xi32>
    %143 = arith.addi %132, %142 : vector<16x128xi32>
    %144 = arith.select %141, %143, %132 : vector<16x128xi1>, vector<16x128xi32>
    %c1_i32_52 = arith.constant 1 : i32
    %145 = tpu.dynamic_rotate %125 by %c1_i32_52 dim 0 : vector<16x128xf32>, i32 -> vector<16x128xf32>
    %c15_i32_53 = arith.constant 15 : i32
    %146 = tpu.dynamic_rotate %127 by %c15_i32_53 dim 0 : vector<16x128xf32>, i32 -> vector<16x128xf32>
    %c0_i32_54 = arith.constant 0 : i32
    %147 = vector.broadcast %c0_i32_54 : i32 to vector<16x128xi32>
    %148 = arith.cmpi eq, %144, %147 : vector<16x128xi32>
    %cst_55 = arith.constant 0.000000e+00 : f32
    %149 = vector.broadcast %cst_55 : f32 to vector<16x128xf32>
    %150 = arith.select %148, %149, %145 : vector<16x128xi1>, vector<16x128xf32>
    %c7_i32_56 = arith.constant 7 : i32
    %151 = vector.broadcast %c7_i32_56 : i32 to vector<16x128xi32>
    %152 = arith.cmpi eq, %144, %151 : vector<16x128xi32>
    %cst_57 = arith.constant 0.000000e+00 : f32
    %153 = vector.broadcast %cst_57 : f32 to vector<16x128xf32>
    %154 = arith.select %152, %153, %146 : vector<16x128xi1>, vector<16x128xf32>
    %155 = arith.addf %150, %126 : vector<16x128xf32>
    %156 = arith.addf %155, %154 : vector<16x128xf32>
    %c16 = arith.constant 16 : index
    %c0_58 = arith.constant 0 : index
    %157 = vector.load %arg5[%c16, %c0_58] : memref<88x256xf32, #tpu.memory_space<vmem>>, vector<1x128xf32>
    %158 = vector.broadcast %157 : vector<1x128xf32> to vector<16x128xf32>
    %159 = arith.addf %156, %158 : vector<16x128xf32>
    %160 = vector.extract_strided_slice %51 {offsets = [0, 384], sizes = [16, 128], strides = [1, 1]} : vector<16x512xf32> to vector<16x128xf32>
    %161 = arith.addf %159, %160 : vector<16x128xf32>
    %c24 = arith.constant 24 : index
    %c0_59 = arith.constant 0 : index
    %162 = vector.load %arg5[%c24, %c0_59] : memref<88x256xf32, #tpu.memory_space<vmem>>, vector<1x128xf32>
    %163 = vector.broadcast %162 : vector<1x128xf32> to vector<16x128xf32>
    %164 = arith.addf %161, %163 : vector<16x128xf32>
    %c384 = arith.constant 384 : index
    %c0_60 = arith.constant 0 : index
    %165 = vector.load %arg1[%c384, %c0_60] : memref<1280x1024xbf16, #tpu.memory_space<vmem>>, vector<128x512xbf16>
    %cst_61 = arith.constant dense<0.000000e+00> : vector<128xf32>
    %166 = vector.multi_reduction <add>, %164, %cst_61 [0] : vector<16x128xf32> to vector<128xf32>
    %167 = vector.shape_cast %166 : vector<128xf32> to vector<1x128xf32>
    %168 = arith.mulf %164, %164 : vector<16x128xf32>
    %cst_62 = arith.constant dense<0.000000e+00> : vector<128xf32>
    %169 = vector.multi_reduction <add>, %168, %cst_62 [0] : vector<16x128xf32> to vector<128xf32>
    %170 = vector.shape_cast %169 : vector<128xf32> to vector<1x128xf32>
    %171 = tpu.concatenate %167, %170 in 0 : vector<1x128xf32>, vector<1x128xf32> -> vector<2x128xf32>
    %c256_63 = arith.constant 256 : index
    %c0_64 = arith.constant 0 : index
    %172 = vector.load %arg2[%c256_63, %c0_64] : memref<1152x128xbf16, #tpu.memory_space<vmem>>, vector<128x16xbf16>
    %173 = arith.truncf %171 : vector<2x128xf32> to vector<2x128xbf16>
    %cst_65 = arith.constant dense<0.000000e+00> : vector<2x16xf32>
    %174 = tpu.matmul %173, %172, %cst_65 {dimension_numbers = #tpu.dot_dimension_numbers<[1], [0], [0], [1], [0, 0, 1, 1], [], []>} : vector<2x128xbf16>, vector<128x16xbf16>, vector<2x16xf32> -> vector<2x16xf32>
    %cst_66 = arith.constant 7.812500e-03 : f32
    %175 = vector.broadcast %cst_66 : f32 to vector<2x16xf32>
    %176 = arith.mulf %174, %175 : vector<2x16xf32>
    %177 = vector.extract_strided_slice %176 {offsets = [0, 0], sizes = [1, 16], strides = [1, 1]} : vector<2x16xf32> to vector<1x16xf32>
    %178 = vector.extract_strided_slice %176 {offsets = [1, 0], sizes = [1, 16], strides = [1, 1]} : vector<2x16xf32> to vector<1x16xf32>
    %179 = arith.mulf %177, %177 : vector<1x16xf32>
    %180 = arith.subf %178, %179 : vector<1x16xf32>
    %cst_67 = arith.constant 0.000000e+00 : f32
    %181 = vector.broadcast %cst_67 : f32 to vector<1x16xf32>
    %182 = arith.maximumf %180, %181 : vector<1x16xf32>
    %cst_68 = arith.constant 9.99999974E-6 : f32
    %183 = vector.broadcast %cst_68 : f32 to vector<1x16xf32>
    %184 = arith.addf %182, %183 : vector<1x16xf32>
    %185 = math.rsqrt %184 : vector<1x16xf32>
    %cst_69 = arith.constant 0.000000e+00 : f32
    %186 = vector.broadcast %cst_69 : f32 to vector<1x16xf32>
    %187 = arith.subf %186, %177 : vector<1x16xf32>
    %188 = arith.mulf %187, %185 : vector<1x16xf32>
    %189 = tpu.concatenate %185, %188 in 0 : vector<1x16xf32>, vector<1x16xf32> -> vector<2x16xf32>
    %c48 = arith.constant 48 : index
    %c0_70 = arith.constant 0 : index
    %190 = vector.load %arg3[%c48, %c0_70] : memref<96x256xbf16, #tpu.memory_space<vmem>>, vector<16x128xbf16>
    %191 = arith.truncf %189 : vector<2x16xf32> to vector<2x16xbf16>
    %cst_71 = arith.constant dense<0.000000e+00> : vector<2x128xf32>
    %192 = tpu.matmul %191, %190, %cst_71 {dimension_numbers = #tpu.dot_dimension_numbers<[1], [0], [0], [1], [0, 0, 1, 1], [], []>} : vector<2x16xbf16>, vector<16x128xbf16>, vector<2x128xf32> -> vector<2x128xf32>
    %193 = vector.extract_strided_slice %192 {offsets = [0, 0], sizes = [1, 128], strides = [1, 1]} : vector<2x128xf32> to vector<1x128xf32>
    %194 = vector.broadcast %193 : vector<1x128xf32> to vector<16x128xf32>
    %195 = arith.mulf %164, %194 : vector<16x128xf32>
    %196 = vector.extract_strided_slice %192 {offsets = [1, 0], sizes = [1, 128], strides = [1, 1]} : vector<2x128xf32> to vector<1x128xf32>
    %197 = vector.broadcast %196 : vector<1x128xf32> to vector<16x128xf32>
    %198 = arith.addf %195, %197 : vector<16x128xf32>
    %cst_72 = arith.constant 0.000000e+00 : f32
    %199 = vector.broadcast %cst_72 : f32 to vector<16x128xf32>
    %200 = arith.maximumf %198, %199 : vector<16x128xf32>
    %201 = vector.extract_strided_slice %165 {offsets = [0, 0], sizes = [128, 384], strides = [1, 1]} : vector<128x512xbf16> to vector<128x384xbf16>
    %202 = arith.truncf %200 : vector<16x128xf32> to vector<16x128xbf16>
    %cst_73 = arith.constant dense<0.000000e+00> : vector<16x384xf32>
    %203 = tpu.matmul %202, %201, %cst_73 {dimension_numbers = #tpu.dot_dimension_numbers<[1], [0], [0], [1], [0, 0, 1, 1], [], []>} : vector<16x128xbf16>, vector<128x384xbf16>, vector<16x384xf32> -> vector<16x384xf32>
    %204 = vector.extract_strided_slice %165 {offsets = [0, 384], sizes = [128, 128], strides = [1, 1]} : vector<128x512xbf16> to vector<128x128xbf16>
    %205 = arith.truncf %164 : vector<16x128xf32> to vector<16x128xbf16>
    %cst_74 = arith.constant dense<0.000000e+00> : vector<16x128xf32>
    %206 = tpu.matmul %205, %204, %cst_74 {dimension_numbers = #tpu.dot_dimension_numbers<[1], [0], [0], [1], [0, 0, 1, 1], [], []>} : vector<16x128xbf16>, vector<128x128xbf16>, vector<16x128xf32> -> vector<16x128xf32>
    %c16_75 = arith.constant 16 : index
    %c0_76 = arith.constant 0 : index
    %207 = vector.load %arg4[%c16_75, %c0_76] : memref<112x128xbf16, #tpu.memory_space<vmem>>, vector<32x16xbf16>
    %208 = tpu.concatenate %203, %206 in 1 : vector<16x384xf32>, vector<16x128xf32> -> vector<16x512xf32>
    %209 = arith.truncf %208 : vector<16x512xf32> to vector<16x512xbf16>
    %cst_77 = arith.constant dense<0.000000e+00> : vector<32x512xf32>
    %210 = tpu.matmul %207, %209, %cst_77 {dimension_numbers = #tpu.dot_dimension_numbers<[1], [0], [0], [1], [0, 0, 1, 1], [], []>} : vector<32x16xbf16>, vector<16x512xbf16>, vector<32x512xf32> -> vector<32x512xf32>
    %211 = vector.extract_strided_slice %210 {offsets = [0, 0], sizes = [32, 128], strides = [1, 1]} : vector<32x512xf32> to vector<32x128xf32>
    %212 = vector.extract_strided_slice %210 {offsets = [0, 128], sizes = [32, 128], strides = [1, 1]} : vector<32x512xf32> to vector<32x128xf32>
    %213 = vector.extract_strided_slice %210 {offsets = [0, 256], sizes = [32, 128], strides = [1, 1]} : vector<32x512xf32> to vector<32x128xf32>
    %214 = tpu.iota {dimensions = array<i32: 0>} : vector<32x128xi32>
    %c16_i32 = arith.constant 16 : i32
    %c0_i32_78 = arith.constant 0 : i32
    %215 = arith.cmpi eq, %c16_i32, %c0_i32_78 : i32
    %c1_i32_79 = arith.constant 1 : i32
    %216 = arith.select %215, %c1_i32_79, %c16_i32 : i32
    %217 = vector.broadcast %216 : i32 to vector<32x128xi32>
    %218 = arith.remsi %214, %217 : vector<32x128xi32>
    %c0_i32_80 = arith.constant 0 : i32
    %219 = vector.broadcast %c0_i32_80 : i32 to vector<32x128xi32>
    %220 = arith.cmpi ne, %218, %219 : vector<32x128xi32>
    %c0_i32_81 = arith.constant 0 : i32
    %221 = vector.broadcast %c0_i32_81 : i32 to vector<32x128xi32>
    %222 = arith.cmpi slt, %218, %221 : vector<32x128xi32>
    %c0_i32_82 = arith.constant 0 : i32
    %223 = arith.cmpi slt, %216, %c0_i32_82 : i32
    %224 = vector.broadcast %223 : i1 to vector<32x128xi1>
    %225 = vector.broadcast %224 : vector<32x128xi1> to vector<32x128xi1>
    %226 = arith.xori %222, %225 : vector<32x128xi1>
    %227 = arith.andi %226, %220 : vector<32x128xi1>
    %228 = vector.broadcast %216 : i32 to vector<32x128xi32>
    %229 = arith.addi %218, %228 : vector<32x128xi32>
    %230 = arith.select %227, %229, %218 : vector<32x128xi1>, vector<32x128xi32>
    %c1_i32_83 = arith.constant 1 : i32
    %231 = tpu.dynamic_rotate %211 by %c1_i32_83 dim 0 : vector<32x128xf32>, i32 -> vector<32x128xf32>
    %c31_i32 = arith.constant 31 : i32
    %232 = tpu.dynamic_rotate %213 by %c31_i32 dim 0 : vector<32x128xf32>, i32 -> vector<32x128xf32>
    %c0_i32_84 = arith.constant 0 : i32
    %233 = vector.broadcast %c0_i32_84 : i32 to vector<32x128xi32>
    %234 = arith.cmpi eq, %230, %233 : vector<32x128xi32>
    %cst_85 = arith.constant 0.000000e+00 : f32
    %235 = vector.broadcast %cst_85 : f32 to vector<32x128xf32>
    %236 = arith.select %234, %235, %231 : vector<32x128xi1>, vector<32x128xf32>
    %c15_i32_86 = arith.constant 15 : i32
    %237 = vector.broadcast %c15_i32_86 : i32 to vector<32x128xi32>
    %238 = arith.cmpi eq, %230, %237 : vector<32x128xi32>
    %cst_87 = arith.constant 0.000000e+00 : f32
    %239 = vector.broadcast %cst_87 : f32 to vector<32x128xf32>
    %240 = arith.select %238, %239, %232 : vector<32x128xi1>, vector<32x128xf32>
    %241 = arith.addf %236, %212 : vector<32x128xf32>
    %242 = arith.addf %241, %240 : vector<32x128xf32>
    %c32_88 = arith.constant 32 : index
    %c0_89 = arith.constant 0 : index
    %243 = vector.load %arg5[%c32_88, %c0_89] : memref<88x256xf32, #tpu.memory_space<vmem>>, vector<1x128xf32>
    %244 = vector.broadcast %243 : vector<1x128xf32> to vector<32x128xf32>
    %245 = arith.addf %242, %244 : vector<32x128xf32>
    %cst_90 = arith.constant dense<0.000000e+00> : vector<128xf32>
    %246 = vector.multi_reduction <add>, %245, %cst_90 [0] : vector<32x128xf32> to vector<128xf32>
    %247 = vector.shape_cast %246 : vector<128xf32> to vector<1x128xf32>
    %248 = arith.mulf %245, %245 : vector<32x128xf32>
    %cst_91 = arith.constant dense<0.000000e+00> : vector<128xf32>
    %249 = vector.multi_reduction <add>, %248, %cst_91 [0] : vector<32x128xf32> to vector<128xf32>
    %250 = vector.shape_cast %249 : vector<128xf32> to vector<1x128xf32>
    %251 = tpu.concatenate %247, %250 in 0 : vector<1x128xf32>, vector<1x128xf32> -> vector<2x128xf32>
    %c384_92 = arith.constant 384 : index
    %c0_93 = arith.constant 0 : index
    %252 = vector.load %arg2[%c384_92, %c0_93] : memref<1152x128xbf16, #tpu.memory_space<vmem>>, vector<128x8xbf16>
    %253 = arith.truncf %251 : vector<2x128xf32> to vector<2x128xbf16>
    %cst_94 = arith.constant dense<0.000000e+00> : vector<2x8xf32>
    %254 = tpu.matmul %253, %252, %cst_94 {dimension_numbers = #tpu.dot_dimension_numbers<[1], [0], [0], [1], [0, 0, 1, 1], [], []>} : vector<2x128xbf16>, vector<128x8xbf16>, vector<2x8xf32> -> vector<2x8xf32>
    %cst_95 = arith.constant 0.001953125 : f32
    %255 = vector.broadcast %cst_95 : f32 to vector<2x8xf32>
    %256 = arith.mulf %254, %255 : vector<2x8xf32>
    %257 = vector.extract_strided_slice %256 {offsets = [0, 0], sizes = [1, 8], strides = [1, 1]} : vector<2x8xf32> to vector<1x8xf32>
    %258 = vector.extract_strided_slice %256 {offsets = [1, 0], sizes = [1, 8], strides = [1, 1]} : vector<2x8xf32> to vector<1x8xf32>
    %259 = arith.mulf %257, %257 : vector<1x8xf32>
    %260 = arith.subf %258, %259 : vector<1x8xf32>
    %cst_96 = arith.constant 0.000000e+00 : f32
    %261 = vector.broadcast %cst_96 : f32 to vector<1x8xf32>
    %262 = arith.maximumf %260, %261 : vector<1x8xf32>
    %cst_97 = arith.constant 9.99999974E-6 : f32
    %263 = vector.broadcast %cst_97 : f32 to vector<1x8xf32>
    %264 = arith.addf %262, %263 : vector<1x8xf32>
    %265 = math.rsqrt %264 : vector<1x8xf32>
    %cst_98 = arith.constant 0.000000e+00 : f32
    %266 = vector.broadcast %cst_98 : f32 to vector<1x8xf32>
    %267 = arith.subf %266, %257 : vector<1x8xf32>
    %268 = arith.mulf %267, %265 : vector<1x8xf32>
    %269 = tpu.concatenate %265, %268 in 0 : vector<1x8xf32>, vector<1x8xf32> -> vector<2x8xf32>
    %c64 = arith.constant 64 : index
    %c0_99 = arith.constant 0 : index
    %270 = vector.load %arg3[%c64, %c0_99] : memref<96x256xbf16, #tpu.memory_space<vmem>>, vector<8x128xbf16>
    %271 = arith.truncf %269 : vector<2x8xf32> to vector<2x8xbf16>
    %cst_100 = arith.constant dense<0.000000e+00> : vector<2x128xf32>
    %272 = tpu.matmul %271, %270, %cst_100 {dimension_numbers = #tpu.dot_dimension_numbers<[1], [0], [0], [1], [0, 0, 1, 1], [], []>} : vector<2x8xbf16>, vector<8x128xbf16>, vector<2x128xf32> -> vector<2x128xf32>
    %273 = vector.extract_strided_slice %272 {offsets = [0, 0], sizes = [1, 128], strides = [1, 1]} : vector<2x128xf32> to vector<1x128xf32>
    %274 = vector.broadcast %273 : vector<1x128xf32> to vector<32x128xf32>
    %275 = arith.mulf %245, %274 : vector<32x128xf32>
    %276 = vector.extract_strided_slice %272 {offsets = [1, 0], sizes = [1, 128], strides = [1, 1]} : vector<2x128xf32> to vector<1x128xf32>
    %277 = vector.broadcast %276 : vector<1x128xf32> to vector<32x128xf32>
    %278 = arith.addf %275, %277 : vector<32x128xf32>
    %cst_101 = arith.constant 0.000000e+00 : f32
    %279 = vector.broadcast %cst_101 : f32 to vector<32x128xf32>
    %280 = arith.maximumf %278, %279 : vector<32x128xf32>
    %c512 = arith.constant 512 : index
    %c0_102 = arith.constant 0 : index
    %281 = vector.load %arg1[%c512, %c0_102] : memref<1280x1024xbf16, #tpu.memory_space<vmem>>, vector<128x384xbf16>
    %282 = arith.truncf %280 : vector<32x128xf32> to vector<32x128xbf16>
    %cst_103 = arith.constant dense<0.000000e+00> : vector<32x384xf32>
    %283 = tpu.matmul %282, %281, %cst_103 {dimension_numbers = #tpu.dot_dimension_numbers<[1], [0], [0], [1], [0, 0, 1, 1], [], []>} : vector<32x128xbf16>, vector<128x384xbf16>, vector<32x384xf32> -> vector<32x384xf32>
    %284 = vector.extract_strided_slice %283 {offsets = [0, 0], sizes = [32, 128], strides = [1, 1]} : vector<32x384xf32> to vector<32x128xf32>
    %285 = vector.extract_strided_slice %283 {offsets = [0, 128], sizes = [32, 128], strides = [1, 1]} : vector<32x384xf32> to vector<32x128xf32>
    %286 = vector.extract_strided_slice %283 {offsets = [0, 256], sizes = [32, 128], strides = [1, 1]} : vector<32x384xf32> to vector<32x128xf32>
    %287 = tpu.iota {dimensions = array<i32: 0>} : vector<32x128xi32>
    %c16_i32_104 = arith.constant 16 : i32
    %c0_i32_105 = arith.constant 0 : i32
    %288 = arith.cmpi eq, %c16_i32_104, %c0_i32_105 : i32
    %c1_i32_106 = arith.constant 1 : i32
    %289 = arith.select %288, %c1_i32_106, %c16_i32_104 : i32
    %290 = vector.broadcast %289 : i32 to vector<32x128xi32>
    %291 = arith.remsi %287, %290 : vector<32x128xi32>
    %c0_i32_107 = arith.constant 0 : i32
    %292 = vector.broadcast %c0_i32_107 : i32 to vector<32x128xi32>
    %293 = arith.cmpi ne, %291, %292 : vector<32x128xi32>
    %c0_i32_108 = arith.constant 0 : i32
    %294 = vector.broadcast %c0_i32_108 : i32 to vector<32x128xi32>
    %295 = arith.cmpi slt, %291, %294 : vector<32x128xi32>
    %c0_i32_109 = arith.constant 0 : i32
    %296 = arith.cmpi slt, %289, %c0_i32_109 : i32
    %297 = vector.broadcast %296 : i1 to vector<32x128xi1>
    %298 = vector.broadcast %297 : vector<32x128xi1> to vector<32x128xi1>
    %299 = arith.xori %295, %298 : vector<32x128xi1>
    %300 = arith.andi %299, %293 : vector<32x128xi1>
    %301 = vector.broadcast %289 : i32 to vector<32x128xi32>
    %302 = arith.addi %291, %301 : vector<32x128xi32>
    %303 = arith.select %300, %302, %291 : vector<32x128xi1>, vector<32x128xi32>
    %c1_i32_110 = arith.constant 1 : i32
    %304 = tpu.dynamic_rotate %284 by %c1_i32_110 dim 0 : vector<32x128xf32>, i32 -> vector<32x128xf32>
    %c31_i32_111 = arith.constant 31 : i32
    %305 = tpu.dynamic_rotate %286 by %c31_i32_111 dim 0 : vector<32x128xf32>, i32 -> vector<32x128xf32>
    %c0_i32_112 = arith.constant 0 : i32
    %306 = vector.broadcast %c0_i32_112 : i32 to vector<32x128xi32>
    %307 = arith.cmpi eq, %303, %306 : vector<32x128xi32>
    %cst_113 = arith.constant 0.000000e+00 : f32
    %308 = vector.broadcast %cst_113 : f32 to vector<32x128xf32>
    %309 = arith.select %307, %308, %304 : vector<32x128xi1>, vector<32x128xf32>
    %c15_i32_114 = arith.constant 15 : i32
    %310 = vector.broadcast %c15_i32_114 : i32 to vector<32x128xi32>
    %311 = arith.cmpi eq, %303, %310 : vector<32x128xi32>
    %cst_115 = arith.constant 0.000000e+00 : f32
    %312 = vector.broadcast %cst_115 : f32 to vector<32x128xf32>
    %313 = arith.select %311, %312, %305 : vector<32x128xi1>, vector<32x128xf32>
    %314 = arith.addf %309, %285 : vector<32x128xf32>
    %315 = arith.addf %314, %313 : vector<32x128xf32>
    %c40 = arith.constant 40 : index
    %c0_116 = arith.constant 0 : index
    %316 = vector.load %arg5[%c40, %c0_116] : memref<88x256xf32, #tpu.memory_space<vmem>>, vector<1x128xf32>
    %317 = vector.broadcast %316 : vector<1x128xf32> to vector<32x128xf32>
    %318 = arith.addf %315, %317 : vector<32x128xf32>
    %319 = vector.extract_strided_slice %210 {offsets = [0, 384], sizes = [32, 128], strides = [1, 1]} : vector<32x512xf32> to vector<32x128xf32>
    %320 = arith.addf %318, %319 : vector<32x128xf32>
    %c48_117 = arith.constant 48 : index
    %c0_118 = arith.constant 0 : index
    %321 = vector.load %arg5[%c48_117, %c0_118] : memref<88x256xf32, #tpu.memory_space<vmem>>, vector<1x128xf32>
    %322 = vector.broadcast %321 : vector<1x128xf32> to vector<32x128xf32>
    %323 = arith.addf %320, %322 : vector<32x128xf32>
    %c640 = arith.constant 640 : index
    %c0_119 = arith.constant 0 : index
    %324 = vector.load %arg1[%c640, %c0_119] : memref<1280x1024xbf16, #tpu.memory_space<vmem>>, vector<128x1024xbf16>
    %cst_120 = arith.constant dense<0.000000e+00> : vector<128xf32>
    %325 = vector.multi_reduction <add>, %323, %cst_120 [0] : vector<32x128xf32> to vector<128xf32>
    %326 = vector.shape_cast %325 : vector<128xf32> to vector<1x128xf32>
    %327 = arith.mulf %323, %323 : vector<32x128xf32>
    %cst_121 = arith.constant dense<0.000000e+00> : vector<128xf32>
    %328 = vector.multi_reduction <add>, %327, %cst_121 [0] : vector<32x128xf32> to vector<128xf32>
    %329 = vector.shape_cast %328 : vector<128xf32> to vector<1x128xf32>
    %330 = tpu.concatenate %326, %329 in 0 : vector<1x128xf32>, vector<1x128xf32> -> vector<2x128xf32>
    %c512_122 = arith.constant 512 : index
    %c0_123 = arith.constant 0 : index
    %331 = vector.load %arg2[%c512_122, %c0_123] : memref<1152x128xbf16, #tpu.memory_space<vmem>>, vector<128x8xbf16>
    %332 = arith.truncf %330 : vector<2x128xf32> to vector<2x128xbf16>
    %cst_124 = arith.constant dense<0.000000e+00> : vector<2x8xf32>
    %333 = tpu.matmul %332, %331, %cst_124 {dimension_numbers = #tpu.dot_dimension_numbers<[1], [0], [0], [1], [0, 0, 1, 1], [], []>} : vector<2x128xbf16>, vector<128x8xbf16>, vector<2x8xf32> -> vector<2x8xf32>
    %cst_125 = arith.constant 0.001953125 : f32
    %334 = vector.broadcast %cst_125 : f32 to vector<2x8xf32>
    %335 = arith.mulf %333, %334 : vector<2x8xf32>
    %336 = vector.extract_strided_slice %335 {offsets = [0, 0], sizes = [1, 8], strides = [1, 1]} : vector<2x8xf32> to vector<1x8xf32>
    %337 = vector.extract_strided_slice %335 {offsets = [1, 0], sizes = [1, 8], strides = [1, 1]} : vector<2x8xf32> to vector<1x8xf32>
    %338 = arith.mulf %336, %336 : vector<1x8xf32>
    %339 = arith.subf %337, %338 : vector<1x8xf32>
    %cst_126 = arith.constant 0.000000e+00 : f32
    %340 = vector.broadcast %cst_126 : f32 to vector<1x8xf32>
    %341 = arith.maximumf %339, %340 : vector<1x8xf32>
    %cst_127 = arith.constant 9.99999974E-6 : f32
    %342 = vector.broadcast %cst_127 : f32 to vector<1x8xf32>
    %343 = arith.addf %341, %342 : vector<1x8xf32>
    %344 = math.rsqrt %343 : vector<1x8xf32>
    %cst_128 = arith.constant 0.000000e+00 : f32
    %345 = vector.broadcast %cst_128 : f32 to vector<1x8xf32>
    %346 = arith.subf %345, %336 : vector<1x8xf32>
    %347 = arith.mulf %346, %344 : vector<1x8xf32>
    %348 = tpu.concatenate %344, %347 in 0 : vector<1x8xf32>, vector<1x8xf32> -> vector<2x8xf32>
    %c72 = arith.constant 72 : index
    %c0_129 = arith.constant 0 : index
    %349 = vector.load %arg3[%c72, %c0_129] : memref<96x256xbf16, #tpu.memory_space<vmem>>, vector<8x128xbf16>
    %350 = arith.truncf %348 : vector<2x8xf32> to vector<2x8xbf16>
    %cst_130 = arith.constant dense<0.000000e+00> : vector<2x128xf32>
    %351 = tpu.matmul %350, %349, %cst_130 {dimension_numbers = #tpu.dot_dimension_numbers<[1], [0], [0], [1], [0, 0, 1, 1], [], []>} : vector<2x8xbf16>, vector<8x128xbf16>, vector<2x128xf32> -> vector<2x128xf32>
    %352 = vector.extract_strided_slice %351 {offsets = [0, 0], sizes = [1, 128], strides = [1, 1]} : vector<2x128xf32> to vector<1x128xf32>
    %353 = vector.broadcast %352 : vector<1x128xf32> to vector<32x128xf32>
    %354 = arith.mulf %323, %353 : vector<32x128xf32>
    %355 = vector.extract_strided_slice %351 {offsets = [1, 0], sizes = [1, 128], strides = [1, 1]} : vector<2x128xf32> to vector<1x128xf32>
    %356 = vector.broadcast %355 : vector<1x128xf32> to vector<32x128xf32>
    %357 = arith.addf %354, %356 : vector<32x128xf32>
    %cst_131 = arith.constant 0.000000e+00 : f32
    %358 = vector.broadcast %cst_131 : f32 to vector<32x128xf32>
    %359 = arith.maximumf %357, %358 : vector<32x128xf32>
    %360 = vector.extract_strided_slice %324 {offsets = [0, 0], sizes = [128, 768], strides = [1, 1]} : vector<128x1024xbf16> to vector<128x768xbf16>
    %361 = arith.truncf %359 : vector<32x128xf32> to vector<32x128xbf16>
    %cst_132 = arith.constant dense<0.000000e+00> : vector<32x768xf32>
    %362 = tpu.matmul %361, %360, %cst_132 {dimension_numbers = #tpu.dot_dimension_numbers<[1], [0], [0], [1], [0, 0, 1, 1], [], []>} : vector<32x128xbf16>, vector<128x768xbf16>, vector<32x768xf32> -> vector<32x768xf32>
    %363 = vector.extract_strided_slice %324 {offsets = [0, 768], sizes = [128, 256], strides = [1, 1]} : vector<128x1024xbf16> to vector<128x256xbf16>
    %364 = arith.truncf %323 : vector<32x128xf32> to vector<32x128xbf16>
    %cst_133 = arith.constant dense<0.000000e+00> : vector<32x256xf32>
    %365 = tpu.matmul %364, %363, %cst_133 {dimension_numbers = #tpu.dot_dimension_numbers<[1], [0], [0], [1], [0, 0, 1, 1], [], []>} : vector<32x128xbf16>, vector<128x256xbf16>, vector<32x256xf32> -> vector<32x256xf32>
    %c48_134 = arith.constant 48 : index
    %c0_135 = arith.constant 0 : index
    %366 = vector.load %arg4[%c48_134, %c0_135] : memref<112x128xbf16, #tpu.memory_space<vmem>>, vector<64x32xbf16>
    %367 = tpu.concatenate %362, %365 in 1 : vector<32x768xf32>, vector<32x256xf32> -> vector<32x1024xf32>
    %368 = arith.truncf %367 : vector<32x1024xf32> to vector<32x1024xbf16>
    %cst_136 = arith.constant dense<0.000000e+00> : vector<64x1024xf32>
    %369 = tpu.matmul %366, %368, %cst_136 {dimension_numbers = #tpu.dot_dimension_numbers<[1], [0], [0], [1], [0, 0, 1, 1], [], []>} : vector<64x32xbf16>, vector<32x1024xbf16>, vector<64x1024xf32> -> vector<64x1024xf32>
    %370 = vector.extract_strided_slice %369 {offsets = [0, 0], sizes = [64, 256], strides = [1, 1]} : vector<64x1024xf32> to vector<64x256xf32>
    %371 = vector.extract_strided_slice %369 {offsets = [0, 256], sizes = [64, 256], strides = [1, 1]} : vector<64x1024xf32> to vector<64x256xf32>
    %372 = vector.extract_strided_slice %369 {offsets = [0, 512], sizes = [64, 256], strides = [1, 1]} : vector<64x1024xf32> to vector<64x256xf32>
    %373 = tpu.iota {dimensions = array<i32: 0>} : vector<64x256xi32>
    %c32_i32 = arith.constant 32 : i32
    %c0_i32_137 = arith.constant 0 : i32
    %374 = arith.cmpi eq, %c32_i32, %c0_i32_137 : i32
    %c1_i32_138 = arith.constant 1 : i32
    %375 = arith.select %374, %c1_i32_138, %c32_i32 : i32
    %376 = vector.broadcast %375 : i32 to vector<64x256xi32>
    %377 = arith.remsi %373, %376 : vector<64x256xi32>
    %c0_i32_139 = arith.constant 0 : i32
    %378 = vector.broadcast %c0_i32_139 : i32 to vector<64x256xi32>
    %379 = arith.cmpi ne, %377, %378 : vector<64x256xi32>
    %c0_i32_140 = arith.constant 0 : i32
    %380 = vector.broadcast %c0_i32_140 : i32 to vector<64x256xi32>
    %381 = arith.cmpi slt, %377, %380 : vector<64x256xi32>
    %c0_i32_141 = arith.constant 0 : i32
    %382 = arith.cmpi slt, %375, %c0_i32_141 : i32
    %383 = vector.broadcast %382 : i1 to vector<64x256xi1>
    %384 = vector.broadcast %383 : vector<64x256xi1> to vector<64x256xi1>
    %385 = arith.xori %381, %384 : vector<64x256xi1>
    %386 = arith.andi %385, %379 : vector<64x256xi1>
    %387 = vector.broadcast %375 : i32 to vector<64x256xi32>
    %388 = arith.addi %377, %387 : vector<64x256xi32>
    %389 = arith.select %386, %388, %377 : vector<64x256xi1>, vector<64x256xi32>
    %c1_i32_142 = arith.constant 1 : i32
    %390 = tpu.dynamic_rotate %370 by %c1_i32_142 dim 0 : vector<64x256xf32>, i32 -> vector<64x256xf32>
    %c63_i32 = arith.constant 63 : i32
    %391 = tpu.dynamic_rotate %372 by %c63_i32 dim 0 : vector<64x256xf32>, i32 -> vector<64x256xf32>
    %c0_i32_143 = arith.constant 0 : i32
    %392 = vector.broadcast %c0_i32_143 : i32 to vector<64x256xi32>
    %393 = arith.cmpi eq, %389, %392 : vector<64x256xi32>
    %cst_144 = arith.constant 0.000000e+00 : f32
    %394 = vector.broadcast %cst_144 : f32 to vector<64x256xf32>
    %395 = arith.select %393, %394, %390 : vector<64x256xi1>, vector<64x256xf32>
    %c31_i32_145 = arith.constant 31 : i32
    %396 = vector.broadcast %c31_i32_145 : i32 to vector<64x256xi32>
    %397 = arith.cmpi eq, %389, %396 : vector<64x256xi32>
    %cst_146 = arith.constant 0.000000e+00 : f32
    %398 = vector.broadcast %cst_146 : f32 to vector<64x256xf32>
    %399 = arith.select %397, %398, %391 : vector<64x256xi1>, vector<64x256xf32>
    %400 = arith.addf %395, %371 : vector<64x256xf32>
    %401 = arith.addf %400, %399 : vector<64x256xf32>
    %c56 = arith.constant 56 : index
    %c0_147 = arith.constant 0 : index
    %402 = vector.load %arg5[%c56, %c0_147] : memref<88x256xf32, #tpu.memory_space<vmem>>, vector<1x256xf32>
    %403 = vector.broadcast %402 : vector<1x256xf32> to vector<64x256xf32>
    %404 = arith.addf %401, %403 : vector<64x256xf32>
    %cst_148 = arith.constant dense<0.000000e+00> : vector<256xf32>
    %405 = vector.multi_reduction <add>, %404, %cst_148 [0] : vector<64x256xf32> to vector<256xf32>
    %406 = vector.shape_cast %405 : vector<256xf32> to vector<1x256xf32>
    %407 = arith.mulf %404, %404 : vector<64x256xf32>
    %cst_149 = arith.constant dense<0.000000e+00> : vector<256xf32>
    %408 = vector.multi_reduction <add>, %407, %cst_149 [0] : vector<64x256xf32> to vector<256xf32>
    %409 = vector.shape_cast %408 : vector<256xf32> to vector<1x256xf32>
    %410 = tpu.concatenate %406, %409 in 0 : vector<1x256xf32>, vector<1x256xf32> -> vector<2x256xf32>
    %c640_150 = arith.constant 640 : index
    %c0_151 = arith.constant 0 : index
    %411 = vector.load %arg2[%c640_150, %c0_151] : memref<1152x128xbf16, #tpu.memory_space<vmem>>, vector<256x8xbf16>
    %412 = arith.truncf %410 : vector<2x256xf32> to vector<2x256xbf16>
    %cst_152 = arith.constant dense<0.000000e+00> : vector<2x8xf32>
    %413 = tpu.matmul %412, %411, %cst_152 {dimension_numbers = #tpu.dot_dimension_numbers<[1], [0], [0], [1], [0, 0, 1, 1], [], []>} : vector<2x256xbf16>, vector<256x8xbf16>, vector<2x8xf32> -> vector<2x8xf32>
    %cst_153 = arith.constant 4.8828125E-4 : f32
    %414 = vector.broadcast %cst_153 : f32 to vector<2x8xf32>
    %415 = arith.mulf %413, %414 : vector<2x8xf32>
    %416 = vector.extract_strided_slice %415 {offsets = [0, 0], sizes = [1, 8], strides = [1, 1]} : vector<2x8xf32> to vector<1x8xf32>
    %417 = vector.extract_strided_slice %415 {offsets = [1, 0], sizes = [1, 8], strides = [1, 1]} : vector<2x8xf32> to vector<1x8xf32>
    %418 = arith.mulf %416, %416 : vector<1x8xf32>
    %419 = arith.subf %417, %418 : vector<1x8xf32>
    %cst_154 = arith.constant 0.000000e+00 : f32
    %420 = vector.broadcast %cst_154 : f32 to vector<1x8xf32>
    %421 = arith.maximumf %419, %420 : vector<1x8xf32>
    %cst_155 = arith.constant 9.99999974E-6 : f32
    %422 = vector.broadcast %cst_155 : f32 to vector<1x8xf32>
    %423 = arith.addf %421, %422 : vector<1x8xf32>
    %424 = math.rsqrt %423 : vector<1x8xf32>
    %cst_156 = arith.constant 0.000000e+00 : f32
    %425 = vector.broadcast %cst_156 : f32 to vector<1x8xf32>
    %426 = arith.subf %425, %416 : vector<1x8xf32>
    %427 = arith.mulf %426, %424 : vector<1x8xf32>
    %428 = tpu.concatenate %424, %427 in 0 : vector<1x8xf32>, vector<1x8xf32> -> vector<2x8xf32>
    %c80 = arith.constant 80 : index
    %c0_157 = arith.constant 0 : index
    %429 = vector.load %arg3[%c80, %c0_157] : memref<96x256xbf16, #tpu.memory_space<vmem>>, vector<8x256xbf16>
    %430 = arith.truncf %428 : vector<2x8xf32> to vector<2x8xbf16>
    %cst_158 = arith.constant dense<0.000000e+00> : vector<2x256xf32>
    %431 = tpu.matmul %430, %429, %cst_158 {dimension_numbers = #tpu.dot_dimension_numbers<[1], [0], [0], [1], [0, 0, 1, 1], [], []>} : vector<2x8xbf16>, vector<8x256xbf16>, vector<2x256xf32> -> vector<2x256xf32>
    %432 = vector.extract_strided_slice %431 {offsets = [0, 0], sizes = [1, 256], strides = [1, 1]} : vector<2x256xf32> to vector<1x256xf32>
    %433 = vector.broadcast %432 : vector<1x256xf32> to vector<64x256xf32>
    %434 = arith.mulf %404, %433 : vector<64x256xf32>
    %435 = vector.extract_strided_slice %431 {offsets = [1, 0], sizes = [1, 256], strides = [1, 1]} : vector<2x256xf32> to vector<1x256xf32>
    %436 = vector.broadcast %435 : vector<1x256xf32> to vector<64x256xf32>
    %437 = arith.addf %434, %436 : vector<64x256xf32>
    %cst_159 = arith.constant 0.000000e+00 : f32
    %438 = vector.broadcast %cst_159 : f32 to vector<64x256xf32>
    %439 = arith.maximumf %437, %438 : vector<64x256xf32>
    %c768 = arith.constant 768 : index
    %c0_160 = arith.constant 0 : index
    %440 = vector.load %arg1[%c768, %c0_160] : memref<1280x1024xbf16, #tpu.memory_space<vmem>>, vector<256x768xbf16>
    %441 = arith.truncf %439 : vector<64x256xf32> to vector<64x256xbf16>
    %cst_161 = arith.constant dense<0.000000e+00> : vector<64x768xf32>
    %442 = tpu.matmul %441, %440, %cst_161 {dimension_numbers = #tpu.dot_dimension_numbers<[1], [0], [0], [1], [0, 0, 1, 1], [], []>} : vector<64x256xbf16>, vector<256x768xbf16>, vector<64x768xf32> -> vector<64x768xf32>
    %443 = vector.extract_strided_slice %442 {offsets = [0, 0], sizes = [64, 256], strides = [1, 1]} : vector<64x768xf32> to vector<64x256xf32>
    %444 = vector.extract_strided_slice %442 {offsets = [0, 256], sizes = [64, 256], strides = [1, 1]} : vector<64x768xf32> to vector<64x256xf32>
    %445 = vector.extract_strided_slice %442 {offsets = [0, 512], sizes = [64, 256], strides = [1, 1]} : vector<64x768xf32> to vector<64x256xf32>
    %446 = tpu.iota {dimensions = array<i32: 0>} : vector<64x256xi32>
    %c32_i32_162 = arith.constant 32 : i32
    %c0_i32_163 = arith.constant 0 : i32
    %447 = arith.cmpi eq, %c32_i32_162, %c0_i32_163 : i32
    %c1_i32_164 = arith.constant 1 : i32
    %448 = arith.select %447, %c1_i32_164, %c32_i32_162 : i32
    %449 = vector.broadcast %448 : i32 to vector<64x256xi32>
    %450 = arith.remsi %446, %449 : vector<64x256xi32>
    %c0_i32_165 = arith.constant 0 : i32
    %451 = vector.broadcast %c0_i32_165 : i32 to vector<64x256xi32>
    %452 = arith.cmpi ne, %450, %451 : vector<64x256xi32>
    %c0_i32_166 = arith.constant 0 : i32
    %453 = vector.broadcast %c0_i32_166 : i32 to vector<64x256xi32>
    %454 = arith.cmpi slt, %450, %453 : vector<64x256xi32>
    %c0_i32_167 = arith.constant 0 : i32
    %455 = arith.cmpi slt, %448, %c0_i32_167 : i32
    %456 = vector.broadcast %455 : i1 to vector<64x256xi1>
    %457 = vector.broadcast %456 : vector<64x256xi1> to vector<64x256xi1>
    %458 = arith.xori %454, %457 : vector<64x256xi1>
    %459 = arith.andi %458, %452 : vector<64x256xi1>
    %460 = vector.broadcast %448 : i32 to vector<64x256xi32>
    %461 = arith.addi %450, %460 : vector<64x256xi32>
    %462 = arith.select %459, %461, %450 : vector<64x256xi1>, vector<64x256xi32>
    %c1_i32_168 = arith.constant 1 : i32
    %463 = tpu.dynamic_rotate %443 by %c1_i32_168 dim 0 : vector<64x256xf32>, i32 -> vector<64x256xf32>
    %c63_i32_169 = arith.constant 63 : i32
    %464 = tpu.dynamic_rotate %445 by %c63_i32_169 dim 0 : vector<64x256xf32>, i32 -> vector<64x256xf32>
    %c0_i32_170 = arith.constant 0 : i32
    %465 = vector.broadcast %c0_i32_170 : i32 to vector<64x256xi32>
    %466 = arith.cmpi eq, %462, %465 : vector<64x256xi32>
    %cst_171 = arith.constant 0.000000e+00 : f32
    %467 = vector.broadcast %cst_171 : f32 to vector<64x256xf32>
    %468 = arith.select %466, %467, %463 : vector<64x256xi1>, vector<64x256xf32>
    %c31_i32_172 = arith.constant 31 : i32
    %469 = vector.broadcast %c31_i32_172 : i32 to vector<64x256xi32>
    %470 = arith.cmpi eq, %462, %469 : vector<64x256xi32>
    %cst_173 = arith.constant 0.000000e+00 : f32
    %471 = vector.broadcast %cst_173 : f32 to vector<64x256xf32>
    %472 = arith.select %470, %471, %464 : vector<64x256xi1>, vector<64x256xf32>
    %473 = arith.addf %468, %444 : vector<64x256xf32>
    %474 = arith.addf %473, %472 : vector<64x256xf32>
    %c64_174 = arith.constant 64 : index
    %c0_175 = arith.constant 0 : index
    %475 = vector.load %arg5[%c64_174, %c0_175] : memref<88x256xf32, #tpu.memory_space<vmem>>, vector<1x256xf32>
    %476 = vector.broadcast %475 : vector<1x256xf32> to vector<64x256xf32>
    %477 = arith.addf %474, %476 : vector<64x256xf32>
    %478 = vector.extract_strided_slice %369 {offsets = [0, 768], sizes = [64, 256], strides = [1, 1]} : vector<64x1024xf32> to vector<64x256xf32>
    %479 = arith.addf %477, %478 : vector<64x256xf32>
    %c72_176 = arith.constant 72 : index
    %c0_177 = arith.constant 0 : index
    %480 = vector.load %arg5[%c72_176, %c0_177] : memref<88x256xf32, #tpu.memory_space<vmem>>, vector<1x256xf32>
    %481 = vector.broadcast %480 : vector<1x256xf32> to vector<64x256xf32>
    %482 = arith.addf %479, %481 : vector<64x256xf32>
    %cst_178 = arith.constant dense<0.000000e+00> : vector<256xf32>
    %483 = vector.multi_reduction <add>, %482, %cst_178 [0] : vector<64x256xf32> to vector<256xf32>
    %484 = vector.shape_cast %483 : vector<256xf32> to vector<1x256xf32>
    %485 = arith.mulf %482, %482 : vector<64x256xf32>
    %cst_179 = arith.constant dense<0.000000e+00> : vector<256xf32>
    %486 = vector.multi_reduction <add>, %485, %cst_179 [0] : vector<64x256xf32> to vector<256xf32>
    %487 = vector.shape_cast %486 : vector<256xf32> to vector<1x256xf32>
    %488 = tpu.concatenate %484, %487 in 0 : vector<1x256xf32>, vector<1x256xf32> -> vector<2x256xf32>
    %c896 = arith.constant 896 : index
    %c0_180 = arith.constant 0 : index
    %489 = vector.load %arg2[%c896, %c0_180] : memref<1152x128xbf16, #tpu.memory_space<vmem>>, vector<256x8xbf16>
    %490 = arith.truncf %488 : vector<2x256xf32> to vector<2x256xbf16>
    %cst_181 = arith.constant dense<0.000000e+00> : vector<2x8xf32>
    %491 = tpu.matmul %490, %489, %cst_181 {dimension_numbers = #tpu.dot_dimension_numbers<[1], [0], [0], [1], [0, 0, 1, 1], [], []>} : vector<2x256xbf16>, vector<256x8xbf16>, vector<2x8xf32> -> vector<2x8xf32>
    %cst_182 = arith.constant 4.8828125E-4 : f32
    %492 = vector.broadcast %cst_182 : f32 to vector<2x8xf32>
    %493 = arith.mulf %491, %492 : vector<2x8xf32>
    %494 = vector.extract_strided_slice %493 {offsets = [0, 0], sizes = [1, 8], strides = [1, 1]} : vector<2x8xf32> to vector<1x8xf32>
    %495 = vector.extract_strided_slice %493 {offsets = [1, 0], sizes = [1, 8], strides = [1, 1]} : vector<2x8xf32> to vector<1x8xf32>
    %496 = arith.mulf %494, %494 : vector<1x8xf32>
    %497 = arith.subf %495, %496 : vector<1x8xf32>
    %cst_183 = arith.constant 0.000000e+00 : f32
    %498 = vector.broadcast %cst_183 : f32 to vector<1x8xf32>
    %499 = arith.maximumf %497, %498 : vector<1x8xf32>
    %cst_184 = arith.constant 9.99999974E-6 : f32
    %500 = vector.broadcast %cst_184 : f32 to vector<1x8xf32>
    %501 = arith.addf %499, %500 : vector<1x8xf32>
    %502 = math.rsqrt %501 : vector<1x8xf32>
    %cst_185 = arith.constant 0.000000e+00 : f32
    %503 = vector.broadcast %cst_185 : f32 to vector<1x8xf32>
    %504 = arith.subf %503, %494 : vector<1x8xf32>
    %505 = arith.mulf %504, %502 : vector<1x8xf32>
    %506 = tpu.concatenate %502, %505 in 0 : vector<1x8xf32>, vector<1x8xf32> -> vector<2x8xf32>
    %c88 = arith.constant 88 : index
    %c0_186 = arith.constant 0 : index
    %507 = vector.load %arg3[%c88, %c0_186] : memref<96x256xbf16, #tpu.memory_space<vmem>>, vector<8x256xbf16>
    %508 = arith.truncf %506 : vector<2x8xf32> to vector<2x8xbf16>
    %cst_187 = arith.constant dense<0.000000e+00> : vector<2x256xf32>
    %509 = tpu.matmul %508, %507, %cst_187 {dimension_numbers = #tpu.dot_dimension_numbers<[1], [0], [0], [1], [0, 0, 1, 1], [], []>} : vector<2x8xbf16>, vector<8x256xbf16>, vector<2x256xf32> -> vector<2x256xf32>
    %510 = vector.extract_strided_slice %509 {offsets = [0, 0], sizes = [1, 256], strides = [1, 1]} : vector<2x256xf32> to vector<1x256xf32>
    %511 = vector.broadcast %510 : vector<1x256xf32> to vector<64x256xf32>
    %512 = arith.mulf %482, %511 : vector<64x256xf32>
    %513 = vector.extract_strided_slice %509 {offsets = [1, 0], sizes = [1, 256], strides = [1, 1]} : vector<2x256xf32> to vector<1x256xf32>
    %514 = vector.broadcast %513 : vector<1x256xf32> to vector<64x256xf32>
    %515 = arith.addf %512, %514 : vector<64x256xf32>
    %cst_188 = arith.constant 0.000000e+00 : f32
    %516 = vector.broadcast %cst_188 : f32 to vector<64x256xf32>
    %517 = arith.maximumf %515, %516 : vector<64x256xf32>
    %c1024 = arith.constant 1024 : index
    %c0_189 = arith.constant 0 : index
    %518 = vector.load %arg1[%c1024, %c0_189] : memref<1280x1024xbf16, #tpu.memory_space<vmem>>, vector<256x384xbf16>
    %519 = arith.truncf %517 : vector<64x256xf32> to vector<64x256xbf16>
    %cst_190 = arith.constant dense<0.000000e+00> : vector<64x384xf32>
    %520 = tpu.matmul %519, %518, %cst_190 {dimension_numbers = #tpu.dot_dimension_numbers<[1], [0], [0], [1], [0, 0, 1, 1], [], []>} : vector<64x256xbf16>, vector<256x384xbf16>, vector<64x384xf32> -> vector<64x384xf32>
    %521 = vector.extract_strided_slice %520 {offsets = [0, 0], sizes = [64, 128], strides = [1, 1]} : vector<64x384xf32> to vector<64x128xf32>
    %522 = vector.extract_strided_slice %520 {offsets = [0, 128], sizes = [64, 128], strides = [1, 1]} : vector<64x384xf32> to vector<64x128xf32>
    %523 = vector.extract_strided_slice %520 {offsets = [0, 256], sizes = [64, 128], strides = [1, 1]} : vector<64x384xf32> to vector<64x128xf32>
    %524 = tpu.iota {dimensions = array<i32: 0>} : vector<64x128xi32>
    %c32_i32_191 = arith.constant 32 : i32
    %c0_i32_192 = arith.constant 0 : i32
    %525 = arith.cmpi eq, %c32_i32_191, %c0_i32_192 : i32
    %c1_i32_193 = arith.constant 1 : i32
    %526 = arith.select %525, %c1_i32_193, %c32_i32_191 : i32
    %527 = vector.broadcast %526 : i32 to vector<64x128xi32>
    %528 = arith.remsi %524, %527 : vector<64x128xi32>
    %c0_i32_194 = arith.constant 0 : i32
    %529 = vector.broadcast %c0_i32_194 : i32 to vector<64x128xi32>
    %530 = arith.cmpi ne, %528, %529 : vector<64x128xi32>
    %c0_i32_195 = arith.constant 0 : i32
    %531 = vector.broadcast %c0_i32_195 : i32 to vector<64x128xi32>
    %532 = arith.cmpi slt, %528, %531 : vector<64x128xi32>
    %c0_i32_196 = arith.constant 0 : i32
    %533 = arith.cmpi slt, %526, %c0_i32_196 : i32
    %534 = vector.broadcast %533 : i1 to vector<64x128xi1>
    %535 = vector.broadcast %534 : vector<64x128xi1> to vector<64x128xi1>
    %536 = arith.xori %532, %535 : vector<64x128xi1>
    %537 = arith.andi %536, %530 : vector<64x128xi1>
    %538 = vector.broadcast %526 : i32 to vector<64x128xi32>
    %539 = arith.addi %528, %538 : vector<64x128xi32>
    %540 = arith.select %537, %539, %528 : vector<64x128xi1>, vector<64x128xi32>
    %c1_i32_197 = arith.constant 1 : i32
    %541 = tpu.dynamic_rotate %521 by %c1_i32_197 dim 0 : vector<64x128xf32>, i32 -> vector<64x128xf32>
    %c63_i32_198 = arith.constant 63 : i32
    %542 = tpu.dynamic_rotate %523 by %c63_i32_198 dim 0 : vector<64x128xf32>, i32 -> vector<64x128xf32>
    %c0_i32_199 = arith.constant 0 : i32
    %543 = vector.broadcast %c0_i32_199 : i32 to vector<64x128xi32>
    %544 = arith.cmpi eq, %540, %543 : vector<64x128xi32>
    %cst_200 = arith.constant 0.000000e+00 : f32
    %545 = vector.broadcast %cst_200 : f32 to vector<64x128xf32>
    %546 = arith.select %544, %545, %541 : vector<64x128xi1>, vector<64x128xf32>
    %c31_i32_201 = arith.constant 31 : i32
    %547 = vector.broadcast %c31_i32_201 : i32 to vector<64x128xi32>
    %548 = arith.cmpi eq, %540, %547 : vector<64x128xi32>
    %cst_202 = arith.constant 0.000000e+00 : f32
    %549 = vector.broadcast %cst_202 : f32 to vector<64x128xf32>
    %550 = arith.select %548, %549, %542 : vector<64x128xi1>, vector<64x128xf32>
    %551 = arith.addf %546, %522 : vector<64x128xf32>
    %552 = arith.addf %551, %550 : vector<64x128xf32>
    %c80_203 = arith.constant 80 : index
    %c0_204 = arith.constant 0 : index
    %553 = vector.load %arg5[%c80_203, %c0_204] : memref<88x256xf32, #tpu.memory_space<vmem>>, vector<1x128xf32>
    %554 = vector.broadcast %553 : vector<1x128xf32> to vector<64x128xf32>
    %555 = arith.addf %552, %554 : vector<64x128xf32>
    %556 = math.tanh %555 : vector<64x128xf32>
    %c0_205 = arith.constant 0 : index
    %c0_206 = arith.constant 0 : index
    %557 = vector.load %arg6[%c0_205, %c0_206] : memref<64x128xf32, #tpu.memory_space<vmem>>, vector<64x128xf32>
    tpu.vector_store %arg6[%c0_205, %c0_206], %556 {strides = array<i32>} : memref<64x128xf32, #tpu.memory_space<vmem>>, vector<64x128xf32>,
    return
  }
}

</mosaic_0001>

<bundles_post_ra>
// kernel: reconstructor_forward.1
= control target key start
LH: loop header
LB: loop body
LE: loop exit
PB: predicated region body
PF: predicated region fallthrough
CT: control target
= control target key end

     0   :  { %11 = vsyncpa [#allocation3], 0  ;;  %s9067_s0 = inlined_call_operand.vmem [shape: bf16[8,128], index: 0, kind: input, shape index: {}]   ;;  %s9068_s1 = inlined_call_operand.hbm [shape: bf16[1280,1024], index: 1, kind: input, shape index: {}]   ;;  %s9069_s2 = inlined_call_operand.hbm [shape: bf16[1152,128], index: 2, kind: input, shape index: {}]   ;;  %s9070_s3 = inlined_call_operand.hbm [shape: bf16[96,256], index: 3, kind: input, shape index: {}]   ;;  %s9071_s4 = inlined_call_operand.hbm [shape: bf16[112,128], index: 4, kind: input, shape index: {}]   ;;  %s9072_s5 = inlined_call_operand.hbm [shape: f32[88,256], index: 5, kind: input, shape index: {}]   ;;  %s9073_s6 = inlined_call_operand.vmem [shape: f32[64,128], index: 6, kind: output, shape index: {}]  }
   0x1   :  { %12 = vsyncpa [#allocation5], 0 }
   0x2   :  { %13 = vsyncpa [#allocation8], 0  ;;  %s7562_s21 = smov [#allocation4]  }
   0x3   :  { %s33_s22 = sshll.u32 %s7562_s21, 4  ;;  %s34_s22 = int_to_ptr.vmem [resolvable:$true] %s33_s22 }
   0x4   :  { %s7464_s23 = scalar_lea.vmem %s34_s22, 9216  ;;  %p7469_p1 = scmp.lt.s32.totalorder %s34_s22, %s34_s22 }
   0x5   :  { %p7465_p0 = scmp.ne.s32.totalorder %s34_s22, %s7464_s23  ;;  %p7470_p2 = scmp.lt.s32.totalorder %s7464_s23, %s7464_s23 }
   0x7   :  { %p7471_p3 = por %p7470_p2, %p7469_p1 }
   0x9   :  { %p7472_p4 = pnand %p7471_p3, %p7465_p0 }
   0xb   :  { %7475 = shalt.err (!%p7472_p4)
}
   0xc   :  { %s7563_s24 = smov 64   ;;  %s7564_s25 = smov 4  }
   0xd   :  { %39 = dma.hbm_to_vmem [thread:$0]  %s9069_s2, 9216, %s34_s22, [#allocation5], %s7563_s24, %s7563_s24, %s7564_s25  }
   0xe   :  { %s7565_s28 = smov [#allocation7]   ;;  %s7566_s30 = smov [#allocation2]  }
   0xf   :  { %s57_s29 = sshll.u32 %s7565_s28, 4  ;;  %s21_s7 = sshll.u32 %s7566_s30, 4  ;;  %s58_s29 = int_to_ptr.vmem [resolvable:$true] %s57_s29  ;;  %s22_s7 = int_to_ptr.vmem [resolvable:$true] %s21_s7 }
  0x10   :  { %s7484_s8 = scalar_lea.vmem %s58_s29, 896  ;;  %p7489_p6 = scmp.lt.s32.totalorder %s58_s29, %s58_s29 }
  0x11   :  { %p7485_p5 = scmp.ne.s32.totalorder %s58_s29, %s7484_s8  ;;  %p7490_p7 = scmp.lt.s32.totalorder %s7484_s8, %s7484_s8 }
  0x13   :  { %p7491_p8 = por %p7490_p7, %p7489_p6 }
  0x15   :  { %p7492_p9 = pnand %p7491_p8, %p7485_p5 }
  0x17   :  { %7495 = shalt.err (!%p7492_p9)
}
  0x18   :  { %63 = dma.hbm_to_vmem [thread:$0]  %s9071_s4, 896, %s58_s29, [#allocation8], %s7563_s24, %s7563_s24, %s7564_s25  }
  0x19   :  { %s7504_s11 = scalar_lea.vmem %s22_s7, 81920  ;;  %p7509_p11 = scmp.lt.s32.totalorder %s22_s7, %s22_s7 }
  0x1a   :  { %p7505_p10 = scmp.ne.s32.totalorder %s22_s7, %s7504_s11  ;;  %p7510_p12 = scmp.lt.s32.totalorder %s7504_s11, %s7504_s11 }
  0x1c   :  { %p7511_p13 = por %p7510_p12, %p7509_p11 }
  0x1e   :  { %p7512_p0 = pnand %p7511_p13, %p7505_p10 }
  0x20   :  { %7515 = shalt.err (!%p7512_p0)
}
  0x21   :  { %s7567_s2 = smov 512   ;;  %s7568_s12 = smov 32  }
  0x22   :  { %27 = dma.hbm_to_vmem [thread:$0]  %s9068_s1, 81920, %s22_s7, [#allocation3], %s7567_s2, %s7567_s2, %s7568_s12  }
  0x23   :  { %s7569_s15 = smov [#allocation6]  }
  0x24   :  { %s45_s16 = sshll.u32 %s7569_s15, 4  ;;  %s46_s16 = int_to_ptr.vmem [resolvable:$true] %s45_s16 }
  0x25   :  { %s7524_s17 = scalar_lea.vmem %s46_s16, 1536  ;;  %p7529_p2 = scmp.lt.s32.totalorder %s46_s16, %s46_s16 }
  0x26   :  { %p7525_p1 = scmp.ne.s32.totalorder %s46_s16, %s7524_s17  ;;  %p7530_p3 = scmp.lt.s32.totalorder %s7524_s17, %s7524_s17 }
  0x28   :  { %p7531_p4 = por %p7530_p3, %p7529_p2 }
  0x2a   :  { %p7532_p5 = pnand %p7531_p4, %p7525_p1 }
  0x2c   :  { %7535 = shalt.err (!%p7532_p5)
}
  0x2d   :  { %s7570_s4 = smov 128   ;;  %s7571_s18 = smov 8  }
  0x2e   :  { %51 = dma.hbm_to_vmem [thread:$0]  %s9070_s3, 1536, %s46_s16, [#allocation5], %s7570_s4, %s7570_s4, %s7571_s18  }
  0x2f   :  { %s7572_s21 = smov [#allocation9]  }
  0x30   :  { %s69_s22 = sshll.u32 %s7572_s21, 4  ;;  %s70_s22 = int_to_ptr.vmem [resolvable:$true] %s69_s22 }
  0x31   :  { %s7544_s1 = scalar_lea.vmem %s70_s22, 2816  ;;  %p7549_p7 = scmp.lt.s32.totalorder %s70_s22, %s70_s22 }
  0x32   :  { %p7545_p6 = scmp.ne.s32.totalorder %s70_s22, %s7544_s1  ;;  %p7550_p8 = scmp.lt.s32.totalorder %s7544_s1, %s7544_s1 }
  0x34   :  { %p7551_p9 = por %p7550_p8, %p7549_p7 }
  0x36   :  { %p7552_p10 = pnand %p7551_p9, %p7545_p6 }
  0x38   :  { %7555 = shalt.err (!%p7552_p10)
}
  0x39   :  { %s7573_s23 = smov 256   ;;  %s7574_s24 = smov 16  }
  0x3a   :  { %75 = dma.hbm_to_vmem [thread:$0]  %s9072_s5, 2816, %s70_s22, [#allocation8], %s7573_s23, %s7573_s23, %s7574_s24  }
  0x3b   :  { %7556 = dma.done.wait [#allocation3], 81920  }
  0x3c   :  { %7557 = vsyncadd [#allocation3], 4294885376 }
  0x3d   :  { %7558 = dma.done.wait [#allocation5], 10752  }
  0x3e   :  { %7559 = vsyncadd [#allocation5], 4294956544 }
  0x3f   :  { %7560 = dma.done.wait [#allocation8], 3712  }
  0x40   :  { %7561 = vsyncadd [#allocation8], 4294963584  ;;  %v7575_v0 = vmov 0.0   ;;  %vm7576_vm0 = vmmov 0   ;;  %v107_v1 = vld [vmem:[#allocation2 + $0x1c0] sm:$0xf] }
  0x41   :  { %7051 = vmatprep.subr.bf16.mxu0 %v7575_v0  ;;  %7067 = vmatprep.mubr.msk.bf16.mxu0 %vm7576_vm0, %v7575_v0  ;;  %v108_v2 = vld [vmem:[#allocation2 + $0x1e0] sm:$0xf]  ;;  %v7339_v9 = vld [vmem:[#allocation4 + $0x38] sm:$0xff]   ;;  %v7340_v13 = vld [vmem:[#allocation4 + $0x30] sm:$0xff]   ;;  %vm243_vm1 = vcmask 1040384   ;;  %vm385_vm2 = vcmask 261120  }
  0x42   :  { %7071 = vmatprep.subr.bf16.mxu1 %v7575_v0  ;;  %7087 = vmatprep.mubr.msk.bf16.mxu1 %vm7576_vm0, %v7575_v0  ;;  %v105_v3 = vld [vmem:[#allocation2 + $0x180] sm:$0xf]  ;;  %v6406_v4 = vcombine.low %v107_v1, %v108_v2  ;;  %v7341_v16 = vld [vmem:[#allocation4 + $0x28] sm:$0xff]   ;;  %v7343_v30 = vld [vmem:[#allocation4 + $0x18] sm:$0xff]   ;;  %vm738_vm3 = vcmask 1043456   ;;  %vm734_vm4 = vcmask 64512  }
  0x43   :  { %v106_v5 = vld [vmem:[#allocation2 + $0x1a0] sm:$0xf]  ;;  %7072 = vmatpush3.bf16.msra.mxu1 %v7339_v9  ;;  %v7344_v31 = vld [vmem:[#allocation4 + $0x10] sm:$0xff]   ;;  %v7345_v32 = vld [vmem:[#allocation4 + $0x8] sm:$0xff]   ;;  %vm1038_vm11 = vcmask 130048  }
  0x44   :  { %7052 = vmatpush3.bf16.msra.mxu0 %v6406_v4  ;;  %v6405_v6 = vcombine.low %v105_v3, %v106_v5  ;;  %v103_v7 = vld [vmem:[#allocation2 + $0x140] sm:$0xf]  ;;  %7073 = vmatprep.subr.bf16.mxu1 %v7575_v0  ;;  %v109_v34 = vld [vmem:[#allocation9] ss:$0 sm:$0xff] }
  0x45   :  { %7053 = vmatprep.subr.bf16.mxu0 %v7575_v0  ;;  %v104_v8 = vld [vmem:[#allocation2 + $0x160] sm:$0xf]  ;;  %v7347_v55 = vld [vmem:[#allocation6 + $0x10] ss:$8 sps:$4 sm:$0xff]  }
  0x46   :  { %v6404_v10 = vcombine.low %v103_v7, %v104_v8  ;;  %v101_v11 = vld [vmem:[#allocation2 + $0x100] sm:$0xf] }
  0x47   :  { %v102_v12 = vld [vmem:[#allocation2 + $0x120] sm:$0xf]  ;;  %7074 = vmatpush3.bf16.msra.mxu1 %v7340_v13 }
  0x48   :  { %7054 = vmatpush3.bf16.msra.mxu0 %v6405_v6  ;;  %v99_v14 = vld [vmem:[#allocation2 + $0xc0] sm:$0xf]  ;;  %v6403_v17 = vcombine.low %v101_v11, %v102_v12  ;;  %7075 = vmatprep.subr.bf16.mxu1 %v7575_v0 }
  0x49   :  { %7055 = vmatprep.subr.bf16.mxu0 %v7575_v0  ;;  %v100_v15 = vld [vmem:[#allocation2 + $0xe0] sm:$0xf] }
  0x4a   :  { %v97_v18 = vld [vmem:[#allocation2 + $0x80] sm:$0xf]  ;;  %v6402_v20 = vcombine.low %v99_v14, %v100_v15 }
  0x4b   :  { %v98_v19 = vld [vmem:[#allocation2 + $0xa0] sm:$0xf]  ;;  %7076 = vmatpush3.bf16.msra.mxu1 %v7341_v16 }
  0x4c   :  { %7056 = vmatpush3.bf16.msra.mxu0 %v6404_v10  ;;  %7077 = vmatprep.subr.bf16.mxu1 %v7575_v0  ;;  %v95_v21 = vld [vmem:[#allocation2 + $0x40] sm:$0xf]  ;;  %v6401_v23 = vcombine.low %v97_v18, %v98_v19 }
  0x4d   :  { %7057 = vmatprep.subr.bf16.mxu0 %v7575_v0  ;;  %v96_v22 = vld [vmem:[#allocation2 + $0x60] sm:$0xf] }
  0x4e   :  { %v93_v24 = vld [vmem:[#allocation2] sm:$0xf]  ;;  %v6400_v26 = vcombine.low %v95_v21, %v96_v22 }
  0x4f   :  { %v94_v25 = vld [vmem:[#allocation2 + $0x20] sm:$0xf] }
  0x50   :  { %7058 = vmatpush3.bf16.msra.mxu0 %v6403_v17  ;;  %v6399_v27 = vcombine.low %v93_v24, %v94_v25  ;;  %v92_v28 = vld [vmem:[%s9067_s0] sm:$0xf] }
  0x51   :  { %7059 = vmatprep.subr.bf16.mxu0 %v7575_v0  ;;  %v7342_v29 = vld [vmem:[#allocation4 + $0x20] sm:$0xff]  }
  0x52   :  { %7078 = vmatpush3.bf16.msra.mxu1 %v7342_v29  ;;  %v7346_v33 = vld [vmem:[#allocation4] sm:$0xff]  }
  0x53   :  { %7079 = vmatprep.subr.bf16.mxu1 %v7575_v0  ;;  %v7348_v56 = vld [vmem:[#allocation6] ss:$8 sps:$4 sm:$0xff]  }
  0x54   :  { %7060 = vmatpush3.bf16.msra.mxu0 %v6402_v20  ;;  %v226_v57 = vld [vmem:[#allocation2 + $0x3c0] sm:$0xff] }
  0x55   :  { %7061 = vmatprep.subr.bf16.mxu0 %v7575_v0  ;;  %v228_v58 = vld [vmem:[#allocation2 + $0x3e0] sm:$0xff] }
  0x56   :  { %7080 = vmatpush3.bf16.msra.mxu1 %v7343_v30  ;;  %v6439_v59 = vcombine.low %v226_v57, %v228_v58  ;;  %v6440_v60 = vcombine.high %v226_v57, %v228_v58  ;;  %v222_v61 = vld [vmem:[#allocation2 + $0x380] sm:$0xff]  ;;  %v203_v58 = vld [vmem:[#allocation2 + $0x248] sm:$0xff] }
  0x57   :  { %7081 = vmatprep.subr.bf16.mxu1 %v7575_v0  ;;  %v224_v62 = vld [vmem:[#allocation2 + $0x3a0] sm:$0xff] }
  0x58   :  { %7062 = vmatpush3.bf16.msra.mxu0 %v6401_v23  ;;  %v6437_v63 = vcombine.high %v222_v61, %v224_v62  ;;  %v6436_v1 = vcombine.low %v222_v61, %v224_v62  ;;  %v218_v2 = vld [vmem:[#allocation2 + $0x340] sm:$0xff] }
  0x59   :  { %7063 = vmatprep.subr.bf16.mxu0 %v7575_v0  ;;  %v220_v3 = vld [vmem:[#allocation2 + $0x360] sm:$0xff] }
  0x5a   :  { %7082 = vmatpush3.bf16.msra.mxu1 %v7344_v31  ;;  %v6434_v4 = vcombine.high %v218_v2, %v220_v3  ;;  %v6433_v5 = vcombine.low %v218_v2, %v220_v3  ;;  %v214_v6 = vld [vmem:[#allocation2 + $0x300] sm:$0xff]  ;;  %v199_v2 = vld [vmem:[#allocation2 + $0x208] sm:$0xff] }
  0x5b   :  { %7083 = vmatprep.subr.bf16.mxu1 %v7575_v0  ;;  %v216_v7 = vld [vmem:[#allocation2 + $0x320] sm:$0xff]  ;;  %v201_v3 = vld [vmem:[#allocation2 + $0x228] sm:$0xff] }
  0x5c   :  { %7064 = vmatpush3.bf16.msra.mxu0 %v6400_v26  ;;  %v6431_v8 = vcombine.high %v214_v6, %v216_v7  ;;  %v6430_v9 = vcombine.low %v214_v6, %v216_v7  ;;  %v210_v10 = vld [vmem:[#allocation2 + $0x2c0] sm:$0xff] }
  0x5d   :  { %7065 = vmatprep.subr.bf16.mxu0 %v7575_v0  ;;  %v212_v11 = vld [vmem:[#allocation2 + $0x2e0] sm:$0xff] }
  0x5e   :  { %7084 = vmatpush3.bf16.msra.mxu1 %v7345_v32  ;;  %v6428_v12 = vcombine.high %v210_v10, %v212_v11  ;;  %v6427_v13 = vcombine.low %v210_v10, %v212_v11  ;;  %v206_v14 = vld [vmem:[#allocation2 + $0x280] sm:$0xff]  ;;  %v7663_v32 = vld [vmem:[#allocation2 + $0x3c8] sm:$0xff] }
  0x5f   :  { %7085 = vmatprep.subr.bf16.mxu1 %v7575_v0  ;;  %v208_v15 = vld [vmem:[#allocation2 + $0x2a0] sm:$0xff] }
  0x60   :  { %7066 = vmatpush3.bf16.msra.mxu0 %v6399_v27  ;;  %v6425_v16 = vcombine.high %v206_v14, %v208_v15  ;;  %v6424_v17 = vcombine.low %v206_v14, %v208_v15  ;;  %v198_v61 = vld [vmem:[#allocation2 + $0x200] sm:$0xff] }
  0x61   :  { %7091 = vmatprep.subr.bf16.mxu0 %v7575_v0  ;;  %v200_v62 = vld [vmem:[#allocation2 + $0x220] sm:$0xff] }
  0x62   :  { %7086 = vmatpush3.bf16.msra.mxu1 %v7346_v33  ;;  %v7665_v33 = vld [vmem:[#allocation2 + $0x3e8] sm:$0xff] }
  0x63   :  { %7068 = vmatmul.mubr.bf16.vlgmr.msra.gmra.mxu0 %v92_v28  ;;  %569 = vmatprep.subr.bf16.mxu1 %v6440_v60 }
  0x64   :  { %7095 = vmatprep.mubr.msk.bf16.mxu0 %vm7576_vm0, %v7575_v0  ;;  %7092 = vmatpush3.bf16.msra.mxu0 %v7347_v55  ;;  %v204_v55 = vld [vmem:[#allocation2 + $0x260] sm:$0xff] }
  0x65   :  { %7093 = vmatprep.subr.bf16.mxu0 %v7575_v0 }
  0x68   :  { %7094 = vmatpush3.bf16.msra.mxu0 %v7348_v56 }
  0x69   :  { %7099 = vmatprep.subr.bf16.mxu0 %v7575_v0 }
 0x123   :  { %v192_v35 = vpop.f32.mrf.mxu0 }
 0x124   :  { %v7654_v36 = vadd.f32 %v192_v35, %v109_v34 }
 0x125   :  { %v7069_v37 = vpop.f32.mrf.mxu0 }
 0x126   :  { %v230_v38 = vrot.slane %v7654_v36, 4  ;;  %v236_v39 = vmul.f32 %v7654_v36, %v7654_v36  ;;  %v6441_v37 = vcombine.low %v7663_v32, %v7665_v33 }
 0x127   :  { %v195_v40 = vpop.f32.mrf.mxu0 }
 0x128   :  { %v231_v41 = vadd.f32 %v230_v38, %v7654_v36  ;;  %v237_v42 = vrot.slane %v236_v39, 4  ;;  %v7672_v40 = vld [vmem:[#allocation2 + $0x3a8] sm:$0xff] }
 0x129   :  { %v7070_v43 = vpop.f32.mrf.mxu0 }
 0x12a   :  { %v232_v44 = vrot.slane %v231_v41, 2  ;;  %v238_v45 = vadd.f32 %v237_v42, %v236_v39  ;;  %v7670_v39 = vld [vmem:[#allocation2 + $0x388] sm:$0xff] }
 0x12b   :  { %v7680_v42 = vld [vmem:[#allocation2 + $0x348] sm:$0xff] }
 0x12c   :  { %v233_v46 = vadd.f32 %v232_v44, %v231_v41  ;;  %v239_v47 = vrot.slane %v238_v45, 2  ;;  %v6438_v41 = vcombine.low %v7670_v39, %v7672_v40  ;;  %v7682_v43 = vld [vmem:[#allocation2 + $0x368] sm:$0xff] }
 0x12d   :  { %v6435_v44 = vcombine.low %v7680_v42, %v7682_v43 }
 0x12e   :  { %v234_v48 = vrot.slane %v233_v46, 1  ;;  %v240_v49 = vadd.f32 %v239_v47, %v238_v45  ;;  %v7687_v45 = vld [vmem:[#allocation2 + $0x308] sm:$0xff] }
 0x130   :  { %v241_v50 = vrot.slane %v240_v49, 1  ;;  %v235_v51 = vadd.f32 %v234_v48, %v233_v46  ;;  %v7689_v46 = vld [vmem:[#allocation2 + $0x328] sm:$0xff] }
 0x131   :  { %v6432_v47 = vcombine.low %v7687_v45, %v7689_v46  ;;  %v7694_v48 = vld [vmem:[#allocation2 + $0x2c8] sm:$0xff] }
 0x132   :  { %v242_v52 = vadd.f32 %v241_v50, %v240_v49  ;;  %v7696_v49 = vld [vmem:[#allocation2 + $0x2e8] sm:$0xff] }
 0x133   :  { %v6429_v50 = vcombine.low %v7694_v48, %v7696_v49 }
 0x134   :  { %v244_v53 = vsel %vm243_vm1, %v235_v51, %v242_v52  ;;  %v7702_v51 = vld [vmem:[#allocation2 + $0x288] sm:$0xff] }
 0x135   :  { %v261_v54 = vpack.c.bf16 %v244_v53, %v244_v53  ;;  %v7704_v52 = vld [vmem:[#allocation2 + $0x2a8] sm:$0xff] }
 0x136   :  { %v6426_v53 = vcombine.low %v7702_v51, %v7704_v52  ;;  %v6444_v6 = vcombine.high %v7702_v51, %v7704_v52  ;;  %v7353_v51 = vld [vmem:[#allocation4 + $0x60] sm:$0xff]   ;;  %v7354_v52 = vld [vmem:[#allocation4 + $0x58] sm:$0xff]  }
 0x137   :  { %7088 = vmatmul.mubr.bf16.vlgmr.msra.gmra.mxu1 %v261_v54  ;;  %v202_v54 = vld [vmem:[#allocation2 + $0x240] sm:$0xff] }
 0x138   :  { %570 = vmatpush1.bf16.msra.mxu1 %v6439_v59  ;;  %v6422_v56 = vcombine.high %v202_v54, %v204_v55  ;;  %v6421_v57 = vcombine.low %v202_v54, %v204_v55  ;;  %v205_v59 = vld [vmem:[#allocation2 + $0x268] sm:$0xff]  ;;  %v7357_v55 = vld [vmem:[#allocation4 + $0x40] sm:$0xff]  }
 0x139   :  { %571 = vmatprep.subr.bf16.mxu1 %v6437_v63  ;;  %v6423_v60 = vcombine.low %v203_v58, %v205_v59  ;;  %v6419_v63 = vcombine.high %v198_v61, %v200_v62  ;;  %v6443_v7 = vcombine.high %v203_v58, %v205_v59  ;;  %v7356_v54 = vld [vmem:[#allocation4 + $0x48] sm:$0xff]  }
 0x13c   :  { %572 = vmatpush1.bf16.msra.mxu1 %v6436_v1  ;;  %v6418_v1 = vcombine.low %v198_v61, %v200_v62 }
 0x13d   :  { %573 = vmatprep.subr.bf16.mxu1 %v6434_v4  ;;  %v6420_v4 = vcombine.low %v199_v2, %v201_v3 }
 0x140   :  { %574 = vmatpush1.bf16.msra.mxu1 %v6433_v5  ;;  %v9074_v5 = vmov 0  }
 0x141   :  { %575 = vmatprep.subr.bf16.mxu1 %v6431_v8  ;;  %601 = vmatprep.mubr.bf16.mxu1 %v9074_v5  ;;  %v6442_v8 = vcombine.high %v199_v2, %v201_v3 }
 0x144   :  { %576 = vmatpush1.bf16.msra.mxu1 %v6430_v9  ;;  %v429_v9 = vlaneseq }
 0x145   :  { %577 = vmatprep.subr.bf16.mxu1 %v6428_v12 }
 0x146   :  { %v7714_v10 = vshrl.u32 %v429_v9, 7 }
 0x148   :  { %578 = vmatpush1.bf16.msra.mxu1 %v6427_v13  ;;  %v7717_v11 = vsub.s32 0, %v7714_v10  ;;  %v7720_v12 = vsub.s32 1, %v7714_v10  ;;  %v7769_v58 = vadd.s32 8, %v7714_v10  ;;  %v844_v61 = vand.u32 7, %v7714_v10 }
 0x149   :  { %579 = vmatprep.subr.bf16.mxu1 %v6425_v16  ;;  %vm866_vm5 = vcmp.lt.s32.totalorder %v7714_v10, 1  ;;  %vm871_vm8 = vcmp.lt.s32.totalorder %v7714_v10, 7 }
 0x14a   :  { %9083 = vst [vmem:[#allocation13_spill] sm:$0xff] %v7717_v11  ;;  %9084 = vst [vmem:[#allocation14_spill] sm:$0xff] %v7720_v12  ;;  %vm7776_vm6 = vcmp.eq.s32.totalorder %v844_v61, 0  ;;  %vm7793_vm9 = vcmp.eq.s32.totalorder %v844_v61, 7  ;;  %v1119_v61 = vld [vmem:[#allocation2 + $0x568] sm:$0xf] }
 0x14c   :  { %580 = vmatpush1.bf16.msra.mxu1 %v6424_v17 }
 0x14d   :  { %581 = vmatprep.subr.bf16.mxu1 %v6422_v56 }
 0x150   :  { %582 = vmatpush1.bf16.msra.mxu1 %v6421_v57 }
 0x151   :  { %583 = vmatprep.subr.bf16.mxu1 %v6419_v63  ;;  %v851_v63 = vand.u32 7, %v7769_v58 }
 0x153   :  { %vm7782_vm7 = vcmp.eq.s32.totalorder %v851_v63, 0  ;;  %vm7797_vm10 = vcmp.eq.s32.totalorder %v851_v63, 7  ;;  %v1113_v63 = vld [vmem:[#allocation2 + $0x508] sm:$0xf] }
 0x154   :  { %584 = vmatpush1.bf16.msra.mxu1 %v6418_v1 }
 0x155   :  { %7119 = vmatprep.subr.bf16.mxu1 %v7575_v0 }
 0x1f7   :  { %v344_v18 = vpop.f32.mrf.mxu1 }
 0x1f8   :  { %v350_v19 = vmul.f32 0.03125, %v344_v18 }
 0x1f9   :  { %v7089_v20 = vpop.f32.mrf.mxu1 }
 0x1fa   :  { %v351_v21 = vmul.f32 %v350_v19, %v350_v19  ;;  %v359_v29 = vsub.f32 0.0, %v350_v19 }
 0x1fb   :  { %v347_v22 = vpop.f32.mrf.mxu1 }
 0x1fc   :  { %v353_v23 = vrot.slane %v351_v21, 7  ;;  %v6449_v22 = vcombine.high %v7663_v32, %v7665_v33 }
 0x1fd   :  { %v7090_v24 = vpop.f32.mrf.mxu1 }
 0x1fe   :  { %v355_v25 = vsub.f32 %v350_v19, %v353_v23  ;;  %v6448_v24 = vcombine.high %v7670_v39, %v7672_v40 }
 0x200   :  { %v356_v26 = vmax.f32 %v355_v25, 0.0  ;;  %v6447_v25 = vcombine.high %v7680_v42, %v7682_v43 }
 0x202   :  { %v357_v27 = vadd.f32 1e-05, %v356_v26  ;;  %v6446_v26 = vcombine.high %v7687_v45, %v7689_v46 }
 0x204   :  { %7426 = vrsqrt.f32 %v357_v27  ;;  %v6445_v27 = vcombine.high %v7694_v48, %v7696_v49  ;;  %v7350_v48 = vld [vmem:[#allocation4 + $0x78] sm:$0xff]   ;;  %v7351_v49 = vld [vmem:[#allocation4 + $0x70] sm:$0xff]  }
 0x211   :  { %v7427_v28 = vpop.eup %7426 }
 0x212   :  { %v361_v30 = vrot.slane %v7427_v28, 1  ;;  %v650_v28 = vpack.c.bf16 %v7654_v36, %v7654_v36 }
 0x214   :  { %v363_v31 = vmul.f32 %v361_v30, %v359_v29 }
 0x216   :  { %v365_v34 = vrot.slane %v363_v31, 7 }
 0x218   :  { %v367_v35 = vsel %vm243_vm1, %v361_v30, %v365_v34 }
 0x219   :  { %v372_v38 = vpack.c.bf16 %v367_v35, %v367_v35 }
 0x21b   :  { %7096 = vmatmul.mubr.msk.bf16.vlgmr.msra.gmra.mxu0 %vm385_vm2, %v372_v38 }
 0x21c   :  { %7100 = vmatpush3.bf16.msra.mxu0 %v6441_v37  ;;  %7115 = vmatprep.mubr.msk.bf16.mxu0 %vm7576_vm0, %v7575_v0 }
 0x21d   :  { %7101 = vmatprep.subr.bf16.mxu0 %v7575_v0 }
 0x220   :  { %7102 = vmatpush3.bf16.msra.mxu0 %v6438_v41 }
 0x221   :  { %7103 = vmatprep.subr.bf16.mxu0 %v7575_v0 }
 0x224   :  { %7104 = vmatpush3.bf16.msra.mxu0 %v6435_v44 }
 0x225   :  { %7105 = vmatprep.subr.bf16.mxu0 %v7575_v0 }
 0x228   :  { %7106 = vmatpush3.bf16.msra.mxu0 %v6432_v47 }
 0x229   :  { %7107 = vmatprep.subr.bf16.mxu0 %v7575_v0 }
 0x22c   :  { %7108 = vmatpush3.bf16.msra.mxu0 %v6429_v50  ;;  %v7352_v50 = vld [vmem:[#allocation4 + $0x68] sm:$0xff]  }
 0x22d   :  { %7109 = vmatprep.subr.bf16.mxu0 %v7575_v0 }
 0x230   :  { %7110 = vmatpush3.bf16.msra.mxu0 %v6426_v53  ;;  %v7355_v53 = vld [vmem:[#allocation4 + $0x50] sm:$0xff]  }
 0x231   :  { %7111 = vmatprep.subr.bf16.mxu0 %v7575_v0 }
 0x234   :  { %7112 = vmatpush3.bf16.msra.mxu0 %v6423_v60 }
 0x235   :  { %7113 = vmatprep.subr.bf16.mxu0 %v7575_v0 }
 0x238   :  { %7114 = vmatpush3.bf16.msra.mxu0 %v6420_v4 }
 0x2db   :  { %v423_v13 = vpop.f32.mrf.mxu0 }
 0x2dc   :  { %v432_v14 = vrot.slane %v423_v13, %v7717_v11  ;;  %v437_v17 = vrot.slane %v423_v13, %v7720_v12 }
 0x2dd   :  { %v7097_v15 = vpop.f32.mrf.mxu0 }
 0x2de   :  { %v433_v16 = vmul.f32 %v432_v14, %v7654_v36  ;;  %v7349_v36 = vld [vmem:[#allocation7] sm:$0xff]  }
 0x2df   :  { %v426_v18 = vpop.f32.mrf.mxu0 }
 0x2e0   :  { %v438_v19 = vadd.f32 %v437_v17, %v433_v16 }
 0x2e1   :  { %v7098_v20 = vpop.f32.mrf.mxu0 }
 0x2e2   :  { %v439_v21 = vmax.f32 %v438_v19, 0.0 }
 0x2e4   :  { %v440_v23 = vpack.c.bf16 %v439_v21, %v439_v21 }
 0x2e6   :  { %602 = vmatmul.mubr.bf16.vlgmr.msra.gmra.mxu1 %v440_v23  ;;  %7116 = vmatmul.mubr.bf16.vlgmr.msra.gmra.mxu0 %v440_v23 }
 0x2e7   :  { %7120 = vmatpush3.bf16.msra.mxu1 %v6449_v22  ;;  %7135 = vmatprep.mubr.msk.bf16.mxu1 %vm7576_vm0, %v7575_v0 }
 0x2e8   :  { %7121 = vmatprep.subr.bf16.mxu1 %v7575_v0  ;;  %783 = vmatprep.mubr.bf16.mxu0 %v9074_v5 }
 0x2eb   :  { %7122 = vmatpush3.bf16.msra.mxu1 %v6448_v24 }
 0x2ec   :  { %7123 = vmatprep.subr.bf16.mxu1 %v7575_v0 }
 0x2ef   :  { %7124 = vmatpush3.bf16.msra.mxu1 %v6447_v25  ;;  %v886_v25 = vld [vmem:[#allocation9 + $0x10] ss:$0 sm:$0xff] }
 0x2f0   :  { %7125 = vmatprep.subr.bf16.mxu1 %v7575_v0 }
 0x2f3   :  { %7126 = vmatpush3.bf16.msra.mxu1 %v6446_v26 }
 0x2f4   :  { %7127 = vmatprep.subr.bf16.mxu1 %v7575_v0 }
 0x2f7   :  { %7128 = vmatpush3.bf16.msra.mxu1 %v6445_v27 }
 0x2f8   :  { %7129 = vmatprep.subr.bf16.mxu1 %v7575_v0 }
 0x2fb   :  { %7130 = vmatpush3.bf16.msra.mxu1 %v6444_v6 }
 0x2fc   :  { %7131 = vmatprep.subr.bf16.mxu1 %v7575_v0 }
 0x2ff   :  { %7132 = vmatpush3.bf16.msra.mxu1 %v6443_v7 }
 0x300   :  { %7133 = vmatprep.subr.bf16.mxu1 %v7575_v0 }
 0x303   :  { %7134 = vmatpush3.bf16.msra.mxu1 %v6442_v8 }
 0x304   :  { %7159 = vmatprep.subr.bf16.mxu1 %v7575_v0 }
 0x306   :  { %7136 = vmatmul.mubr.bf16.vlgmr.msra.gmra.mxu1 %v650_v28 }
 0x307   :  { %7161 = vmatprep.mubr.msk.bf16.mxu1 %vm7576_vm0, %v7575_v0 }
 0x3a6   :  { %v603_v29 = vpop.f32.mrf.mxu1  ;;  %v644_v30 = vpop.f32.mrf.mxu0 }
 0x3a7   :  { %v725_v31 = vpack.c.bf16 %v603_v29, %v603_v29  ;;  %v727_v41 = vpack.c.bf16 %v644_v30, %v644_v30 }
 0x3a8   :  { %v605_v32 = vpop.f32.mrf.mxu1  ;;  %v7117_v33 = vpop.f32.mrf.mxu0 }
 0x3a9   :  { %v726_v34 = vpack.c.bf16 %v605_v32, %v605_v32  ;;  %v740_v38 = vsel %vm738_vm3, %v725_v31, 0  ;;  %v746_v45 = vsel %vm738_vm3, %v727_v41, 0 }
 0x3aa   :  { %v607_v35 = vpop.f32.mrf.mxu1  ;;  %v647_v37 = vpop.f32.mrf.mxu0 }
 0x3ab   :  { %6451 = vmatprep.subr.msk.bf16.mxu0 %vm738_vm3, %v726_v34 }
 0x3ac   :  { %v608_v39 = vpop.f32.mrf.mxu1  ;;  %v7118_v40 = vpop.f32.mrf.mxu0  ;;  %766 = vmatpush1.bf16.msra.mxu0 %v740_v38 }
 0x3af   :  { %6452 = vmatmul.mubr.msk.bf16.vlgmr.msra.gmra.mxu0 %vm734_vm4, %v7349_v36 }
 0x3b0   :  { %826 = vmatprep.mubr.bf16.mxu0 %v9074_v5 }
 0x3c6   :  { %v717_v42 = vpop.f32.mrf.mxu1 }
 0x3c7   :  { %v728_v43 = vpack.c.bf16 %v717_v42, %v717_v42 }
 0x3c8   :  { %v7137_v44 = vpop.f32.mrf.mxu1 }
 0x3c9   :  { %6453 = vmatprep.subr.msk.bf16.mxu0 %vm738_vm3, %v728_v43 }
 0x3ca   :  { %v720_v46 = vpop.f32.mrf.mxu1  ;;  %809 = vmatpush1.bf16.msra.mxu0 %v746_v45 }
 0x3cb   :  { %7139 = vmatprep.subr.bf16.mxu0 %v7575_v0 }
 0x3cc   :  { %v7138_v47 = vpop.f32.mrf.mxu1 }
 0x3cd   :  { %6454 = vmatmul.mubr.msk.bf16.vlgmr.msra.gmra.mxu0 %vm734_vm4, %v7349_v36 }
 0x3ce   :  { %7155 = vmatprep.mubr.msk.bf16.mxu0 %vm7576_vm0, %v7575_v0  ;;  %7140 = vmatpush3.bf16.msra.mxu0 %v7350_v48  ;;  %v7358_v48 = vld [vmem:[#allocation6 + $0x20] ss:$8 sps:$4 sm:$0xff]  }
 0x3cf   :  { %7141 = vmatprep.subr.bf16.mxu0 %v7575_v0  ;;  %7160 = vmatpush3.bf16.msra.mxu1 %v7358_v48 }
 0x3d2   :  { %7142 = vmatpush3.bf16.msra.mxu0 %v7351_v49  ;;  %v1124_v49 = vld [vmem:[#allocation2 + $0x5c0] sm:$0xff] }
 0x3d3   :  { %7143 = vmatprep.subr.bf16.mxu0 %v7575_v0 }
 0x3d6   :  { %7144 = vmatpush3.bf16.msra.mxu0 %v7352_v50  ;;  %v1126_v50 = vld [vmem:[#allocation2 + $0x5e0] sm:$0xff] }
 0x3d7   :  { %7145 = vmatprep.subr.bf16.mxu0 %v7575_v0 }
 0x3da   :  { %7146 = vmatpush3.bf16.msra.mxu0 %v7353_v51  ;;  %v6486_v51 = vcombine.low %v1124_v49, %v1126_v50 }
 0x3db   :  { %7147 = vmatprep.subr.bf16.mxu0 %v7575_v0 }
 0x3de   :  { %7148 = vmatpush3.bf16.msra.mxu0 %v7354_v52  ;;  %v6487_v52 = vcombine.high %v1124_v49, %v1126_v50  ;;  %v1104_v50 = vld [vmem:[#allocation2 + $0x480] sm:$0xff] }
 0x3df   :  { %7149 = vmatprep.subr.bf16.mxu0 %v7575_v0 }
 0x3e0   :  { %1257 = vmatprep.subr.bf16.mxu1 %v6487_v52  ;;  %v1106_v52 = vld [vmem:[#allocation2 + $0x4a0] sm:$0xff] }
 0x3e2   :  { %7150 = vmatpush3.bf16.msra.mxu0 %v7355_v53  ;;  %v1125_v53 = vld [vmem:[#allocation2 + $0x5c8] sm:$0xf] }
 0x3e3   :  { %7151 = vmatprep.subr.bf16.mxu0 %v7575_v0 }
 0x3e6   :  { %7152 = vmatpush3.bf16.msra.mxu0 %v7356_v54  ;;  %v1127_v54 = vld [vmem:[#allocation2 + $0x5e8] sm:$0xf] }
 0x3e7   :  { %7153 = vmatprep.subr.bf16.mxu0 %v7575_v0 }
 0x3ea   :  { %7154 = vmatpush3.bf16.msra.mxu0 %v7357_v55  ;;  %v6488_v55 = vcombine.low %v1125_v53, %v1127_v54  ;;  %v6472_v53 = vcombine.high %v1104_v50, %v1106_v52  ;;  %v6471_v54 = vcombine.low %v1104_v50, %v1106_v52 }
 0x3eb   :  { %7165 = vmatprep.subr.bf16.mxu0 %v7575_v0 }
 0x46f   :  { %v785_v56 = vpop.f32.mrf.mxu0 }
 0x470   :  { %v864_v60 = vrot.slane %v785_v56, 7  ;;  %v1121_v56 = vld [vmem:[#allocation2 + $0x588] sm:$0xf] }
 0x471   :  { %v787_v57 = vpop.f32.mrf.mxu0 }
 0x473   :  { %v789_v59 = vpop.f32.mrf.mxu0 }
 0x474   :  { %v865_v62 = vrot.slane %v789_v59, 7 }
 0x475   :  { %v791_v1 = vpop.f32.mrf.mxu0 }
 0x476   :  { %v868_v3 = vsel %vm866_vm5, %v865_v62, %v864_v60  ;;  %v867_v6 = vsel %vm866_vm5, %v864_v60, %v865_v62  ;;  %v1117_v60 = vld [vmem:[#allocation2 + $0x548] sm:$0xf] }
 0x477   :  { %v876_v9 = vsel %vm7776_vm6, 0.0, %v868_v3  ;;  %v877_v13 = vsel %vm7782_vm7, 0.0, %v867_v6  ;;  %v6482_v62 = vcombine.low %v1117_v60, %v1119_v61  ;;  %v1109_v3 = vld [vmem:[#allocation2 + $0x4c8] sm:$0xf]  ;;  %v1102_v60 = vld [vmem:[#allocation2 + $0x460] sm:$0xff] }
 0x478   :  { %v882_v19 = vadd.f32 %v876_v9, %v787_v57  ;;  %v883_v20 = vadd.f32 %v877_v13, %v791_v1  ;;  %v1123_v57 = vld [vmem:[#allocation2 + $0x5a8] sm:$0xf] }
 0x479   :  { %v6485_v59 = vcombine.low %v1121_v56, %v1123_v57  ;;  %v1115_v1 = vld [vmem:[#allocation2 + $0x528] sm:$0xf] }
 0x47a   :  { %v1111_v6 = vld [vmem:[#allocation2 + $0x4e8] sm:$0xf] }
 0x47b   :  { %v6476_v9 = vcombine.low %v1109_v3, %v1111_v6  ;;  %v1107_v56 = vld [vmem:[#allocation2 + $0x4a8] sm:$0xf]  ;;  %v1096_v3 = vld [vmem:[#allocation2 + $0x400] sm:$0xff] }
 0x47c   :  { %v1098_v6 = vld [vmem:[#allocation2 + $0x420] sm:$0xff] }
 0x48d   :  { %v828_v2 = vpop.f32.mrf.mxu0 }
 0x48e   :  { %v869_v15 = vrot.slane %v828_v2, 1  ;;  %v6479_v2 = vcombine.low %v1113_v63, %v1115_v1  ;;  %v1103_v63 = vld [vmem:[#allocation2 + $0x468] sm:$0xf] }
 0x48f   :  { %v7786_v8 = vpop.f32.mrf.mxu0 }
 0x491   :  { %v832_v14 = vpop.f32.mrf.mxu0 }
 0x492   :  { %v870_v16 = vrot.slane %v832_v14, 1 }
 0x493   :  { %v7827_v13 = vpop.f32.mrf.mxu0 }
 0x494   :  { %v872_v21 = vsel %vm871_vm8, %v869_v15, %v870_v16  ;;  %v873_v22 = vsel %vm871_vm8, %v870_v16, %v869_v15 }
 0x495   :  { %v880_v23 = vsel %vm7793_vm9, 0.0, %v872_v21  ;;  %v881_v24 = vsel %vm7797_vm10, 0.0, %v873_v22 }
 0x496   :  { %v884_v26 = vadd.f32 %v882_v19, %v880_v23  ;;  %v885_v27 = vadd.f32 %v883_v20, %v881_v24 }
 0x498   :  { %v7809_v28 = vadd.f32 %v886_v25, %v884_v26  ;;  %v7811_v29 = vadd.f32 %v886_v25, %v885_v27 }
 0x49a   :  { %v889_v30 = vadd.f32 %v7811_v29, %v7809_v28  ;;  %v896_v31 = vmul.f32 %v7809_v28, %v7809_v28  ;;  %v897_v32 = vmul.f32 %v7811_v29, %v7811_v29 }
 0x49c   :  { %v890_v33 = vrot.slane %v889_v30, 4  ;;  %v898_v34 = vadd.f32 %v897_v32, %v896_v31 }
 0x49e   :  { %v891_v35 = vadd.f32 %v890_v33, %v889_v30  ;;  %v899_v37 = vrot.slane %v898_v34, 4  ;;  %v1120_v33 = vld [vmem:[#allocation2 + $0x580] sm:$0xff] }
 0x4a0   :  { %v892_v38 = vrot.slane %v891_v35, 2  ;;  %v900_v36 = vadd.f32 %v899_v37, %v898_v34  ;;  %v1122_v34 = vld [vmem:[#allocation2 + $0x5a0] sm:$0xff] }
 0x4a2   :  { %v893_v39 = vadd.f32 %v892_v38, %v891_v35  ;;  %v901_v40 = vrot.slane %v900_v36, 2  ;;  %v6484_v38 = vcombine.high %v1120_v33, %v1122_v34 }
 0x4a4   :  { %v894_v41 = vrot.slane %v893_v39, 1  ;;  %v902_v42 = vadd.f32 %v901_v40, %v900_v36  ;;  %v1116_v36 = vld [vmem:[#allocation2 + $0x540] sm:$0xff]  ;;  %v6483_v40 = vcombine.low %v1120_v33, %v1122_v34 }
 0x4a6   :  { %v903_v43 = vrot.slane %v902_v42, 1  ;;  %v895_v44 = vadd.f32 %v894_v41, %v893_v39  ;;  %v1118_v39 = vld [vmem:[#allocation2 + $0x560] sm:$0xff] }
 0x4a7   :  { %v6481_v41 = vcombine.high %v1116_v36, %v1118_v39 }
 0x4a8   :  { %v904_v45 = vadd.f32 %v903_v43, %v902_v42  ;;  %v1112_v42 = vld [vmem:[#allocation2 + $0x500] sm:$0xff] }
 0x4a9   :  { %v1114_v43 = vld [vmem:[#allocation2 + $0x520] sm:$0xff] }
 0x4aa   :  { %v905_v46 = vsel %vm243_vm1, %v895_v44, %v904_v45  ;;  %v6480_v44 = vcombine.low %v1116_v36, %v1118_v39  ;;  %v6478_v45 = vcombine.high %v1112_v42, %v1114_v43  ;;  %v6477_v48 = vcombine.low %v1112_v42, %v1114_v43  ;;  %v7364_v36 = vld [vmem:[#allocation4 + $0x90] sm:$0xff]   ;;  %v7365_v39 = vld [vmem:[#allocation4 + $0x88] sm:$0xff]  }
 0x4ab   :  { %v922_v47 = vpack.c.bf16 %v905_v46, %v905_v46  ;;  %v1108_v46 = vld [vmem:[#allocation2 + $0x4c0] sm:$0xff] }
 0x4ad   :  { %7156 = vmatmul.mubr.bf16.vlgmr.msra.gmra.mxu0 %v922_v47  ;;  %v1110_v47 = vld [vmem:[#allocation2 + $0x4e0] sm:$0xff] }
 0x4ae   :  { %7181 = vmatprep.mubr.msk.bf16.mxu0 %vm7576_vm0, %v7575_v0  ;;  %7166 = vmatpush3.bf16.msra.mxu0 %v6488_v55  ;;  %v6475_v49 = vcombine.high %v1108_v46, %v1110_v47  ;;  %v1105_v55 = vld [vmem:[#allocation2 + $0x488] sm:$0xf] }
 0x4af   :  { %7167 = vmatprep.subr.bf16.mxu0 %v7575_v0  ;;  %v6473_v57 = vcombine.low %v1105_v55, %v1107_v56 }
 0x4b2   :  { %7168 = vmatpush3.bf16.msra.mxu0 %v6485_v59  ;;  %v1100_v59 = vld [vmem:[#allocation2 + $0x440] sm:$0xff] }
 0x4b3   :  { %7169 = vmatprep.subr.bf16.mxu0 %v7575_v0  ;;  %v6469_v61 = vcombine.high %v1100_v59, %v1102_v60  ;;  %v6468_v1 = vcombine.low %v1100_v59, %v1102_v60 }
 0x4b6   :  { %7170 = vmatpush3.bf16.msra.mxu0 %v6482_v62  ;;  %v1101_v62 = vld [vmem:[#allocation2 + $0x448] sm:$0xf] }
 0x4b7   :  { %7171 = vmatprep.subr.bf16.mxu0 %v7575_v0 }
 0x4ba   :  { %7172 = vmatpush3.bf16.msra.mxu0 %v6479_v2  ;;  %v6470_v2 = vcombine.low %v1101_v62, %v1103_v63 }
 0x4bb   :  { %7173 = vmatprep.subr.bf16.mxu0 %v7575_v0 }
 0x4be   :  { %7174 = vmatpush3.bf16.msra.mxu0 %v6476_v9  ;;  %v6466_v9 = vcombine.high %v1096_v3, %v1098_v6 }
 0x4bf   :  { %7175 = vmatprep.subr.bf16.mxu0 %v7575_v0 }
 0x4c2   :  { %7176 = vmatpush3.bf16.msra.mxu0 %v6473_v57 }
 0x4c3   :  { %7177 = vmatprep.subr.bf16.mxu0 %v7575_v0 }
 0x4c6   :  { %7178 = vmatpush3.bf16.msra.mxu0 %v6470_v2 }
 0x4c7   :  { %7179 = vmatprep.subr.bf16.mxu0 %v7575_v0 }
 0x56d   :  { %v1005_v14 = vpop.f32.mrf.mxu0 }
 0x56e   :  { %v1011_v15 = vmul.f32 0.0078125, %v1005_v14  ;;  %v1097_v14 = vld [vmem:[#allocation2 + $0x408] sm:$0xf] }
 0x56f   :  { %v7157_v16 = vpop.f32.mrf.mxu0 }
 0x570   :  { %v1012_v19 = vmul.f32 %v1011_v15, %v1011_v15  ;;  %v1020_v27 = vsub.f32 0.0, %v1011_v15  ;;  %v6465_v16 = vcombine.low %v1096_v3, %v1098_v6 }
 0x571   :  { %v1008_v20 = vpop.f32.mrf.mxu0 }
 0x572   :  { %v1014_v21 = vrot.slane %v1012_v19, 7 }
 0x573   :  { %v7158_v22 = vpop.f32.mrf.mxu0 }
 0x574   :  { %v1016_v23 = vsub.f32 %v1011_v15, %v1014_v21  ;;  %v1099_v15 = vld [vmem:[#allocation2 + $0x428] sm:$0xf] }
 0x575   :  { %v6467_v19 = vcombine.low %v1097_v14, %v1099_v15  ;;  %v1362_v14 = vld [vmem:[#allocation9 + $0x30] ss:$0 sm:$0xff] }
 0x576   :  { %v1017_v24 = vmax.f32 %v1016_v23, 0.0 }
 0x577   :  { %7180 = vmatpush3.bf16.msra.mxu0 %v6467_v19 }
 0x578   :  { %v1018_v25 = vadd.f32 1e-05, %v1017_v24  ;;  %7205 = vmatprep.subr.bf16.mxu0 %v7575_v0 }
 0x57a   :  { %7428 = vrsqrt.f32 %v1018_v25 }
 0x587   :  { %v7429_v26 = vpop.eup %7428 }
 0x588   :  { %v1022_v30 = vrot.slane %v7429_v26, 1 }
 0x58a   :  { %v1024_v31 = vmul.f32 %v1022_v30, %v1020_v27 }
 0x58c   :  { %v1026_v32 = vrot.slane %v1024_v31, 7 }
 0x58e   :  { %v1028_v35 = vsel %vm243_vm1, %v1022_v30, %v1026_v32 }
 0x58f   :  { %v1031_v37 = vpack.c.bf16 %v1028_v35, %v1028_v35  ;;  %v7361_v35 = vld [vmem:[#allocation4 + $0xa8] sm:$0xff]  }
 0x591   :  { %7162 = vmatmul.mubr.msk.bf16.vlgmr.msra.gmra.mxu1 %vm1038_vm11, %v1031_v37  ;;  %v7362_v37 = vld [vmem:[#allocation4 + $0xa0] sm:$0xff]  }
 0x592   :  { %1258 = vmatpush1.bf16.msra.mxu1 %v6486_v51  ;;  %1289 = vmatprep.mubr.bf16.mxu1 %v9074_v5  ;;  %v6474_v51 = vcombine.low %v1108_v46, %v1110_v47 }
 0x593   :  { %1259 = vmatprep.subr.bf16.mxu1 %v6484_v38  ;;  %v7363_v38 = vld [vmem:[#allocation4 + $0x98] sm:$0xff]  }
 0x596   :  { %1260 = vmatpush1.bf16.msra.mxu1 %v6483_v40  ;;  %v7366_v40 = vld [vmem:[#allocation4 + $0x80] sm:$0xff]  }
 0x597   :  { %1261 = vmatprep.subr.bf16.mxu1 %v6481_v41 }
 0x59a   :  { %1262 = vmatpush1.bf16.msra.mxu1 %v6480_v44 }
 0x59b   :  { %1263 = vmatprep.subr.bf16.mxu1 %v6478_v45 }
 0x59e   :  { %1264 = vmatpush1.bf16.msra.mxu1 %v6477_v48 }
 0x59f   :  { %1265 = vmatprep.subr.bf16.mxu1 %v6475_v49 }
 0x5a2   :  { %1266 = vmatpush1.bf16.msra.mxu1 %v6474_v51 }
 0x5a3   :  { %1267 = vmatprep.subr.bf16.mxu1 %v6472_v53 }
 0x5a6   :  { %1268 = vmatpush1.bf16.msra.mxu1 %v6471_v54 }
 0x5a7   :  { %1269 = vmatprep.subr.bf16.mxu1 %v6469_v61 }
 0x5aa   :  { %1270 = vmatpush1.bf16.msra.mxu1 %v6468_v1  ;;  %v1357_v1 = vld [vmem:[#allocation9 + $0x20] ss:$0 sm:$0xff] }
 0x5ab   :  { %1271 = vmatprep.subr.bf16.mxu1 %v6466_v9 }
 0x5ae   :  { %1272 = vmatpush1.bf16.msra.mxu1 %v6465_v16 }
 0x5af   :  { %7185 = vmatprep.subr.bf16.mxu1 %v7575_v0 }
 0x651   :  { %v1076_v20 = vpop.f32.mrf.mxu1 }
 0x652   :  { %v1085_v21 = vrot.slane %v1076_v20, %v7717_v11  ;;  %v1091_v25 = vrot.slane %v1076_v20, %v7720_v12 }
 0x653   :  { %v7163_v22 = vpop.f32.mrf.mxu1 }
 0x654   :  { %v1086_v23 = vmul.f32 %v1085_v21, %v7809_v28  ;;  %v1087_v24 = vmul.f32 %v1085_v21, %v7811_v29  ;;  %v7359_v28 = vld [vmem:[#allocation4 + $0xb8] sm:$0xff]   ;;  %v7360_v29 = vld [vmem:[#allocation4 + $0xb0] sm:$0xff]  }
 0x655   :  { %v1079_v26 = vpop.f32.mrf.mxu1 }
 0x656   :  { %v1092_v27 = vadd.f32 %v1091_v25, %v1086_v23  ;;  %v1093_v30 = vadd.f32 %v1091_v25, %v1087_v24 }
 0x657   :  { %v7164_v31 = vpop.f32.mrf.mxu1 }
 0x658   :  { %v1094_v32 = vmax.f32 %v1092_v27, 0.0  ;;  %v1095_v33 = vmax.f32 %v1093_v30, 0.0 }
 0x65a   :  { %v1128_v34 = vpack.c.bf16 %v1095_v33, %v1094_v32 }
 0x65c   :  { %1290 = vmatmul.mubr.bf16.vlgmr.msra.gmra.mxu1 %v1128_v34  ;;  %7182 = vmatmul.mubr.bf16.vlgmr.msra.gmra.mxu0 %v1128_v34 }
 0x65d   :  { %7201 = vmatprep.mubr.msk.bf16.mxu1 %vm7576_vm0, %v7575_v0  ;;  %7207 = vmatprep.mubr.msk.bf16.mxu0 %vm7576_vm0, %v7575_v0 }
 0x65e   :  { %7186 = vmatpush3.bf16.msra.mxu1 %v7359_v28  ;;  %v7367_v28 = vld [vmem:[#allocation6 + $0x30] ss:$8 sps:$4 sm:$0xff]  }
 0x65f   :  { %7187 = vmatprep.subr.bf16.mxu1 %v7575_v0  ;;  %7206 = vmatpush3.bf16.msra.mxu0 %v7367_v28 }
 0x662   :  { %7188 = vmatpush3.bf16.msra.mxu1 %v7360_v29  ;;  %v1393_v29 = vld [vmem:[#allocation2 + $0x7c0] sm:$0xff] }
 0x663   :  { %7189 = vmatprep.subr.bf16.mxu1 %v7575_v0 }
 0x666   :  { %7190 = vmatpush3.bf16.msra.mxu1 %v7361_v35  ;;  %v1395_v35 = vld [vmem:[#allocation2 + $0x7e0] sm:$0xff] }
 0x667   :  { %7191 = vmatprep.subr.bf16.mxu1 %v7575_v0 }
 0x66a   :  { %7192 = vmatpush3.bf16.msra.mxu1 %v7362_v37  ;;  %v6520_v37 = vcombine.low %v1393_v29, %v1395_v35 }
 0x66b   :  { %7193 = vmatprep.subr.bf16.mxu1 %v7575_v0 }
 0x66e   :  { %7194 = vmatpush3.bf16.msra.mxu1 %v7363_v38  ;;  %v6521_v38 = vcombine.high %v1393_v29, %v1395_v35  ;;  %v1374_v29 = vld [vmem:[#allocation2 + $0x688] sm:$0xff] }
 0x66f   :  { %7195 = vmatprep.subr.bf16.mxu1 %v7575_v0  ;;  %v1376_v35 = vld [vmem:[#allocation2 + $0x6a8] sm:$0xff] }
 0x670   :  { %1732 = vmatprep.subr.bf16.mxu0 %v6521_v38  ;;  %v1369_v38 = vld [vmem:[#allocation2 + $0x640] sm:$0xff] }
 0x672   :  { %7196 = vmatpush3.bf16.msra.mxu1 %v7364_v36  ;;  %v7883_v36 = vld [vmem:[#allocation2 + $0x7c8] sm:$0xff] }
 0x673   :  { %7197 = vmatprep.subr.bf16.mxu1 %v7575_v0 }
 0x676   :  { %7198 = vmatpush3.bf16.msra.mxu1 %v7365_v39  ;;  %v7885_v39 = vld [vmem:[#allocation2 + $0x7e8] sm:$0xff] }
 0x677   :  { %7199 = vmatprep.subr.bf16.mxu1 %v7575_v0 }
 0x67a   :  { %7200 = vmatpush3.bf16.msra.mxu1 %v7366_v40  ;;  %v6522_v40 = vcombine.low %v7883_v36, %v7885_v39 }
 0x67b   :  { %7211 = vmatprep.subr.bf16.mxu1 %v7575_v0 }
 0x71c   :  { %v1291_v41 = vpop.f32.mrf.mxu1  ;;  %v1334_v42 = vpop.f32.mrf.mxu0 }
 0x71d   :  { %v1341_v47 = vrot.slane %v1291_v41, 7  ;;  %v1345_v48 = vrot.slane %v1334_v42, 1  ;;  %v7890_v41 = vld [vmem:[#allocation2 + $0x788] sm:$0xff] }
 0x71e   :  { %v1293_v43 = vpop.f32.mrf.mxu1  ;;  %v7183_v44 = vpop.f32.mrf.mxu0  ;;  %v7892_v42 = vld [vmem:[#allocation2 + $0x7a8] sm:$0xff] }
 0x71f   :  { %v7897_v44 = vld [vmem:[#allocation2 + $0x748] sm:$0xff] }
 0x720   :  { %v1295_v45 = vpop.f32.mrf.mxu1  ;;  %v1337_v46 = vpop.f32.mrf.mxu0 }
 0x721   :  { %v1342_v49 = vrot.slane %v1295_v45, 7  ;;  %v1346_v50 = vrot.slane %v1337_v46, 1  ;;  %v7899_v45 = vld [vmem:[#allocation2 + $0x768] sm:$0xff] }
 0x722   :  { %v7184_v52 = vpop.f32.mrf.mxu0  ;;  %v1297_v57 = vpop.f32.mrf.mxu1  ;;  %v6516_v46 = vcombine.low %v7897_v44, %v7899_v45 }
 0x723   :  { %v1344_v51 = vsel %vm866_vm5, %v1342_v49, %v1341_v47  ;;  %v1347_v53 = vsel %vm871_vm8, %v1345_v48, %v1346_v50  ;;  %v1348_v54 = vsel %vm871_vm8, %v1346_v50, %v1345_v48  ;;  %v1343_v55 = vsel %vm866_vm5, %v1341_v47, %v1342_v49  ;;  %v7904_v47 = vld [vmem:[#allocation2 + $0x708] sm:$0xff] }
 0x724   :  { %v1349_v56 = vsel %vm7776_vm6, 0.0, %v1344_v51  ;;  %v1350_v59 = vsel %vm7782_vm7, 0.0, %v1343_v55  ;;  %v1351_v62 = vsel %vm7793_vm9, 0.0, %v1347_v53  ;;  %v1352_v63 = vsel %vm7797_vm10, 0.0, %v1348_v54  ;;  %v7906_v48 = vld [vmem:[#allocation2 + $0x728] sm:$0xff] }
 0x725   :  { %v1353_v60 = vadd.f32 %v1349_v56, %v1293_v43  ;;  %v1354_v61 = vadd.f32 %v1350_v59, %v1297_v57  ;;  %v6519_v43 = vcombine.low %v7890_v41, %v7892_v42  ;;  %v6513_v49 = vcombine.low %v7904_v47, %v7906_v48  ;;  %v7911_v50 = vld [vmem:[#allocation2 + $0x6c8] sm:$0xff] }
 0x726   :  { %v7913_v52 = vld [vmem:[#allocation2 + $0x6e8] sm:$0xff] }
 0x727   :  { %v1355_v2 = vadd.f32 %v1353_v60, %v1351_v62  ;;  %v1356_v3 = vadd.f32 %v1354_v61, %v1352_v63  ;;  %v6510_v51 = vcombine.low %v7911_v50, %v7913_v52 }
 0x729   :  { %v1358_v6 = vadd.f32 %v1357_v1, %v1355_v2  ;;  %v1359_v9 = vadd.f32 %v1357_v1, %v1356_v3 }
 0x72b   :  { %v1360_v4 = vadd.f32 %v1358_v6, %v7786_v8  ;;  %v1361_v15 = vadd.f32 %v1359_v9, %v7827_v13 }
 0x72d   :  { %v7870_v7 = vadd.f32 %v1362_v14, %v1360_v4  ;;  %v7872_v16 = vadd.f32 %v1362_v14, %v1361_v15  ;;  %v1389_v14 = vld [vmem:[#allocation2 + $0x780] sm:$0xff] }
 0x72e   :  { %v1391_v4 = vld [vmem:[#allocation2 + $0x7a0] sm:$0xff] }
 0x72f   :  { %v1397_v17 = vadd.f32 %v7872_v16, %v7870_v7  ;;  %v1404_v18 = vmul.f32 %v7870_v7, %v7870_v7  ;;  %v1405_v19 = vmul.f32 %v7872_v16, %v7872_v16 }
 0x731   :  { %v1398_v20 = vrot.slane %v1397_v17, 4  ;;  %v1406_v21 = vadd.f32 %v1405_v19, %v1404_v18  ;;  %v6518_v18 = vcombine.high %v1389_v14, %v1391_v4  ;;  %v1385_v19 = vld [vmem:[#allocation2 + $0x740] sm:$0xff] }
 0x733   :  { %v1399_v22 = vadd.f32 %v1398_v20, %v1397_v17  ;;  %v1407_v23 = vrot.slane %v1406_v21, 4  ;;  %v1387_v20 = vld [vmem:[#allocation2 + $0x760] sm:$0xff] }
 0x735   :  { %v1400_v8 = vrot.slane %v1399_v22, 2  ;;  %v1408_v24 = vadd.f32 %v1407_v23, %v1406_v21  ;;  %v6517_v21 = vcombine.low %v1389_v14, %v1391_v4  ;;  %v1381_v23 = vld [vmem:[#allocation2 + $0x700] sm:$0xff] }
 0x737   :  { %v1401_v13 = vadd.f32 %v1400_v8, %v1399_v22  ;;  %v1409_v25 = vrot.slane %v1408_v24, 2  ;;  %v6515_v22 = vcombine.high %v1385_v19, %v1387_v20  ;;  %v1383_v8 = vld [vmem:[#allocation2 + $0x720] sm:$0xff] }
 0x739   :  { %v1402_v26 = vrot.slane %v1401_v13, 1  ;;  %v1410_v27 = vadd.f32 %v1409_v25, %v1408_v24  ;;  %v6514_v24 = vcombine.low %v1385_v19, %v1387_v20  ;;  %v1377_v25 = vld [vmem:[#allocation2 + $0x6c0] sm:$0xff] }
 0x73b   :  { %v1411_v30 = vrot.slane %v1410_v27, 1  ;;  %v1403_v31 = vadd.f32 %v1402_v26, %v1401_v13  ;;  %v6512_v13 = vcombine.high %v1381_v23, %v1383_v8  ;;  %v1379_v26 = vld [vmem:[#allocation2 + $0x6e0] sm:$0xff] }
 0x73d   :  { %v1412_v32 = vadd.f32 %v1411_v30, %v1410_v27  ;;  %v6511_v27 = vcombine.low %v1381_v23, %v1383_v8  ;;  %v6509_v30 = vcombine.high %v1377_v25, %v1379_v26  ;;  %v6529_v8 = vcombine.high %v7890_v41, %v7892_v42 }
 0x73e   :  { %v1816_v41 = vpack.c.bf16 %v7872_v16, %v7870_v7 }
 0x73f   :  { %v1413_v33 = vsel %vm243_vm1, %v1403_v31, %v1412_v32  ;;  %v1373_v31 = vld [vmem:[#allocation2 + $0x680] sm:$0xff] }
 0x740   :  { %v1430_v34 = vpack.c.bf16 %v1413_v33, %v1413_v33  ;;  %v1375_v32 = vld [vmem:[#allocation2 + $0x6a0] sm:$0xff]  ;;  %v6508_v33 = vcombine.low %v1377_v25, %v1379_v26 }
 0x741   :  { %v6505_v28 = vcombine.low %v1373_v31, %v1375_v32 }
 0x742   :  { %7202 = vmatmul.mubr.bf16.vlgmr.msra.gmra.mxu1 %v1430_v34  ;;  %v6506_v34 = vcombine.high %v1373_v31, %v1375_v32 }
 0x743   :  { %7227 = vmatprep.mubr.msk.bf16.mxu1 %vm7576_vm0, %v7575_v0  ;;  %7212 = vmatpush3.bf16.msra.mxu1 %v6522_v40  ;;  %v1371_v40 = vld [vmem:[#allocation2 + $0x660] sm:$0xff] }
 0x744   :  { %7213 = vmatprep.subr.bf16.mxu1 %v7575_v0 }
 0x747   :  { %7214 = vmatpush3.bf16.msra.mxu1 %v6519_v43  ;;  %v6503_v43 = vcombine.high %v1369_v38, %v1371_v40 }
 0x748   :  { %7215 = vmatprep.subr.bf16.mxu1 %v7575_v0 }
 0x74b   :  { %7216 = vmatpush3.bf16.msra.mxu1 %v6516_v46  ;;  %v6502_v46 = vcombine.low %v1369_v38, %v1371_v40  ;;  %v7374_v38 = vld [vmem:[#allocation4 + $0xd8] sm:$0xff]   ;;  %v7375_v40 = vld [vmem:[#allocation4 + $0xd0] sm:$0xff]  }
 0x74c   :  { %7217 = vmatprep.subr.bf16.mxu1 %v7575_v0 }
 0x74f   :  { %7218 = vmatpush3.bf16.msra.mxu1 %v6513_v49  ;;  %v1370_v49 = vld [vmem:[#allocation2 + $0x648] sm:$0xff] }
 0x750   :  { %7219 = vmatprep.subr.bf16.mxu1 %v7575_v0 }
 0x753   :  { %7220 = vmatpush3.bf16.msra.mxu1 %v6510_v51  ;;  %v1372_v51 = vld [vmem:[#allocation2 + $0x668] sm:$0xff] }
 0x754   :  { %7221 = vmatprep.subr.bf16.mxu1 %v7575_v0 }
 0x802   :  { %v1513_v53 = vpop.f32.mrf.mxu1 }
 0x803   :  { %v1519_v54 = vmul.f32 0.0078125, %v1513_v53  ;;  %v6504_v53 = vcombine.low %v1370_v49, %v1372_v51 }
 0x804   :  { %v7203_v55 = vpop.f32.mrf.mxu1 }
 0x805   :  { %v1520_v56 = vmul.f32 %v1519_v54, %v1519_v54  ;;  %v1528_v2 = vsub.f32 0.0, %v1519_v54  ;;  %v1367_v55 = vld [vmem:[#allocation2 + $0x620] sm:$0xff] }
 0x806   :  { %v1516_v57 = vpop.f32.mrf.mxu1 }
 0x807   :  { %v1522_v59 = vrot.slane %v1520_v56, 7 }
 0x808   :  { %v7204_v60 = vpop.f32.mrf.mxu1 }
 0x809   :  { %v1524_v61 = vsub.f32 %v1519_v54, %v1522_v59  ;;  %v1365_v54 = vld [vmem:[#allocation2 + $0x600] sm:$0xff]  ;;  %v1366_v59 = vld [vmem:[#allocation2 + $0x608] sm:$0xff] }
 0x80a   :  { %v6500_v56 = vcombine.high %v1365_v54, %v1367_v55  ;;  %v6499_v57 = vcombine.low %v1365_v54, %v1367_v55  ;;  %v1368_v60 = vld [vmem:[#allocation2 + $0x628] sm:$0xff] }
 0x80b   :  { %v1525_v62 = vmax.f32 %v1524_v61, 0.0  ;;  %v6501_v61 = vcombine.low %v1366_v59, %v1368_v60 }
 0x80d   :  { %v1526_v63 = vadd.f32 1e-05, %v1525_v62  ;;  %v6525_v62 = vcombine.high %v1374_v29, %v1376_v35 }
 0x80f   :  { %7430 = vrsqrt.f32 %v1526_v63  ;;  %v6524_v63 = vcombine.high %v1370_v49, %v1372_v51 }
 0x81c   :  { %v7431_v1 = vpop.eup %7430 }
 0x81d   :  { %v1530_v3 = vrot.slane %v7431_v1, 1  ;;  %v6523_v1 = vcombine.high %v1366_v59, %v1368_v60  ;;  %v2026_v60 = vand.u32 15, %v7714_v10 }
 0x81f   :  { %v1532_v6 = vmul.f32 %v1530_v3, %v1528_v2  ;;  %vm7974_vm12 = vcmp.eq.s32.totalorder %v2026_v60, 0 }
 0x821   :  { %v1534_v9 = vrot.slane %v1532_v6, 7 }
 0x823   :  { %v1536_v15 = vsel %vm243_vm1, %v1530_v3, %v1534_v9 }
 0x824   :  { %v1539_v17 = vpack.c.bf16 %v1536_v15, %v1536_v15 }
 0x826   :  { %7208 = vmatmul.mubr.msk.bf16.vlgmr.msra.gmra.mxu0 %vm1038_vm11, %v1539_v17 }
 0x827   :  { %1733 = vmatpush1.bf16.msra.mxu0 %v6520_v37  ;;  %1764 = vmatprep.mubr.bf16.mxu0 %v9074_v5  ;;  %v6507_v37 = vcombine.low %v1374_v29, %v1376_v35  ;;  %v7371_v29 = vld [vmem:[#allocation4 + $0xf0] sm:$0xff]   ;;  %v7372_v35 = vld [vmem:[#allocation4 + $0xe8] sm:$0xff]  }
 0x828   :  { %1734 = vmatprep.subr.bf16.mxu0 %v6518_v18 }
 0x829   :  { %7222 = vmatpush3.bf16.msra.mxu1 %v6507_v37  ;;  %v7373_v37 = vld [vmem:[#allocation4 + $0xe0] sm:$0xff]  }
 0x82a   :  { %7223 = vmatprep.subr.bf16.mxu1 %v7575_v0 }
 0x82b   :  { %1735 = vmatpush1.bf16.msra.mxu0 %v6517_v21 }
 0x82c   :  { %1736 = vmatprep.subr.bf16.mxu0 %v6515_v22  ;;  %v6530_v22 = vcombine.high %v7883_v36, %v7885_v39  ;;  %v6527_v36 = vcombine.high %v7904_v47, %v7906_v48  ;;  %v6526_v39 = vcombine.high %v7911_v50, %v7913_v52 }
 0x82d   :  { %7224 = vmatpush3.bf16.msra.mxu1 %v6504_v53 }
 0x82e   :  { %7225 = vmatprep.subr.bf16.mxu1 %v7575_v0 }
 0x82f   :  { %1737 = vmatpush1.bf16.msra.mxu0 %v6514_v24  ;;  %v6528_v24 = vcombine.high %v7897_v44, %v7899_v45 }
 0x830   :  { %1738 = vmatprep.subr.bf16.mxu0 %v6512_v13 }
 0x831   :  { %7226 = vmatpush3.bf16.msra.mxu1 %v6501_v61 }
 0x833   :  { %1739 = vmatpush1.bf16.msra.mxu0 %v6511_v27  ;;  %v7368_v27 = vld [vmem:[#allocation7 + $0x8] sm:$0xff]  }
 0x834   :  { %1740 = vmatprep.subr.bf16.mxu0 %v6509_v30 }
 0x837   :  { %1741 = vmatpush1.bf16.msra.mxu0 %v6508_v33 }
 0x838   :  { %1742 = vmatprep.subr.bf16.mxu0 %v6506_v34 }
 0x83b   :  { %1743 = vmatpush1.bf16.msra.mxu0 %v6505_v28  ;;  %v7370_v28 = vld [vmem:[#allocation4 + $0xf8] sm:$0xff]  }
 0x83c   :  { %1744 = vmatprep.subr.bf16.mxu0 %v6503_v43  ;;  %v7376_v43 = vld [vmem:[#allocation4 + $0xc8] sm:$0xff]  }
 0x83f   :  { %1745 = vmatpush1.bf16.msra.mxu0 %v6502_v46  ;;  %v7377_v46 = vld [vmem:[#allocation4 + $0xc0] sm:$0xff]  }
 0x840   :  { %1746 = vmatprep.subr.bf16.mxu0 %v6500_v56 }
 0x843   :  { %1747 = vmatpush1.bf16.msra.mxu0 %v6499_v57 }
 0x844   :  { %7231 = vmatprep.subr.bf16.mxu0 %v7575_v0 }
 0x8e6   :  { %v1583_v2 = vpop.f32.mrf.mxu0 }
 0x8e7   :  { %v1592_v3 = vrot.slane %v1583_v2, %v7717_v11  ;;  %v1598_v4 = vrot.slane %v1583_v2, %v7720_v12 }
 0x8e8   :  { %v7209_v6 = vpop.f32.mrf.mxu0 }
 0x8e9   :  { %v1593_v9 = vmul.f32 %v1592_v3, %v7870_v7  ;;  %v1594_v14 = vmul.f32 %v1592_v3, %v7872_v16  ;;  %v7369_v7 = vld [vmem:[#allocation7 + $0x10] sm:$0xff]  }
 0x8ea   :  { %v1586_v15 = vpop.f32.mrf.mxu0 }
 0x8eb   :  { %v1599_v17 = vadd.f32 %v1598_v4, %v1593_v9  ;;  %v1600_v18 = vadd.f32 %v1598_v4, %v1594_v14 }
 0x8ec   :  { %v7210_v19 = vpop.f32.mrf.mxu0 }
 0x8ed   :  { %v1601_v20 = vmax.f32 %v1599_v17, 0.0  ;;  %v1602_v21 = vmax.f32 %v1600_v18, 0.0  ;;  %v2033_v19 = vand.u32 15, %v7769_v58 }
 0x8ef   :  { %v1603_v23 = vpack.c.bf16 %v1602_v21, %v1601_v20  ;;  %v7984_v20 = vadd.s32 24, %v7714_v10  ;;  %vm7998_vm14 = vcmp.eq.s32.totalorder %v2033_v19, 15 }
 0x8f1   :  { %1765 = vmatmul.mubr.bf16.vlgmr.msra.gmra.mxu0 %v1603_v23  ;;  %7228 = vmatmul.mubr.bf16.vlgmr.msra.gmra.mxu1 %v1603_v23 }
 0x8f2   :  { %7232 = vmatpush3.bf16.msra.mxu0 %v6530_v22  ;;  %7247 = vmatprep.mubr.msk.bf16.mxu0 %vm7576_vm0, %v7575_v0 }
 0x8f3   :  { %7233 = vmatprep.subr.bf16.mxu0 %v7575_v0  ;;  %1999 = vmatprep.mubr.bf16.mxu1 %v9074_v5 }
 0x8f6   :  { %7234 = vmatpush3.bf16.msra.mxu0 %v6529_v8 }
 0x8f7   :  { %7235 = vmatprep.subr.bf16.mxu0 %v7575_v0 }
 0x8fa   :  { %7236 = vmatpush3.bf16.msra.mxu0 %v6528_v24 }
 0x8fb   :  { %7237 = vmatprep.subr.bf16.mxu0 %v7575_v0 }
 0x8fe   :  { %7238 = vmatpush3.bf16.msra.mxu0 %v6527_v36 }
 0x8ff   :  { %7239 = vmatprep.subr.bf16.mxu0 %v7575_v0 }
 0x902   :  { %7240 = vmatpush3.bf16.msra.mxu0 %v6526_v39 }
 0x903   :  { %7241 = vmatprep.subr.bf16.mxu0 %v7575_v0 }
 0x906   :  { %7242 = vmatpush3.bf16.msra.mxu0 %v6525_v62  ;;  %v2020_v62 = vadd.s32 16, %v7714_v10 }
 0x907   :  { %7243 = vmatprep.subr.bf16.mxu0 %v7575_v0 }
 0x908   :  { %v2040_v14 = vand.u32 15, %v2020_v62 }
 0x90a   :  { %7244 = vmatpush3.bf16.msra.mxu0 %v6524_v63  ;;  %vm7994_vm13 = vcmp.eq.s32.totalorder %v2040_v14, 0 }
 0x90b   :  { %7245 = vmatprep.subr.bf16.mxu0 %v7575_v0 }
 0x90e   :  { %7246 = vmatpush3.bf16.msra.mxu0 %v6523_v1 }
 0x911   :  { %7248 = vmatmul.mubr.bf16.vlgmr.msra.gmra.mxu0 %v1816_v41 }
 0x912   :  { %1946 = vmatprep.mubr.bf16.mxu0 %v9074_v5 }
 0x9b1   :  { %v1766_v42 = vpop.f32.mrf.mxu0  ;;  %v1809_v44 = vpop.f32.mrf.mxu1 }
 0x9b3   :  { %v1768_v45 = vpop.f32.mrf.mxu0  ;;  %v7229_v47 = vpop.f32.mrf.mxu1 }
 0x9b5   :  { %v1770_v48 = vpop.f32.mrf.mxu0  ;;  %v1812_v50 = vpop.f32.mrf.mxu1 }
 0x9b6   :  { %v1894_v26 = vpack.c.bf16 %v1770_v48, %v1766_v42  ;;  %v1896_v33 = vpack.c.bf16 %v1812_v50, %v1809_v44  ;;  %v2047_v44 = vand.u32 15, %v7984_v20 }
 0x9b7   :  { %v1772_v52 = vpop.f32.mrf.mxu0  ;;  %v7230_v13 = vpop.f32.mrf.mxu1 }
 0x9b8   :  { %v1895_v25 = vpack.c.bf16 %v1772_v52, %v1768_v45  ;;  %v2110_v45 = vld [vmem:[#allocation9 + $0x40] ss:$0 sm:$0xff]  ;;  %vm8015_vm15 = vcmp.eq.s32.totalorder %v2047_v44, 15 }
 0x9ba   :  { %1928 = vmatprep.subr.bf16.mxu0 %v1895_v25 }
 0x9bb   :  { %1929 = vmatpush1.bf16.msra.mxu0 %v1894_v26 }
 0x9bc   :  { %7251 = vmatprep.subr.bf16.mxu0 %v7575_v0 }
 0x9be   :  { %6533 = vmatmul.mubr.msk.bf16.vlgmr.msra.gmra.mxu0 %vm1038_vm11, %v7368_v27 }
 0x9bf   :  { %1956 = vmatprep.mubr.bf16.mxu0 %v9074_v5  ;;  %7252 = vmatpush3.bf16.msra.mxu0 %v7370_v28 }
 0x9c0   :  { %7253 = vmatprep.subr.bf16.mxu0 %v7575_v0 }
 0x9c3   :  { %7254 = vmatpush3.bf16.msra.mxu0 %v7371_v29 }
 0x9c4   :  { %7255 = vmatprep.subr.bf16.mxu0 %v7575_v0 }
 0x9c6   :  { %6534 = vmatmul.mubr.msk.bf16.gmra.mxu0 %vm1038_vm11, %v7369_v7 }
 0x9c7   :  { %7267 = vmatprep.mubr.msk.bf16.mxu0 %vm7576_vm0, %v7575_v0  ;;  %7256 = vmatpush3.bf16.msra.mxu0 %v7372_v35 }
 0x9c8   :  { %7257 = vmatprep.subr.bf16.mxu0 %v7575_v0 }
 0x9cb   :  { %7258 = vmatpush3.bf16.msra.mxu0 %v7373_v37 }
 0x9cc   :  { %7259 = vmatprep.subr.bf16.mxu0 %v7575_v0 }
 0x9cf   :  { %7260 = vmatpush3.bf16.msra.mxu0 %v7374_v38 }
 0x9d0   :  { %7261 = vmatprep.subr.bf16.mxu0 %v7575_v0 }
 0x9d1   :  { %v1883_v16 = vpop.f32.mrf.mxu0 }
 0x9d3   :  { %v7249_v30 = vpop.f32.mrf.mxu0  ;;  %7262 = vmatpush3.bf16.msra.mxu0 %v7375_v40 }
 0x9d4   :  { %7263 = vmatprep.subr.bf16.mxu0 %v7575_v0 }
 0x9d5   :  { %v1886_v31 = vpop.f32.mrf.mxu0 }
 0x9d6   :  { %v1897_v32 = vpack.c.bf16 %v1886_v31, %v1883_v16 }
 0x9d7   :  { %v7250_v34 = vpop.f32.mrf.mxu0  ;;  %7264 = vmatpush3.bf16.msra.mxu0 %v7376_v43 }
 0x9d8   :  { %1981 = vmatprep.subr.bf16.mxu1 %v1897_v32  ;;  %7265 = vmatprep.subr.bf16.mxu0 %v7575_v0 }
 0x9d9   :  { %1982 = vmatpush1.bf16.msra.mxu1 %v1896_v33 }
 0x9da   :  { %7271 = vmatprep.subr.bf16.mxu1 %v7575_v0 }
 0x9db   :  { %7266 = vmatpush3.bf16.msra.mxu0 %v7377_v46 }
 0x9dc   :  { %6535 = vmatmul.mubr.msk.bf16.vlgmr.msra.gmra.mxu1 %vm1038_vm11, %v7368_v27 }
 0x9dd   :  { %2009 = vmatprep.mubr.bf16.mxu1 %v9074_v5 }
 0x9e4   :  { %6536 = vmatmul.mubr.msk.bf16.gmra.mxu1 %vm1038_vm11, %v7369_v7 }
 0x9e5   :  { %7273 = vmatprep.mubr.msk.bf16.mxu1 %vm7576_vm0, %v7575_v0 }
 0xa7e   :  { %v1948_v49 = vpop.f32.mrf.mxu0 }
 0xa7f   :  { %v2070_v59 = vrot.slane %v1948_v49, 7 }
 0xa80   :  { %v1950_v51 = vpop.f32.mrf.mxu0 }
 0xa82   :  { %v1952_v53 = vpop.f32.mrf.mxu0 }
 0xa83   :  { %v2071_v6 = vrot.slane %v1952_v53, 7 }
 0xa84   :  { %v1954_v54 = vpop.f32.mrf.mxu0 }
 0xa85   :  { %v2076_v8 = vsel %vm866_vm5, %v2070_v59, %v2071_v6 }
 0xa86   :  { %v1958_v55 = vpop.f32.mrf.mxu0  ;;  %v2103_v48 = vadd.f32 %v2076_v8, %v1954_v54  ;;  %v2261_v8 = vld [vmem:[#allocation6 + $0x40] sm:$0xf] }
 0xa87   :  { %v2072_v9 = vrot.slane %v1958_v55, 7 }
 0xa88   :  { %v1960_v56 = vpop.f32.mrf.mxu0 }
 0xa89   :  { %v2075_v24 = vsel %vm866_vm5, %v2071_v6, %v2072_v9 }
 0xa8a   :  { %v1962_v57 = vpop.f32.mrf.mxu0  ;;  %v2092_v50 = vsel %vm7994_vm13, 0.0, %v2075_v24  ;;  %v2267_v24 = vsel %vm738_vm3, %v2261_v8, 0 }
 0xa8b   :  { %v2073_v61 = vrot.slane %v1962_v57, 7  ;;  %v2104_v32 = vadd.f32 %v2092_v50, %v1960_v56  ;;  %7272 = vmatpush3.bf16.msra.mxu1 %v2267_v24 }
 0xa8c   :  { %v1964_v13 = vpop.f32.mrf.mxu0 }
 0xa8d   :  { %v2077_v1 = vsel %vm866_vm5, %v2073_v61, %v2070_v59  ;;  %v2074_v25 = vsel %vm866_vm5, %v2072_v9, %v2073_v61 }
 0xa8e   :  { %v2090_v4 = vsel %vm7974_vm12, 0.0, %v2077_v1  ;;  %v2105_v33 = vadd.f32 %v2074_v25, %v1964_v13  ;;  %v2356_v13 = vld [vmem:[#allocation2 + $0x9a8] sm:$0xf] }
 0xa8f   :  { %v2102_v22 = vadd.f32 %v2090_v4, %v1950_v51 }
 0xa9c   :  { %v2001_v63 = vpop.f32.mrf.mxu1 }
 0xa9d   :  { %v2078_v17 = vrot.slane %v2001_v63, 1 }
 0xa9e   :  { %v7978_v3 = vpop.f32.mrf.mxu1 }
 0xaa0   :  { %v2005_v15 = vpop.f32.mrf.mxu1 }
 0xaa1   :  { %v2079_v18 = vrot.slane %v2005_v15, 1 }
 0xaa2   :  { %v7986_v21 = vpop.f32.mrf.mxu1 }
 0xaa3   :  { %v2084_v23 = vsel %vm871_vm8, %v2078_v17, %v2079_v18 }
 0xaa4   :  { %v2011_v58 = vpop.f32.mrf.mxu1  ;;  %v2106_v39 = vadd.f32 %v2102_v22, %v2084_v23 }
 0xaa5   :  { %v2080_v41 = vrot.slane %v2011_v58, 1  ;;  %v2357_v58 = vld [vmem:[#allocation2 + $0x9c0] sm:$0xff] }
 0xaa6   :  { %v8003_v47 = vpop.f32.mrf.mxu1  ;;  %v8013_v7 = vadd.f32 %v2110_v45, %v2106_v39  ;;  %v2359_v39 = vld [vmem:[#allocation2 + $0x9e0] sm:$0xff] }
 0xaa7   :  { %v2083_v52 = vsel %vm871_vm8, %v2079_v18, %v2080_v41  ;;  %v6568_v44 = vcombine.high %v2357_v58, %v2359_v39 }
 0xaa8   :  { %v2099_v26 = vsel %vm7998_vm14, 0.0, %v2083_v52  ;;  %v2015_v27 = vpop.f32.mrf.mxu1  ;;  %v2124_v38 = vmul.f32 %v8013_v7, %v8013_v7  ;;  %v2354_v52 = vld [vmem:[#allocation2 + $0x988] sm:$0xf] }
 0xaa9   :  { %v2107_v16 = vadd.f32 %v2103_v48, %v2099_v26  ;;  %v2081_v30 = vrot.slane %v2015_v27, 1  ;;  %v2360_v48 = vld [vmem:[#allocation2 + $0x9e8] sm:$0xf]  ;;  %2491 = vmatprep.subr.bf16.mxu1 %v6568_v44  ;;  %v6566_v25 = vcombine.low %v2354_v52, %v2356_v13 }
 0xaaa   :  { %v2350_v26 = vld [vmem:[#allocation2 + $0x948] sm:$0xf] }
 0xaab   :  { %v8019_v34 = vadd.f32 %v2110_v45, %v2107_v16  ;;  %v2082_v28 = vsel %vm871_vm8, %v2080_v41, %v2081_v30  ;;  %v2085_v29 = vsel %vm871_vm8, %v2081_v30, %v2078_v17  ;;  %v6567_v41 = vcombine.low %v2357_v58, %v2359_v39  ;;  %v2352_v27 = vld [vmem:[#allocation2 + $0x968] sm:$0xf]  ;;  %v2341_v58 = vld [vmem:[#allocation2 + $0x8c0] sm:$0xff] }
 0xaac   :  { %v2101_v35 = vsel %vm8015_vm15, 0.0, %v2085_v29  ;;  %v2108_v37 = vadd.f32 %v2104_v32, %v2082_v28  ;;  %v6563_v16 = vcombine.low %v2350_v26, %v2352_v27  ;;  %v2346_v30 = vld [vmem:[#allocation2 + $0x908] sm:$0xf]  ;;  %v2343_v39 = vld [vmem:[#allocation2 + $0x8e0] sm:$0xff] }
 0xaad   :  { %v2115_v40 = vadd.f32 %v8019_v34, %v8013_v7  ;;  %v2125_v43 = vmul.f32 %v8019_v34, %v8019_v34  ;;  %v2109_v46 = vadd.f32 %v2105_v33, %v2101_v35  ;;  %v2348_v32 = vld [vmem:[#allocation2 + $0x928] sm:$0xf] }
 0xaae   :  { %v8033_v49 = vadd.f32 %v2110_v45, %v2108_v37  ;;  %v6560_v33 = vcombine.low %v2346_v30, %v2348_v32  ;;  %v2342_v28 = vld [vmem:[#allocation2 + $0x8c8] sm:$0xf]  ;;  %v2335_v30 = vld [vmem:[#allocation2 + $0x860] sm:$0xff] }
 0xaaf   :  { %v2128_v51 = vadd.f32 %v2125_v43, %v2124_v38  ;;  %v8035_v53 = vadd.f32 %v2110_v45, %v2109_v46  ;;  %v2358_v45 = vld [vmem:[#allocation2 + $0x9c8] sm:$0xf] }
 0xab0   :  { %v2116_v54 = vadd.f32 %v2115_v40, %v8033_v49  ;;  %v2126_v55 = vmul.f32 %v8033_v49, %v8033_v49  ;;  %v6569_v50 = vcombine.low %v2358_v45, %v2360_v48  ;;  %v2344_v29 = vld [vmem:[#allocation2 + $0x8e8] sm:$0xf]  ;;  %v6556_v45 = vcombine.high %v2341_v58, %v2343_v39  ;;  %v2337_v48 = vld [vmem:[#allocation2 + $0x880] sm:$0xff] }
 0xab1   :  { %v2127_v56 = vmul.f32 %v8035_v53, %v8035_v53  ;;  %v6557_v35 = vcombine.low %v2342_v28, %v2344_v29  ;;  %v2340_v26 = vld [vmem:[#allocation2 + $0x8a8] sm:$0xf] }
 0xab2   :  { %v2117_v57 = vadd.f32 %v2116_v54, %v8035_v53  ;;  %v2129_v59 = vadd.f32 %v2128_v51, %v2126_v55  ;;  %7277 = vmatprep.subr.bf16.mxu0 %v6569_v50  ;;  %v2336_v28 = vld [vmem:[#allocation2 + $0x868] sm:$0xf] }
 0xab4   :  { %v2118_v60 = vrot.slane %v2117_v57, 4  ;;  %v2130_v61 = vadd.f32 %v2129_v59, %v2127_v56 }
 0xab6   :  { %v2119_v62 = vadd.f32 %v2118_v60, %v2117_v57  ;;  %v2131_v63 = vrot.slane %v2130_v61, 4 }
 0xab8   :  { %v2120_v1 = vrot.slane %v2119_v62, 2  ;;  %v2132_v6 = vadd.f32 %v2131_v63, %v2130_v61 }
 0xaba   :  { %v2121_v9 = vadd.f32 %v2120_v1, %v2119_v62  ;;  %v2133_v14 = vrot.slane %v2132_v6, 2  ;;  %v2353_v1 = vld [vmem:[#allocation2 + $0x980] sm:$0xff] }
 0xabc   :  { %v2122_v4 = vrot.slane %v2121_v9, 1  ;;  %v2134_v15 = vadd.f32 %v2133_v14, %v2132_v6  ;;  %v2355_v6 = vld [vmem:[#allocation2 + $0x9a0] sm:$0xff] }
 0xabe   :  { %v2135_v17 = vrot.slane %v2134_v15, 1  ;;  %v2123_v18 = vadd.f32 %v2122_v4, %v2121_v9  ;;  %v6565_v4 = vcombine.high %v2353_v1, %v2355_v6 }
 0xac0   :  { %v2136_v19 = vadd.f32 %v2135_v17, %v2134_v15  ;;  %v2349_v15 = vld [vmem:[#allocation2 + $0x940] sm:$0xff] }
 0xac1   :  { %v2351_v17 = vld [vmem:[#allocation2 + $0x960] sm:$0xff] }
 0xac2   :  { %v2137_v22 = vsel %vm243_vm1, %v2123_v18, %v2136_v19  ;;  %v6564_v18 = vcombine.low %v2353_v1, %v2355_v6  ;;  %v6562_v19 = vcombine.high %v2349_v15, %v2351_v17  ;;  %v6561_v8 = vcombine.low %v2349_v15, %v2351_v17 }
 0xac3   :  { %v2154_v23 = vpack.c.bf16 %v2137_v22, %v2137_v22  ;;  %v2345_v22 = vld [vmem:[#allocation2 + $0x900] sm:$0xff] }
 0xac5   :  { %7268 = vmatmul.mubr.bf16.vlgmr.msra.gmra.mxu0 %v2154_v23  ;;  %v2347_v23 = vld [vmem:[#allocation2 + $0x920] sm:$0xff] }
 0xac6   :  { %7278 = vmatpush3.bf16.msra.mxu0 %v6569_v50  ;;  %v6559_v24 = vcombine.high %v2345_v22, %v2347_v23  ;;  %v6558_v44 = vcombine.low %v2345_v22, %v2347_v23  ;;  %v2339_v50 = vld [vmem:[#allocation2 + $0x8a0] sm:$0xff] }
 0xac7   :  { %7279 = vmatprep.subr.bf16.mxu0 %v6566_v25  ;;  %v6553_v52 = vcombine.high %v2337_v48, %v2339_v50  ;;  %v6552_v13 = vcombine.low %v2337_v48, %v2339_v50 }
 0xaca   :  { %7280 = vmatpush3.bf16.msra.mxu0 %v6566_v25  ;;  %v2338_v25 = vld [vmem:[#allocation2 + $0x888] sm:$0xf] }
 0xacb   :  { %7281 = vmatprep.subr.bf16.mxu0 %v6563_v16  ;;  %v6554_v27 = vcombine.low %v2338_v25, %v2340_v26 }
 0xace   :  { %7282 = vmatpush3.bf16.msra.mxu0 %v6563_v16  ;;  %v2333_v16 = vld [vmem:[#allocation2 + $0x840] sm:$0xff] }
 0xacf   :  { %7283 = vmatprep.subr.bf16.mxu0 %v6560_v33  ;;  %v6550_v32 = vcombine.high %v2333_v16, %v2335_v30  ;;  %v6549_v29 = vcombine.low %v2333_v16, %v2335_v30 }
 0xad2   :  { %7284 = vmatpush3.bf16.msra.mxu0 %v6560_v33  ;;  %v2334_v33 = vld [vmem:[#allocation2 + $0x848] sm:$0xf] }
 0xad3   :  { %7285 = vmatprep.subr.bf16.mxu0 %v6557_v35 }
 0xad6   :  { %7286 = vmatpush3.bf16.msra.mxu0 %v6557_v35  ;;  %v6551_v35 = vcombine.low %v2334_v33, %v2336_v28 }
 0xad7   :  { %7287 = vmatprep.subr.bf16.mxu0 %v6554_v27 }
 0xada   :  { %7288 = vmatpush3.bf16.msra.mxu0 %v6554_v27 }
 0xadb   :  { %7289 = vmatprep.subr.bf16.mxu0 %v6551_v35 }
 0xade   :  { %7290 = vmatpush3.bf16.msra.mxu0 %v6551_v35 }
 0xb85   :  { %v2237_v37 = vpop.f32.mrf.mxu0 }
 0xb86   :  { %v2243_v38 = vmul.f32 0.001953125, %v2237_v37  ;;  %v2329_v37 = vld [vmem:[#allocation2 + $0x800] sm:$0xff] }
 0xb87   :  { %v7269_v40 = vpop.f32.mrf.mxu0 }
 0xb88   :  { %v2244_v43 = vmul.f32 %v2243_v38, %v2243_v38  ;;  %v2252_v60 = vsub.f32 0.0, %v2243_v38 }
 0xb89   :  { %v2240_v46 = vpop.f32.mrf.mxu0 }
 0xb8a   :  { %v2246_v51 = vrot.slane %v2244_v43, 7  ;;  %v2330_v43 = vld [vmem:[#allocation2 + $0x808] sm:$0xf] }
 0xb8b   :  { %v7270_v54 = vpop.f32.mrf.mxu0  ;;  %v2332_v46 = vld [vmem:[#allocation2 + $0x828] sm:$0xf] }
 0xb8c   :  { %v2248_v55 = vsub.f32 %v2243_v38, %v2246_v51  ;;  %v2331_v38 = vld [vmem:[#allocation2 + $0x820] sm:$0xff]  ;;  %v6548_v54 = vcombine.low %v2330_v43, %v2332_v46 }
 0xb8d   :  { %v6547_v40 = vcombine.high %v2329_v37, %v2331_v38  ;;  %v6546_v51 = vcombine.low %v2329_v37, %v2331_v38 }
 0xb8e   :  { %v2249_v56 = vmax.f32 %v2248_v55, 0.0  ;;  %7291 = vmatprep.subr.bf16.mxu0 %v6548_v54  ;;  %v8050_v55 = vpop.f32.mrf.mxu1 }
 0xb8f   :  { %7292 = vmatpush3.bf16.msra.mxu0 %v6548_v54 }
 0xb90   :  { %v2250_v57 = vadd.f32 1e-05, %v2249_v56  ;;  %7317 = vmatprep.subr.bf16.mxu0 %v7575_v0 }
 0xb92   :  { %7432 = vrsqrt.f32 %v2250_v57 }
 0xb9f   :  { %v7433_v59 = vpop.eup %7432 }
 0xba0   :  { %v2254_v61 = vrot.slane %v7433_v59, 1 }
 0xba2   :  { %v2256_v62 = vmul.f32 %v2254_v61, %v2252_v60 }
 0xba4   :  { %v2258_v63 = vrot.slane %v2256_v62, 7 }
 0xba6   :  { %v2260_v9 = vsel %vm243_vm1, %v2254_v61, %v2258_v63 }
 0xba7   :  { %v2262_v14 = vpack.c.bf16 %v2260_v9, %v2260_v9 }
 0xba9   :  { %7274 = vmatmul.mubr.msk.bf16.vlgmr.msra.gmra.mxu1 %vm734_vm4, %v2262_v14 }
 0xbaa   :  { %2492 = vmatpush1.bf16.msra.mxu1 %v6567_v41  ;;  %2523 = vmatprep.mubr.bf16.mxu1 %v9074_v5  ;;  %v6555_v41 = vcombine.low %v2341_v58, %v2343_v39  ;;  %v7382_v58 = vld [vmem:[#allocation4 + $0x118] sm:$0xff]   ;;  %v7383_v39 = vld [vmem:[#allocation4 + $0x110] sm:$0xff]  }
 0xbab   :  { %2493 = vmatprep.subr.bf16.mxu1 %v6565_v4 }
 0xbae   :  { %2494 = vmatpush1.bf16.msra.mxu1 %v6564_v18 }
 0xbaf   :  { %2495 = vmatprep.subr.bf16.mxu1 %v6562_v19 }
 0xbb2   :  { %2496 = vmatpush1.bf16.msra.mxu1 %v6561_v8 }
 0xbb3   :  { %2497 = vmatprep.subr.bf16.mxu1 %v6559_v24 }
 0xbb6   :  { %2498 = vmatpush1.bf16.msra.mxu1 %v6558_v44  ;;  %v7384_v44 = vld [vmem:[#allocation4 + $0x108] sm:$0xff]  }
 0xbb7   :  { %2499 = vmatprep.subr.bf16.mxu1 %v6556_v45  ;;  %v7385_v45 = vld [vmem:[#allocation4 + $0x100] sm:$0xff]  }
 0xbba   :  { %2500 = vmatpush1.bf16.msra.mxu1 %v6555_v41 }
 0xbbb   :  { %2501 = vmatprep.subr.bf16.mxu1 %v6553_v52 }
 0xbbe   :  { %2502 = vmatpush1.bf16.msra.mxu1 %v6552_v13 }
 0xbbf   :  { %2503 = vmatprep.subr.bf16.mxu1 %v6550_v32 }
 0xbc2   :  { %2504 = vmatpush1.bf16.msra.mxu1 %v6549_v29 }
 0xbc3   :  { %2505 = vmatprep.subr.bf16.mxu1 %v6547_v40 }
 0xbc6   :  { %2506 = vmatpush1.bf16.msra.mxu1 %v6546_v51 }
 0xbc7   :  { %7297 = vmatprep.subr.bf16.mxu1 %v7575_v0 }
 0xc69   :  { %v2303_v56 = vpop.f32.mrf.mxu1 }
 0xc6a   :  { %v2312_v57 = vrot.slane %v2303_v56, %v7717_v11  ;;  %v2320_v59 = vrot.slane %v2303_v56, %v7720_v12 }
 0xc6b   :  { %v7275_v60 = vpop.f32.mrf.mxu1 }
 0xc6c   :  { %v2313_v61 = vmul.f32 %v2312_v57, %v8013_v7  ;;  %v2314_v62 = vmul.f32 %v2312_v57, %v8019_v34  ;;  %v2315_v63 = vmul.f32 %v2312_v57, %v8033_v49  ;;  %v2316_v1 = vmul.f32 %v2312_v57, %v8035_v53  ;;  %v7378_v7 = vld [vmem:[#allocation4 + $0x138] sm:$0xff]   ;;  %v7379_v34 = vld [vmem:[#allocation4 + $0x130] sm:$0xff]   ;;  %v7380_v49 = vld [vmem:[#allocation4 + $0x128] sm:$0xff]  }
 0xc6d   :  { %v2306_v6 = vpop.f32.mrf.mxu1  ;;  %v7381_v53 = vld [vmem:[#allocation4 + $0x120] sm:$0xff]   ;;  %v2625_v57 = vld [vmem:[#allocation9 + $0x50] ss:$0 sm:$0xff] }
 0xc6e   :  { %v2321_v9 = vadd.f32 %v2320_v59, %v2313_v61  ;;  %v2322_v14 = vadd.f32 %v2320_v59, %v2314_v62  ;;  %v2323_v4 = vadd.f32 %v2320_v59, %v2315_v63  ;;  %v2324_v15 = vadd.f32 %v2320_v59, %v2316_v1 }
 0xc6f   :  { %v7276_v17 = vpop.f32.mrf.mxu1 }
 0xc70   :  { %v2325_v18 = vmax.f32 %v2321_v9, 0.0  ;;  %v2326_v19 = vmax.f32 %v2322_v14, 0.0  ;;  %v2327_v22 = vmax.f32 %v2323_v4, 0.0  ;;  %v2328_v23 = vmax.f32 %v2324_v15, 0.0 }
 0xc72   :  { %v2361_v8 = vpack.c.bf16 %v2326_v19, %v2325_v18  ;;  %v2362_v24 = vpack.c.bf16 %v2328_v23, %v2327_v22 }
 0xc74   :  { %2524 = vmatmul.mubr.bf16.vlgmr.msra.gmra.mxu1 %v2361_v8  ;;  %7293 = vmatprep.mubr.bf16.mxu0 %v2361_v8 }
 0xc75   :  { %7294 = vmatmul.mubr.bf16.vlgmr.msra.gmra.mxu0 %v2362_v24  ;;  %2533 = vmatprep.mubr.bf16.mxu1 %v9074_v5 }
 0xc76   :  { %7319 = vmatprep.mubr.msk.bf16.mxu0 %vm7576_vm0, %v7575_v0  ;;  %7298 = vmatpush3.bf16.msra.mxu1 %v7378_v7 }
 0xc77   :  { %7299 = vmatprep.subr.bf16.mxu1 %v7575_v0 }
 0xc7a   :  { %7300 = vmatpush3.bf16.msra.mxu1 %v7379_v34 }
 0xc7b   :  { %7301 = vmatprep.subr.bf16.mxu1 %v7575_v0 }
 0xc7c   :  { %2534 = vmatmul.mubr.bf16.gmra.mxu1 %v2362_v24  ;;  %v2634_v24 = vld [vmem:[#allocation9 + $0x60] ss:$0 sm:$0xff] }
 0xc7d   :  { %7313 = vmatprep.mubr.msk.bf16.mxu1 %vm7576_vm0, %v7575_v0 }
 0xc7e   :  { %7302 = vmatpush3.bf16.msra.mxu1 %v7380_v49 }
 0xc7f   :  { %7303 = vmatprep.subr.bf16.mxu1 %v7575_v0 }
 0xc82   :  { %7304 = vmatpush3.bf16.msra.mxu1 %v7381_v53 }
 0xc83   :  { %7305 = vmatprep.subr.bf16.mxu1 %v7575_v0 }
 0xc86   :  { %7306 = vmatpush3.bf16.msra.mxu1 %v7382_v58 }
 0xc87   :  { %7307 = vmatprep.subr.bf16.mxu1 %v7575_v0 }
 0xc8a   :  { %7308 = vmatpush3.bf16.msra.mxu1 %v7383_v39 }
 0xc8b   :  { %7309 = vmatprep.subr.bf16.mxu1 %v7575_v0 }
 0xc8e   :  { %7310 = vmatpush3.bf16.msra.mxu1 %v7384_v44 }
 0xc8f   :  { %7311 = vmatprep.subr.bf16.mxu1 %v7575_v0 }
 0xc92   :  { %7312 = vmatpush3.bf16.msra.mxu1 %v7385_v45 }
 0xd34   :  { %v2525_v48 = vpop.f32.mrf.mxu1 }
 0xd35   :  { %v7295_v50 = vpop.f32.mrf.mxu0  ;;  %v2593_v25 = vrot.slane %v2525_v48, 7 }
 0xd36   :  { %v2527_v41 = vpop.f32.mrf.mxu1  ;;  %v2603_v33 = vrot.slane %v7295_v50, 1 }
 0xd37   :  { %v2578_v52 = vpop.f32.mrf.mxu0 }
 0xd38   :  { %v2529_v13 = vpop.f32.mrf.mxu1  ;;  %v2601_v51 = vrot.slane %v2578_v52, 1 }
 0xd39   :  { %v2594_v26 = vrot.slane %v2529_v13, 7  ;;  %v7296_v27 = vpop.f32.mrf.mxu0 }
 0xd3a   :  { %v2531_v16 = vpop.f32.mrf.mxu1  ;;  %v2604_v37 = vrot.slane %v7296_v27, 1 }
 0xd3b   :  { %v2599_v30 = vsel %vm866_vm5, %v2593_v25, %v2594_v26  ;;  %v2581_v32 = vpop.f32.mrf.mxu0 }
 0xd3c   :  { %v2602_v28 = vrot.slane %v2581_v32, 1  ;;  %v2535_v29 = vpop.f32.mrf.mxu1  ;;  %v2618_v0 = vadd.f32 %v2599_v30, %v2531_v16  ;;  %v2605_v62 = vsel %vm871_vm8, %v2603_v33, %v2604_v37  ;;  %v2608_v42 = vsel %vm871_vm8, %v2604_v37, %v2601_v51 }
 0xd3d   :  { %v2595_v35 = vrot.slane %v2535_v29, 7  ;;  %v2616_v18 = vsel %vm8015_vm15, 0.0, %v2608_v42  ;;  %v2692_v42 = vld [vmem:[#allocation2 + $0xba8] sm:$0xff] }
 0xd3e   :  { %v2606_v38 = vsel %vm871_vm8, %v2602_v28, %v2603_v33  ;;  %v2537_v40 = vpop.f32.mrf.mxu1  ;;  %v2607_v19 = vsel %vm871_vm8, %v2601_v51, %v2602_v28  ;;  %v8121_v51 = vld [vmem:[#allocation2 + $0xbc0] sm:$0xff] }
 0xd3f   :  { %v2614_v43 = vsel %vm7998_vm14, 0.0, %v2606_v38  ;;  %v2598_v46 = vsel %vm866_vm5, %v2594_v26, %v2595_v35 }
 0xd40   :  { %v2622_v54 = vadd.f32 %v2618_v0, %v2614_v43  ;;  %v2611_v56 = vsel %vm7994_vm13, 0.0, %v2598_v46  ;;  %v2539_v59 = vpop.f32.mrf.mxu1  ;;  %v2849_v43 = vld [vmem:[#allocation6 + $0x48] sm:$0xf] }
 0xd41   :  { %v2619_v60 = vadd.f32 %v2611_v56, %v2537_v40  ;;  %v2596_v61 = vrot.slane %v2539_v59, 7  ;;  %v2855_v46 = vsel %vm738_vm3, %v2849_v43, 0  ;;  %v2696_v56 = vld [vmem:[#allocation2 + $0xbc8] sm:$0xff]  ;;  %v2675_v43 = vld [vmem:[#allocation2 + $0xb20] sm:$0xff] }
 0xd42   :  { %v2541_v63 = vpop.f32.mrf.mxu1  ;;  %v2627_v6 = vadd.f32 %v2625_v57, %v2622_v54  ;;  %7318 = vmatpush3.bf16.msra.mxu0 %v2855_v46  ;;  %v8123_v54 = vld [vmem:[#allocation2 + $0xbe0] sm:$0xff] }
 0xd43   :  { %v2623_v1 = vadd.f32 %v2619_v60, %v2605_v62  ;;  %v2600_v9 = vsel %vm866_vm5, %v2596_v61, %v2593_v25  ;;  %v2597_v36 = vsel %vm866_vm5, %v2595_v35, %v2596_v61  ;;  %v6622_v59 = vcombine.high %v8121_v51, %v8123_v54  ;;  %v2700_v60 = vld [vmem:[#allocation2 + $0xbe8] sm:$0xff] }
 0xd44   :  { %v2609_v14 = vsel %vm7974_vm12, 0.0, %v2600_v9  ;;  %v2620_v4 = vadd.f32 %v2597_v36, %v2541_v63  ;;  %v2631_v23 = vadd.f32 %v2627_v6, %v7986_v21  ;;  %v6623_v61 = vcombine.low %v2696_v56, %v2700_v60  ;;  %v2688_v63 = vld [vmem:[#allocation2 + $0xb88] sm:$0xff] }
 0xd45   :  { %v2628_v15 = vadd.f32 %v2625_v57, %v2623_v1  ;;  %v2617_v17 = vadd.f32 %v2609_v14, %v2527_v41  ;;  %v6624_v62 = vcombine.high %v2696_v56, %v2700_v60  ;;  %3159 = vmatprep.subr.bf16.mxu0 %v6622_v59  ;;  %v6618_v1 = vcombine.high %v2688_v63, %v2692_v42  ;;  %v2680_v9 = vld [vmem:[#allocation2 + $0xb48] sm:$0xff]  ;;  %v2667_v56 = vld [vmem:[#allocation2 + $0xae0] sm:$0xff] }
 0xd46   :  { %v2624_v22 = vadd.f32 %v2620_v4, %v2616_v18  ;;  %v8096_v2 = vadd.f32 %v2634_v24, %v2631_v23  ;;  %v6617_v6 = vcombine.low %v2688_v63, %v2692_v42  ;;  %v2684_v36 = vld [vmem:[#allocation2 + $0xb68] sm:$0xff] }
 0xd47   :  { %v2621_v8 = vadd.f32 %v2617_v17, %v2607_v19  ;;  %v2632_v34 = vadd.f32 %v2628_v15, %v8003_v47  ;;  %3212 = vmatprep.subr.bf16.mxu1 %v6624_v62  ;;  %v6612_v14 = vcombine.high %v2680_v9, %v2684_v36  ;;  %v6611_v4 = vcombine.low %v2680_v9, %v2684_v36  ;;  %v2672_v15 = vld [vmem:[#allocation2 + $0xb08] sm:$0xff]  ;;  %v2659_v62 = vld [vmem:[#allocation2 + $0xaa0] sm:$0xff] }
 0xd48   :  { %v2629_v7 = vadd.f32 %v2625_v57, %v2624_v22  ;;  %v2713_v47 = vmul.f32 %v8096_v2, %v8096_v2  ;;  %v2676_v17 = vld [vmem:[#allocation2 + $0xb28] sm:$0xff] }
 0xd49   :  { %v2626_v49 = vadd.f32 %v2625_v57, %v2621_v8  ;;  %v8100_v31 = vadd.f32 %v2634_v24, %v2632_v34  ;;  %v6621_v57 = vcombine.low %v8121_v51, %v8123_v54  ;;  %v6606_v18 = vcombine.high %v2672_v15, %v2676_v17  ;;  %v2664_v22 = vld [vmem:[#allocation2 + $0xac8] sm:$0xff]  ;;  %v2663_v54 = vld [vmem:[#allocation2 + $0xac0] sm:$0xff] }
 0xd4a   :  { %v2633_v58 = vadd.f32 %v2629_v7, %v8050_v55  ;;  %v6605_v19 = vcombine.low %v2672_v15, %v2676_v17  ;;  %v2668_v23 = vld [vmem:[#allocation2 + $0xae8] sm:$0xff]  ;;  %v6598_v60 = vcombine.high %v2663_v54, %v2667_v56 }
 0xd4b   :  { %v2630_v53 = vadd.f32 %v2626_v49, %v7978_v3  ;;  %v2714_v3 = vmul.f32 %v8100_v31, %v8100_v31  ;;  %v6600_v8 = vcombine.high %v2664_v22, %v2668_v23  ;;  %v2656_v7 = vld [vmem:[#allocation2 + $0xa88] sm:$0xff] }
 0xd4c   :  { %v8106_v21 = vadd.f32 %v2634_v24, %v2633_v58  ;;  %v2660_v34 = vld [vmem:[#allocation2 + $0xaa8] sm:$0xff] }
 0xd4d   :  { %v8102_v39 = vadd.f32 %v2634_v24, %v2630_v53  ;;  %v6599_v24 = vcombine.low %v2664_v22, %v2668_v23  ;;  %v6594_v49 = vcombine.high %v2656_v7, %v2660_v34  ;;  %v6593_v53 = vcombine.low %v2656_v7, %v2660_v34  ;;  %v2648_v9 = vld [vmem:[#allocation2 + $0xa48] sm:$0xff] }
 0xd4e   :  { %v2715_v41 = vmul.f32 %v8106_v21, %v8106_v21  ;;  %v2640_v22 = vld [vmem:[#allocation2 + $0xa08] sm:$0xff] }
 0xd4f   :  { %v2712_v44 = vmul.f32 %v8102_v39, %v8102_v39  ;;  %v2703_v45 = vadd.f32 %v8096_v2, %v8102_v39 }
 0xd51   :  { %v2704_v55 = vadd.f32 %v2703_v45, %v8100_v31  ;;  %v2716_v48 = vadd.f32 %v2713_v47, %v2712_v44 }
 0xd53   :  { %v2705_v50 = vadd.f32 %v2704_v55, %v8106_v21  ;;  %v2717_v52 = vadd.f32 %v2716_v48, %v2714_v3 }
 0xd55   :  { %v2706_v13 = vrot.slane %v2705_v50, 4  ;;  %v2718_v25 = vadd.f32 %v2717_v52, %v2715_v41 }
 0xd57   :  { %v2707_v26 = vadd.f32 %v2706_v13, %v2705_v50  ;;  %v2719_v27 = vrot.slane %v2718_v25, 4 }
 0xd59   :  { %v2708_v16 = vrot.slane %v2707_v26, 2  ;;  %v2720_v30 = vadd.f32 %v2719_v27, %v2718_v25 }
 0xd5b   :  { %v2709_v32 = vadd.f32 %v2708_v16, %v2707_v26  ;;  %v2721_v33 = vrot.slane %v2720_v30, 2 }
 0xd5d   :  { %v2710_v28 = vrot.slane %v2709_v32, 1  ;;  %v2722_v29 = vadd.f32 %v2721_v33, %v2720_v30  ;;  %v2687_v30 = vld [vmem:[#allocation2 + $0xb80] sm:$0xff] }
 0xd5f   :  { %v2723_v35 = vrot.slane %v2722_v29, 1  ;;  %v2711_v37 = vadd.f32 %v2710_v28, %v2709_v32  ;;  %v2691_v32 = vld [vmem:[#allocation2 + $0xba0] sm:$0xff] }
 0xd61   :  { %v2724_v0 = vadd.f32 %v2723_v35, %v2722_v29  ;;  %v6616_v29 = vcombine.high %v2687_v30, %v2691_v32  ;;  %v2679_v35 = vld [vmem:[#allocation2 + $0xb40] sm:$0xff] }
 0xd63   :  { %v2725_v38 = vsel %vm243_vm1, %v2711_v37, %v2724_v0  ;;  %v2683_v37 = vld [vmem:[#allocation2 + $0xb60] sm:$0xff]  ;;  %v6615_v0 = vcombine.low %v2687_v30, %v2691_v32  ;;  %v2689_v30 = vld [vmem:[#allocation2 + $0xb90] sm:$0xff] }
 0xd64   :  { %v2742_v40 = vpack.c.bf16 %v2725_v38, %v2725_v38  ;;  %v6610_v38 = vcombine.high %v2679_v35, %v2683_v37  ;;  %v6609_v46 = vcombine.low %v2679_v35, %v2683_v37  ;;  %v2693_v32 = vld [vmem:[#allocation2 + $0xbb0] sm:$0xff]  ;;  %v2690_v35 = vld [vmem:[#allocation2 + $0xb98] sm:$0xff] }
 0xd65   :  { %v2694_v37 = vld [vmem:[#allocation2 + $0xbb8] sm:$0xff] }
 0xd66   :  { %7314 = vmatmul.mubr.bf16.vlgmr.msra.gmra.mxu1 %v2742_v40  ;;  %v2671_v40 = vld [vmem:[#allocation2 + $0xb00] sm:$0xff] }
 0xd67   :  { %3244 = vmatprep.mubr.bf16.mxu1 %v9074_v5  ;;  %3213 = vmatpush1.bf16.msra.mxu1 %v6623_v61  ;;  %v6604_v51 = vcombine.high %v2671_v40, %v2675_v43  ;;  %v6603_v59 = vcombine.low %v2671_v40, %v2675_v43  ;;  %v2655_v61 = vld [vmem:[#allocation2 + $0xa80] sm:$0xff]  ;;  %v6620_v40 = vcombine.high %v2689_v30, %v2693_v32 }
 0xd68   :  { %3214 = vmatprep.subr.bf16.mxu1 %v6618_v1  ;;  %v6592_v63 = vcombine.high %v2655_v61, %v2659_v62  ;;  %v6591_v42 = vcombine.low %v2655_v61, %v2659_v62  ;;  %v2647_v1 = vld [vmem:[#allocation2 + $0xa40] sm:$0xff]  ;;  %v2686_v61 = vld [vmem:[#allocation2 + $0xb78] sm:$0xff]  ;;  %v6619_v62 = vcombine.low %v2689_v30, %v2693_v32 }
 0xd6b   :  { %3215 = vmatpush1.bf16.msra.mxu1 %v6617_v6  ;;  %v2651_v6 = vld [vmem:[#allocation2 + $0xa60] sm:$0xff] }
 0xd6c   :  { %3216 = vmatprep.subr.bf16.mxu1 %v6612_v14  ;;  %v6586_v36 = vcombine.high %v2647_v1, %v2651_v6  ;;  %v2652_v14 = vld [vmem:[#allocation2 + $0xa68] sm:$0xff] }
 0xd6d   :  { %v6587_v15 = vcombine.low %v2648_v9, %v2652_v14  ;;  %v6588_v17 = vcombine.high %v2648_v9, %v2652_v14  ;;  %v2673_v9 = vld [vmem:[#allocation2 + $0xb10] sm:$0xff]  ;;  %v2674_v14 = vld [vmem:[#allocation2 + $0xb18] sm:$0xff] }
 0xd6f   :  { %3217 = vmatpush1.bf16.msra.mxu1 %v6611_v4  ;;  %v6585_v4 = vcombine.low %v2647_v1, %v2651_v6 }
 0xd70   :  { %3218 = vmatprep.subr.bf16.mxu1 %v6606_v18  ;;  %v2639_v18 = vld [vmem:[#allocation2 + $0xa00] sm:$0xff] }
 0xd73   :  { %3219 = vmatpush1.bf16.msra.mxu1 %v6605_v19  ;;  %v2643_v19 = vld [vmem:[#allocation2 + $0xa20] sm:$0xff] }
 0xd74   :  { %3220 = vmatprep.subr.bf16.mxu1 %v6600_v8  ;;  %v6580_v23 = vcombine.high %v2639_v18, %v2643_v19  ;;  %v2644_v8 = vld [vmem:[#allocation2 + $0xa28] sm:$0xff] }
 0xd75   :  { %v6581_v7 = vcombine.low %v2640_v22, %v2644_v8  ;;  %v6582_v34 = vcombine.high %v2640_v22, %v2644_v8  ;;  %v2669_v8 = vld [vmem:[#allocation2 + $0xaf0] sm:$0xff] }
 0xd77   :  { %3221 = vmatpush1.bf16.msra.mxu1 %v6599_v24  ;;  %v6579_v24 = vcombine.low %v2639_v18, %v2643_v19 }
 0xd78   :  { %3222 = vmatprep.subr.bf16.mxu1 %v6594_v49  ;;  %v2697_v49 = vld [vmem:[#allocation2 + $0xbd0] sm:$0xff] }
 0xd7b   :  { %3223 = vmatpush1.bf16.msra.mxu1 %v6593_v53  ;;  %v2701_v53 = vld [vmem:[#allocation2 + $0xbf0] sm:$0xff] }
 0xd7c   :  { %3224 = vmatprep.subr.bf16.mxu1 %v6588_v17 }
 0xd7f   :  { %3225 = vmatpush1.bf16.msra.mxu1 %v6587_v15 }
 0xd80   :  { %3226 = vmatprep.subr.bf16.mxu1 %v6582_v34 }
 0xd83   :  { %3227 = vmatpush1.bf16.msra.mxu1 %v6581_v7  ;;  %v2670_v7 = vld [vmem:[#allocation2 + $0xaf8] sm:$0xff] }
 0xe26   :  { %v2825_v58 = vpop.f32.mrf.mxu1 }
 0xe27   :  { %v2831_v44 = vmul.f32 0.001953125, %v2825_v58  ;;  %v2698_v58 = vld [vmem:[#allocation2 + $0xbd8] sm:$0xff] }
 0xe28   :  { %v7315_v45 = vpop.f32.mrf.mxu1 }
 0xe29   :  { %v2832_v47 = vmul.f32 %v2831_v44, %v2831_v44  ;;  %v2840_v25 = vsub.f32 0.0, %v2831_v44  ;;  %v6626_v45 = vcombine.high %v2697_v49, %v2701_v53 }
 0xe2a   :  { %v2828_v3 = vpop.f32.mrf.mxu1 }
 0xe2b   :  { %v2834_v55 = vrot.slane %v2832_v47, 7  ;;  %v2702_v47 = vld [vmem:[#allocation2 + $0xbf8] sm:$0xff] }
 0xe2c   :  { %v7316_v48 = vpop.f32.mrf.mxu1  ;;  %v6641_v3 = vcombine.low %v2698_v58, %v2702_v47 }
 0xe2d   :  { %v2836_v50 = vsub.f32 %v2831_v44, %v2834_v55  ;;  %v6625_v44 = vcombine.low %v2697_v49, %v2701_v53  ;;  %v6642_v55 = vcombine.high %v2698_v58, %v2702_v47  ;;  %v2658_v47 = vld [vmem:[#allocation2 + $0xa98] sm:$0xff] }
 0xe2f   :  { %v2837_v41 = vmax.f32 %v2836_v50, 0.0  ;;  %3400 = vmatprep.subr.bf16.mxu1 %v6642_v55 }
 0xe31   :  { %v2838_v52 = vadd.f32 1e-05, %v2837_v41 }
 0xe33   :  { %7434 = vrsqrt.f32 %v2838_v52 }
 0xe40   :  { %v7435_v13 = vpop.eup %7434 }
 0xe41   :  { %v2842_v26 = vrot.slane %v7435_v13, 1 }
 0xe43   :  { %v2844_v27 = vmul.f32 %v2842_v26, %v2840_v25 }
 0xe45   :  { %v2846_v16 = vrot.slane %v2844_v27, 7 }
 0xe47   :  { %v2848_v33 = vsel %vm243_vm1, %v2842_v26, %v2846_v16 }
 0xe48   :  { %v2850_v28 = vpack.c.bf16 %v2848_v33, %v2848_v33 }
 0xe4a   :  { %7320 = vmatmul.mubr.msk.bf16.vlgmr.msra.gmra.mxu0 %vm734_vm4, %v2850_v28 }
 0xe4b   :  { %3160 = vmatpush1.bf16.msra.mxu0 %v6621_v57  ;;  %3191 = vmatprep.mubr.bf16.mxu0 %v9074_v5  ;;  %v6597_v57 = vcombine.low %v2663_v54, %v2667_v56 }
 0xe4c   :  { %3161 = vmatprep.subr.bf16.mxu0 %v6616_v29 }
 0xe4f   :  { %3162 = vmatpush1.bf16.msra.mxu0 %v6615_v0 }
 0xe50   :  { %3163 = vmatprep.subr.bf16.mxu0 %v6610_v38 }
 0xe53   :  { %3164 = vmatpush1.bf16.msra.mxu0 %v6609_v46  ;;  %v6640_v46 = vcombine.high %v2690_v35, %v2694_v37 }
 0xe54   :  { %3165 = vmatprep.subr.bf16.mxu0 %v6604_v51  ;;  %v2681_v51 = vld [vmem:[#allocation2 + $0xb50] sm:$0xff] }
 0xe57   :  { %3166 = vmatpush1.bf16.msra.mxu0 %v6603_v59  ;;  %v2685_v59 = vld [vmem:[#allocation2 + $0xb70] sm:$0xff] }
 0xe58   :  { %3167 = vmatprep.subr.bf16.mxu0 %v6598_v60  ;;  %v2682_v60 = vld [vmem:[#allocation2 + $0xb58] sm:$0xff]  ;;  %v6613_v15 = vcombine.low %v2681_v51, %v2685_v59 }
 0xe59   :  { %v6637_v17 = vcombine.low %v2682_v60, %v2686_v61 }
 0xe5b   :  { %3168 = vmatpush1.bf16.msra.mxu0 %v6597_v57  ;;  %v6639_v57 = vcombine.low %v2690_v35, %v2694_v37  ;;  %v2646_v35 = vld [vmem:[#allocation2 + $0xa38] sm:$0xff] }
 0xe5c   :  { %3169 = vmatprep.subr.bf16.mxu0 %v6592_v63  ;;  %v6614_v63 = vcombine.high %v2681_v51, %v2685_v59 }
 0xe5f   :  { %3170 = vmatpush1.bf16.msra.mxu0 %v6591_v42  ;;  %v6638_v42 = vcombine.high %v2682_v60, %v2686_v61 }
 0xe60   :  { %3171 = vmatprep.subr.bf16.mxu0 %v6586_v36  ;;  %v2677_v36 = vld [vmem:[#allocation2 + $0xb30] sm:$0xff] }
 0xe61   :  { %v6608_v19 = vcombine.high %v2673_v9, %v2677_v36  ;;  %v6607_v34 = vcombine.low %v2673_v9, %v2677_v36 }
 0xe63   :  { %3172 = vmatpush1.bf16.msra.mxu0 %v6585_v4  ;;  %v2678_v4 = vld [vmem:[#allocation2 + $0xb38] sm:$0xff] }
 0xe64   :  { %3173 = vmatprep.subr.bf16.mxu0 %v6580_v23  ;;  %v6636_v22 = vcombine.high %v2674_v14, %v2678_v4  ;;  %v2665_v23 = vld [vmem:[#allocation2 + $0xad0] sm:$0xff]  ;;  %v6635_v49 = vcombine.low %v2674_v14, %v2678_v4 }
 0xe65   :  { %v6602_v53 = vcombine.high %v2665_v23, %v2669_v8  ;;  %v6601_v55 = vcombine.low %v2665_v23, %v2669_v8  ;;  %v7386_v8 = vld [vmem:[#allocation7 + $0x18] sm:$0xff]  }
 0xe67   :  { %3174 = vmatpush1.bf16.msra.mxu0 %v6579_v24  ;;  %v2666_v24 = vld [vmem:[#allocation2 + $0xad8] sm:$0xff] }
 0xe68   :  { %3265 = vmatprep.subr.bf16.mxu0 %v6626_v45  ;;  %v6634_v58 = vcombine.high %v2666_v24, %v2670_v7  ;;  %v2661_v45 = vld [vmem:[#allocation2 + $0xab0] sm:$0xff] }
 0xf0a   :  { %v2891_v48 = vpop.f32.mrf.mxu0 }
 0xf0b   :  { %v2900_v50 = vrot.slane %v2891_v48, %v7717_v11  ;;  %v2908_v25 = vrot.slane %v2891_v48, %v7720_v12  ;;  %v6633_v48 = vcombine.low %v2666_v24, %v2670_v7  ;;  %v7387_v24 = vld [vmem:[#allocation7 + $0x20] sm:$0xff]  }
 0xf0c   :  { %v7321_v41 = vpop.f32.mrf.mxu0 }
 0xf0d   :  { %v2901_v52 = vmul.f32 %v2900_v50, %v8102_v39  ;;  %v2902_v13 = vmul.f32 %v2900_v50, %v8096_v2  ;;  %v2903_v33 = vmul.f32 %v2900_v50, %v8100_v31  ;;  %v2904_v28 = vmul.f32 %v2900_v50, %v8106_v21 }
 0xf0e   :  { %v2894_v26 = vpop.f32.mrf.mxu0 }
 0xf0f   :  { %v2909_v27 = vadd.f32 %v2908_v25, %v2901_v52  ;;  %v2910_v16 = vadd.f32 %v2908_v25, %v2902_v13  ;;  %v2911_v54 = vadd.f32 %v2908_v25, %v2903_v33  ;;  %v2912_v56 = vadd.f32 %v2908_v25, %v2904_v28  ;;  %v2649_v52 = vld [vmem:[#allocation2 + $0xa50] sm:$0xff]  ;;  %v2650_v25 = vld [vmem:[#allocation2 + $0xa58] sm:$0xff] }
 0xf10   :  { %v7322_v29 = vpop.f32.mrf.mxu0  ;;  %v2653_v13 = vld [vmem:[#allocation2 + $0xa70] sm:$0xff]  ;;  %v2654_v26 = vld [vmem:[#allocation2 + $0xa78] sm:$0xff] }
 0xf11   :  { %v2913_v0 = vmax.f32 %v2909_v27, 0.0  ;;  %v2914_v38 = vmax.f32 %v2910_v16, 0.0  ;;  %v2915_v1 = vmax.f32 %v2911_v54, 0.0  ;;  %v2916_v6 = vmax.f32 %v2912_v56, 0.0  ;;  %v2641_v33 = vld [vmem:[#allocation2 + $0xa10] sm:$0xff]  ;;  %v2642_v29 = vld [vmem:[#allocation2 + $0xa18] sm:$0xff] }
 0xf12   :  { %v6590_v30 = vcombine.high %v2649_v52, %v2653_v13  ;;  %v6630_v32 = vcombine.high %v2650_v25, %v2654_v26  ;;  %v2645_v28 = vld [vmem:[#allocation2 + $0xa30] sm:$0xff]  ;;  %v6589_v37 = vcombine.low %v2649_v52, %v2653_v13  ;;  %v6627_v51 = vcombine.low %v2642_v29, %v2646_v35 }
 0xf13   :  { %v8138_v43 = vpack.c.bf16 %v2914_v38, %v2913_v0  ;;  %v8144_v18 = vpack.c.bf16 %v2916_v6, %v2915_v1  ;;  %v6629_v0 = vcombine.low %v2650_v25, %v2654_v26  ;;  %v6584_v38 = vcombine.high %v2641_v33, %v2645_v28 }
 0xf14   :  { %v3318_v54 = vpack.c.bf16 %v8096_v2, %v8102_v39  ;;  %v3319_v56 = vpack.c.bf16 %v8106_v21, %v8100_v31 }
 0xf15   :  { %3192 = vmatmul.mubr.bf16.vlgmr.msra.gmra.mxu0 %v8138_v43  ;;  %3245 = vmatmul.mubr.bf16.vlgmr.msra.gmra.mxu1 %v8138_v43 }
 0xf16   :  { %3266 = vmatpush1.bf16.msra.mxu0 %v6625_v44  ;;  %3401 = vmatpush1.bf16.msra.mxu1 %v6641_v3  ;;  %v2657_v44 = vld [vmem:[#allocation2 + $0xa90] sm:$0xff]  ;;  %v2662_v3 = vld [vmem:[#allocation2 + $0xab8] sm:$0xff] }
 0xf17   :  { %3267 = vmatprep.subr.bf16.mxu0 %v6620_v40  ;;  %3402 = vmatprep.subr.bf16.mxu1 %v6640_v46  ;;  %v6596_v50 = vcombine.high %v2657_v44, %v2661_v45  ;;  %v6632_v41 = vcombine.high %v2658_v47, %v2662_v3  ;;  %v6595_v27 = vcombine.low %v2657_v44, %v2661_v45  ;;  %v7388_v45 = vld [vmem:[#allocation7 + $0x28] sm:$0xff]  }
 0xf18   :  { %3201 = vmatprep.mubr.bf16.mxu0 %v9074_v5  ;;  %3254 = vmatprep.mubr.bf16.mxu1 %v9074_v5  ;;  %v6631_v16 = vcombine.low %v2658_v47, %v2662_v3  ;;  %v6628_v40 = vcombine.high %v2642_v29, %v2646_v35  ;;  %v6583_v46 = vcombine.low %v2641_v33, %v2645_v28 }
 0xf1a   :  { %3268 = vmatpush1.bf16.msra.mxu0 %v6619_v62  ;;  %3403 = vmatpush1.bf16.msra.mxu1 %v6639_v57 }
 0xf1b   :  { %3269 = vmatprep.subr.bf16.mxu0 %v6614_v63  ;;  %3404 = vmatprep.subr.bf16.mxu1 %v6638_v42 }
 0xf1d   :  { %3202 = vmatmul.mubr.bf16.gmra.mxu0 %v8144_v18  ;;  %3255 = vmatmul.mubr.bf16.gmra.mxu1 %v8144_v18 }
 0xf1e   :  { %3270 = vmatpush1.bf16.msra.mxu0 %v6613_v15  ;;  %3405 = vmatpush1.bf16.msra.mxu1 %v6637_v17 }
 0xf1f   :  { %3271 = vmatprep.subr.bf16.mxu0 %v6608_v19  ;;  %3406 = vmatprep.subr.bf16.mxu1 %v6636_v22 }
 0xf20   :  { %3297 = vmatprep.mubr.bf16.mxu0 %v9074_v5  ;;  %3432 = vmatprep.mubr.bf16.mxu1 %v9074_v5 }
 0xf22   :  { %3272 = vmatpush1.bf16.msra.mxu0 %v6607_v34  ;;  %3407 = vmatpush1.bf16.msra.mxu1 %v6635_v49 }
 0xf23   :  { %3273 = vmatprep.subr.bf16.mxu0 %v6602_v53  ;;  %3408 = vmatprep.subr.bf16.mxu1 %v6634_v58 }
 0xf26   :  { %3274 = vmatpush1.bf16.msra.mxu0 %v6601_v55  ;;  %3409 = vmatpush1.bf16.msra.mxu1 %v6633_v48 }
 0xf27   :  { %3275 = vmatprep.subr.bf16.mxu0 %v6596_v50  ;;  %3410 = vmatprep.subr.bf16.mxu1 %v6632_v41 }
 0xf2a   :  { %3276 = vmatpush1.bf16.msra.mxu0 %v6595_v27  ;;  %3411 = vmatpush1.bf16.msra.mxu1 %v6631_v16  ;;  %v7389_v27 = vld [vmem:[#allocation7 + $0x30] sm:$0xff]  }
 0xf2b   :  { %3277 = vmatprep.subr.bf16.mxu0 %v6590_v30  ;;  %3412 = vmatprep.subr.bf16.mxu1 %v6630_v32 }
 0xf2e   :  { %3278 = vmatpush1.bf16.msra.mxu0 %v6589_v37  ;;  %3413 = vmatpush1.bf16.msra.mxu1 %v6629_v0  ;;  %v7390_v0 = vld [vmem:[#allocation4 + $0x1b8] sm:$0xff]  }
 0xf2f   :  { %3279 = vmatprep.subr.bf16.mxu0 %v6584_v38  ;;  %3414 = vmatprep.subr.bf16.mxu1 %v6628_v40  ;;  %v7391_v38 = vld [vmem:[#allocation4 + $0x178] sm:$0xff]   ;;  %v7392_v40 = vld [vmem:[#allocation4 + $0x1b0] sm:$0xff]  }
 0xf32   :  { %3280 = vmatpush1.bf16.msra.mxu0 %v6583_v46  ;;  %3415 = vmatpush1.bf16.msra.mxu1 %v6627_v51  ;;  %v7393_v46 = vld [vmem:[#allocation4 + $0x170] sm:$0xff]   ;;  %v7394_v51 = vld [vmem:[#allocation4 + $0x1a8] sm:$0xff]  }
 0xf35   :  { %3298 = vmatmul.mubr.bf16.vlgmr.msra.gmra.mxu0 %v8138_v43  ;;  %3433 = vmatmul.mubr.bf16.vlgmr.msra.gmra.mxu1 %v3318_v54  ;;  %v7395_v54 = vld [vmem:[#allocation4 + $0x168] sm:$0xff]  }
 0xf36   :  { %3307 = vmatprep.mubr.bf16.mxu0 %v9074_v5  ;;  %3442 = vmatprep.mubr.bf16.mxu1 %v9074_v5 }
 0xf3d   :  { %3308 = vmatmul.mubr.bf16.gmra.mxu0 %v8144_v18  ;;  %3443 = vmatmul.mubr.bf16.gmra.mxu1 %v3319_v56  ;;  %v7396_v56 = vld [vmem:[#allocation4 + $0x1a0] sm:$0xff]  }
 0xf3e   :  { %3541 = vmatprep.mubr.bf16.mxu0 %v9074_v5  ;;  %3614 = vmatprep.mubr.bf16.mxu1 %v9074_v5 }
 0xfd5   :  { %v3193_v59 = vpop.f32.mrf.mxu0  ;;  %v3246_v60 = vpop.f32.mrf.mxu1 }
 0xfd7   :  { %v3195_v2 = vpop.f32.mrf.mxu0  ;;  %v3248_v39 = vpop.f32.mrf.mxu1 }
 0xfd9   :  { %v3197_v43 = vpop.f32.mrf.mxu0  ;;  %v3250_v61 = vpop.f32.mrf.mxu1 }
 0xfda   :  { %v3461_v22 = vpack.c.bf16 %v3197_v43, %v3193_v59  ;;  %v3463_v23 = vpack.c.bf16 %v3250_v61, %v3246_v60  ;;  %v7397_v59 = vld [vmem:[#allocation4 + $0x160] sm:$0xff]   ;;  %v7398_v60 = vld [vmem:[#allocation4 + $0x198] sm:$0xff]   ;;  %v7401_v43 = vld [vmem:[#allocation4 + $0x150] sm:$0xff]  }
 0xfdb   :  { %v3199_v62 = vpop.f32.mrf.mxu0  ;;  %v3252_v57 = vpop.f32.mrf.mxu1  ;;  %v7402_v61 = vld [vmem:[#allocation4 + $0x188] sm:$0xff]  }
 0xfdc   :  { %v3462_v18 = vpack.c.bf16 %v3199_v62, %v3195_v2  ;;  %v3464_v19 = vpack.c.bf16 %v3252_v57, %v3248_v39  ;;  %v7399_v2 = vld [vmem:[#allocation4 + $0x158] sm:$0xff]   ;;  %v7400_v39 = vld [vmem:[#allocation4 + $0x190] sm:$0xff]   ;;  %v7403_v62 = vld [vmem:[#allocation4 + $0x148] sm:$0xff]  }
 0xfdd   :  { %v3203_v63 = vpop.f32.mrf.mxu0  ;;  %v3256_v42 = vpop.f32.mrf.mxu1  ;;  %v7404_v57 = vld [vmem:[#allocation4 + $0x180] sm:$0xff]  }
 0xfdf   :  { %v3205_v1 = vpop.f32.mrf.mxu0  ;;  %v3258_v6 = vpop.f32.mrf.mxu1 }
 0xfe1   :  { %v3207_v31 = vpop.f32.mrf.mxu0  ;;  %v3260_v21 = vpop.f32.mrf.mxu1 }
 0xfe2   :  { %v3469_v15 = vpack.c.bf16 %v3207_v31, %v3203_v63  ;;  %v3471_v17 = vpack.c.bf16 %v3260_v21, %v3256_v42  ;;  %v7405_v63 = vld [vmem:[#allocation4 + $0x140] sm:$0xff]  }
 0xfe3   :  { %v3209_v9 = vpop.f32.mrf.mxu0  ;;  %v3262_v36 = vpop.f32.mrf.mxu1 }
 0xfe4   :  { %v3470_v14 = vpack.c.bf16 %v3209_v9, %v3205_v1  ;;  %v3472_v4 = vpack.c.bf16 %v3262_v36, %v3258_v6 }
 0xfe6   :  { %3521 = vmatprep.subr.bf16.mxu0 %v3470_v14  ;;  %3594 = vmatprep.subr.bf16.mxu1 %v3472_v4 }
 0xfe7   :  { %3522 = vmatpush1.bf16.msra.mxu0 %v3469_v15  ;;  %3595 = vmatpush1.bf16.msra.mxu1 %v3471_v17 }
 0xfe8   :  { %3523 = vmatprep.subr.bf16.mxu0 %v3462_v18  ;;  %3596 = vmatprep.subr.bf16.mxu1 %v3464_v19 }
 0xfeb   :  { %3524 = vmatpush1.bf16.msra.mxu0 %v3461_v22  ;;  %3597 = vmatpush1.bf16.msra.mxu1 %v3463_v23 }
 0xfee   :  { %6647 = vmatmul.mubr.msk.bf16.vlgmr.msra.gmra.mxu0 %vm385_vm2, %v7386_v8  ;;  %6651 = vmatmul.mubr.msk.bf16.vlgmr.msra.gmra.mxu1 %vm385_vm2, %v7386_v8 }
 0xfef   :  { %3551 = vmatprep.mubr.bf16.mxu0 %v9074_v5  ;;  %3624 = vmatprep.mubr.bf16.mxu1 %v9074_v5 }
 0xff5   :  { %v3299_v7 = vpop.f32.mrf.mxu0  ;;  %v3434_v34 = vpop.f32.mrf.mxu1 }
 0xff6   :  { %6648 = vmatmul.mubr.msk.bf16.gmra.mxu0 %vm385_vm2, %v7387_v24  ;;  %6652 = vmatmul.mubr.msk.bf16.gmra.mxu1 %vm385_vm2, %v7387_v24 }
 0xff7   :  { %v3301_v49 = vpop.f32.mrf.mxu0  ;;  %v3436_v53 = vpop.f32.mrf.mxu1  ;;  %3561 = vmatprep.mubr.bf16.mxu0 %v9074_v5  ;;  %3634 = vmatprep.mubr.bf16.mxu1 %v9074_v5 }
 0xff9   :  { %v3303_v58 = vpop.f32.mrf.mxu0  ;;  %v3438_v44 = vpop.f32.mrf.mxu1 }
 0xffa   :  { %v3467_v35 = vpack.c.bf16 %v3438_v44, %v3434_v34  ;;  %v3465_v37 = vpack.c.bf16 %v3303_v58, %v3299_v7  ;;  %v3801_v44 = vadd.s32 32, %v7714_v10 }
 0xffb   :  { %v3305_v47 = vpop.f32.mrf.mxu0  ;;  %v3440_v3 = vpop.f32.mrf.mxu1 }
 0xffc   :  { %v3468_v33 = vpack.c.bf16 %v3440_v3, %v3436_v53  ;;  %v3466_v29 = vpack.c.bf16 %v3305_v47, %v3301_v49 }
 0xffd   :  { %v3309_v55 = vpop.f32.mrf.mxu0  ;;  %v3444_v48 = vpop.f32.mrf.mxu1 }
 0xffe   :  { %6649 = vmatmul.mubr.msk.bf16.gmra.mxu0 %vm385_vm2, %v7388_v45  ;;  %6653 = vmatmul.mubr.msk.bf16.gmra.mxu1 %vm385_vm2, %v7388_v45 }
 0xfff   :  { %v3311_v50 = vpop.f32.mrf.mxu0  ;;  %v3446_v41 = vpop.f32.mrf.mxu1  ;;  %3571 = vmatprep.mubr.bf16.mxu0 %v9074_v5  ;;  %3644 = vmatprep.mubr.bf16.mxu1 %v9074_v5 }
0x1001   :  { %v3313_v52 = vpop.f32.mrf.mxu0  ;;  %v3448_v13 = vpop.f32.mrf.mxu1 }
0x1002   :  { %v3475_v32 = vpack.c.bf16 %v3448_v13, %v3444_v48  ;;  %v3473_v28 = vpack.c.bf16 %v3313_v52, %v3309_v55  ;;  %v3809_v55 = vand.u32 31, %v7714_v10 }
0x1003   :  { %v3315_v25 = vpop.f32.mrf.mxu0  ;;  %v3450_v26 = vpop.f32.mrf.mxu1 }
0x1004   :  { %v3474_v16 = vpack.c.bf16 %v3315_v25, %v3311_v50  ;;  %v3476_v30 = vpack.c.bf16 %v3450_v26, %v3446_v41  ;;  %v3837_v50 = vand.u32 31, %v3801_v44  ;;  %v3830_v26 = vand.u32 31, %v7984_v20 }
0x1005   :  { %vm8231_vm0 = vcmp.eq.s32.totalorder %v3809_v55, 0 }
0x1006   :  { %3667 = vmatprep.subr.bf16.mxu0 %v3474_v16  ;;  %3740 = vmatprep.subr.bf16.mxu1 %v3476_v30  ;;  %vm8280_vm6 = vcmp.eq.s32.totalorder %v3830_v26, 31 }
0x1007   :  { %6650 = vmatmul.mubr.msk.bf16.gmra.mxu0 %vm385_vm2, %v7389_v27  ;;  %3741 = vmatpush1.bf16.msra.mxu1 %v3475_v32  ;;  %v4046_v32 = vld [vmem:[#allocation9 + $0x70] ss:$8 sm:$0x3] }
0x1008   :  { %3668 = vmatpush1.bf16.msra.mxu0 %v3473_v28  ;;  %3742 = vmatprep.subr.bf16.mxu1 %v3468_v33 }
0x1009   :  { %3669 = vmatprep.subr.bf16.mxu0 %v3466_v29  ;;  %3687 = vmatprep.mubr.bf16.mxu0 %v9074_v5 }
0x100a   :  { %6654 = vmatmul.mubr.msk.bf16.gmra.mxu1 %vm385_vm2, %v7389_v27 }
0x100b   :  { %3743 = vmatpush1.bf16.msra.mxu1 %v3467_v35  ;;  %3760 = vmatprep.mubr.bf16.mxu1 %v9074_v5  ;;  %v8227_v35 = vadd.s32 56, %v7714_v10 }
0x100c   :  { %3670 = vmatpush1.bf16.msra.mxu0 %v3465_v37 }
0x100d   :  { %6967 = vmatprep.subr.bf16.mxu0 %v7390_v0  ;;  %v9101_v0 = vmov 0 }
0x100e   :  { %v9102_v0 = vsel %vm8231_vm0, 4294967295, %v9101_v0 }
0x100f   :  { %6655 = vmatmul.mubr.msk.bf16.vlgmr.msra.gmra.mxu0 %vm385_vm2, %v7386_v8  ;;  %9103 = vst [vmem:[#allocation15_spill] sm:$0xff] %v9102_v0 }
0x1010   :  { %3697 = vmatprep.mubr.bf16.mxu0 %v9074_v5  ;;  %6968 = vmatpush3.bf16.msra.mxu0 %v7391_v38 }
0x1011   :  { %6969 = vmatprep.subr.bf16.mxu0 %v7392_v40 }
0x1012   :  { %6659 = vmatmul.mubr.msk.bf16.vlgmr.msra.gmra.mxu1 %vm385_vm2, %v7386_v8 }
0x1013   :  { %3770 = vmatprep.mubr.bf16.mxu1 %v9074_v5 }
0x1014   :  { %6970 = vmatpush3.bf16.msra.mxu0 %v7393_v46 }
0x1015   :  { %6971 = vmatprep.subr.bf16.mxu0 %v7394_v51 }
0x1017   :  { %6656 = vmatmul.mubr.msk.bf16.gmra.mxu0 %vm385_vm2, %v7387_v24 }
0x1018   :  { %3707 = vmatprep.mubr.bf16.mxu0 %v9074_v5  ;;  %6972 = vmatpush3.bf16.msra.mxu0 %v7395_v54 }
0x1019   :  { %6973 = vmatprep.subr.bf16.mxu0 %v7396_v56 }
0x101a   :  { %6660 = vmatmul.mubr.msk.bf16.gmra.mxu1 %vm385_vm2, %v7387_v24 }
0x101b   :  { %3780 = vmatprep.mubr.bf16.mxu1 %v9074_v5 }
0x101c   :  { %6974 = vmatpush3.bf16.msra.mxu0 %v7397_v59 }
0x101d   :  { %6975 = vmatprep.subr.bf16.mxu0 %v7398_v60 }
0x101f   :  { %6657 = vmatmul.mubr.msk.bf16.gmra.mxu0 %vm385_vm2, %v7388_v45 }
0x1020   :  { %3717 = vmatprep.mubr.bf16.mxu0 %v9074_v5  ;;  %6976 = vmatpush3.bf16.msra.mxu0 %v7399_v2 }
0x1021   :  { %6977 = vmatprep.subr.bf16.mxu0 %v7400_v39 }
0x1022   :  { %6661 = vmatmul.mubr.msk.bf16.gmra.mxu1 %vm385_vm2, %v7388_v45 }
0x1023   :  { %3790 = vmatprep.mubr.bf16.mxu1 %v9074_v5 }
0x1024   :  { %6978 = vmatpush3.bf16.msra.mxu0 %v7401_v43  ;;  %v8255_v43 = vrot.slane %v4046_v32, %v7717_v11 }
0x1025   :  { %6979 = vmatprep.subr.bf16.mxu0 %v7402_v61  ;;  %v8258_v61 = vrot.slane %v4046_v32, %v7720_v12 }
0x1027   :  { %6658 = vmatmul.mubr.msk.bf16.gmra.mxu0 %vm385_vm2, %v7389_v27 }
0x1028   :  { %6980 = vmatpush3.bf16.msra.mxu0 %v7403_v62 }
0x1029   :  { %6981 = vmatprep.subr.bf16.mxu0 %v7404_v57 }
0x102a   :  { %6662 = vmatmul.mubr.msk.bf16.gmra.mxu1 %vm385_vm2, %v7389_v27  ;;  %vm8236_vm2 = vcmp.eq.s32.totalorder %v3837_v50, 0 }
0x102c   :  { %6982 = vmatpush3.bf16.msra.mxu0 %v7405_v63 }
0x10ae   :  { %v3543_v42 = vpop.f32.mrf.mxu0  ;;  %v8190_v1 = vpop.f32.mrf.mxu1 }
0x10af   :  { %v3901_v27 = vrot.slane %v3543_v42, 7  ;;  %v3858_v42 = vand.u32 31, %v8227_v35 }
0x10b0   :  { %v8192_v6 = vpop.f32.mrf.mxu0  ;;  %v8194_v31 = vpop.f32.mrf.mxu1 }
0x10b1   :  { %v3902_v33 = vrot.slane %v8192_v6, 7  ;;  %vm8385_vm7 = vcmp.eq.s32.totalorder %v3858_v42, 31 }
0x10b2   :  { %v3547_v21 = vpop.f32.mrf.mxu0  ;;  %v3620_v9 = vpop.f32.mrf.mxu1 }
0x10b3   :  { %v3903_v3 = vrot.slane %v3547_v21, 7 }
0x10b4   :  { %v3549_v36 = vpop.f32.mrf.mxu0  ;;  %v3622_v4 = vpop.f32.mrf.mxu1 }
0x10b5   :  { %v3904_v41 = vrot.slane %v3549_v36, 7  ;;  %v3929_v37 = vsel %vm866_vm5, %v3901_v27, %v3903_v3 }
0x10b6   :  { %v3553_v14 = vpop.f32.mrf.mxu0  ;;  %v3626_v18 = vpop.f32.mrf.mxu1  ;;  %v4015_v62 = vadd.f32 %v3929_v37, %v3620_v9 }
0x10b7   :  { %v3905_v52 = vrot.slane %v3553_v14, 7  ;;  %v3930_v51 = vsel %vm866_vm5, %v3902_v33, %v3904_v41 }
0x10b8   :  { %v3555_v15 = vpop.f32.mrf.mxu0  ;;  %v3628_v23 = vpop.f32.mrf.mxu1  ;;  %v4016_v6 = vadd.f32 %v3930_v51, %v3622_v4 }
0x10b9   :  { %v3906_v13 = vrot.slane %v3555_v15, 7  ;;  %v3927_v54 = vsel %vm866_vm5, %v3903_v3, %v3905_v52 }
0x10ba   :  { %v3557_v17 = vpop.f32.mrf.mxu0  ;;  %v3630_v7 = vpop.f32.mrf.mxu1  ;;  %v4017_v21 = vadd.f32 %v3927_v54, %v3626_v18 }
0x10bb   :  { %v3907_v28 = vrot.slane %v3557_v17, 7  ;;  %v3928_v56 = vsel %vm866_vm5, %v3904_v41, %v3906_v13 }
0x10bc   :  { %v8196_v19 = vpop.f32.mrf.mxu0  ;;  %v8206_v49 = vpop.f32.mrf.mxu1  ;;  %v4018_v36 = vadd.f32 %v3928_v56, %v3628_v23 }
0x10bd   :  { %v3908_v46 = vrot.slane %v8196_v19, 7  ;;  %v3925_v63 = vsel %vm866_vm5, %v3905_v52, %v3907_v28 }
0x10be   :  { %v8198_v22 = vpop.f32.mrf.mxu0  ;;  %v3636_v45 = vpop.f32.mrf.mxu1  ;;  %v4019_v18 = vadd.f32 %v3925_v63, %v3630_v7 }
0x10bf   :  { %v3909_v16 = vrot.slane %v8198_v22, 7  ;;  %v3926_v9 = vsel %vm866_vm5, %v3906_v13, %v3908_v46 }
0x10c0   :  { %v8200_v8 = vpop.f32.mrf.mxu0  ;;  %v8218_v25 = vpop.f32.mrf.mxu1  ;;  %v8291_v32 = vadd.f32 %v3926_v9, %v8206_v49 }
0x10c1   :  { %v3910_v60 = vrot.slane %v8200_v8, 7  ;;  %v3923_v2 = vsel %vm866_vm5, %v3907_v28, %v3909_v16 }
0x10c2   :  { %v8202_v24 = vpop.f32.mrf.mxu0  ;;  %v3640_v59 = vpop.f32.mrf.mxu1  ;;  %v3981_v17 = vsel %vm8236_vm2, 0.0, %v3923_v2 }
0x10c3   :  { %v3911_v3 = vrot.slane %v8202_v24, 7  ;;  %v3924_v23 = vsel %vm866_vm5, %v3908_v46, %v3910_v60 }
0x10c4   :  { %v8204_v34 = vpop.f32.mrf.mxu0  ;;  %v3642_v44 = vpop.f32.mrf.mxu1  ;;  %v3982_v51 = vsel %vm8236_vm2, 0.0, %v3924_v23 }
0x10c7   :  { %v8208_v53 = vpop.f32.mrf.mxu0 }
0x10c8   :  { %v3913_v7 = vrot.slane %v8208_v53, 7 }
0x10c9   :  { %v8210_v58 = vpop.f32.mrf.mxu0 }
0x10ca   :  { %v3646_v53 = vpop.f32.mrf.mxu1  ;;  %v3914_v2 = vrot.slane %v8210_v58, 7  ;;  %v3919_v58 = vsel %vm866_vm5, %v3911_v3, %v3913_v7 }
0x10cb   :  { %v8213_v47 = vpop.f32.mrf.mxu0 }
0x10cc   :  { %v3915_v29 = vrot.slane %v8213_v47, 7  ;;  %v3648_v22 = vpop.f32.mrf.mxu1 }
0x10cd   :  { %v8216_v48 = vpop.f32.mrf.mxu0 }
0x10ce   :  { %v3916_v20 = vrot.slane %v8216_v48, 7  ;;  %v3931_v57 = vsel %vm866_vm5, %v3915_v29, %v3901_v27  ;;  %v3912_v27 = vrot.slane %v8204_v34, 7 }
0x10cf   :  { %v8222_v30 = vpop.f32.mrf.mxu0  ;;  %v3973_v4 = vsel %vm8231_vm0, 0.0, %v3931_v57 }
0x10d0   :  { %v3932_v14 = vsel %vm866_vm5, %v3916_v20, %v3902_v33  ;;  %v3933_v52 = vrot.slane %v8222_v30, 1  ;;  %v8293_v33 = vadd.f32 %v3981_v17, %v3636_v45  ;;  %v4013_v49 = vadd.f32 %v3973_v4, %v8190_v1 }
0x10d1   :  { %v8240_v40 = vpop.f32.mrf.mxu0  ;;  %v3974_v41 = vsel %vm8231_vm0, 0.0, %v3932_v14 }
0x10d2   :  { %v3934_v13 = vrot.slane %v8240_v40, 1  ;;  %v4014_v45 = vadd.f32 %v3974_v41, %v8194_v31  ;;  %v3922_v31 = vsel %vm866_vm5, %v3910_v60, %v3912_v27 }
0x10d3   :  { %v3693_v39 = vpop.f32.mrf.mxu0  ;;  %v8331_v23 = vadd.f32 %v3922_v31, %v3642_v44 }
0x10d4   :  { %v3935_v19 = vrot.slane %v3693_v39, 1  ;;  %v3921_v39 = vsel %vm866_vm5, %v3909_v16, %v3911_v3 }
0x10d5   :  { %v3695_v15 = vpop.f32.mrf.mxu0 }
0x10d6   :  { %v3936_v8 = vrot.slane %v3695_v15, 1  ;;  %v3961_v28 = vsel %vm871_vm8, %v3933_v52, %v3935_v19 }
0x10d7   :  { %v3699_v55 = vpop.f32.mrf.mxu0  ;;  %v4029_v14 = vadd.f32 %v4013_v49, %v3961_v28 }
0x10d8   :  { %v3937_v24 = vrot.slane %v3699_v55, 1  ;;  %v3962_v37 = vsel %vm871_vm8, %v3934_v13, %v3936_v8 }
0x10d9   :  { %v3701_v26 = vpop.f32.mrf.mxu0  ;;  %v4030_v1 = vadd.f32 %v4014_v45, %v3962_v37  ;;  %v3650_v37 = vpop.f32.mrf.mxu1 }
0x10da   :  { %v3959_v34 = vsel %vm871_vm8, %v3935_v19, %v3937_v24  ;;  %v3938_v46 = vrot.slane %v3701_v26, 1  ;;  %v8323_v19 = vadd.f32 %v3921_v39, %v3640_v59  ;;  %v8338_v59 = vadd.f32 %v8255_v43, %v4029_v14 }
0x10db   :  { %v4031_v54 = vadd.f32 %v4015_v62, %v3959_v34  ;;  %v3703_v56 = vpop.f32.mrf.mxu0  ;;  %v4022_v62 = vadd.f32 %v3982_v51, %v8218_v25  ;;  %v3920_v25 = vsel %vm866_vm5, %v3912_v27, %v3914_v2  ;;  %v8341_v41 = vadd.f32 %v8258_v61, %v4030_v1 }
0x10dc   :  { %v3960_v57 = vsel %vm871_vm8, %v3936_v8, %v3938_v46  ;;  %v3939_v63 = vrot.slane %v3703_v56, 1  ;;  %v8358_v47 = vadd.f32 %v3920_v25, %v3648_v22 }
0x10dd   :  { %v4032_v15 = vadd.f32 %v4016_v6, %v3960_v57  ;;  %v3705_v9 = vpop.f32.mrf.mxu0  ;;  %v8326_v8 = vadd.f32 %v8255_v43, %v4031_v54  ;;  %v4100_v54 = vmul.f32 %v8338_v59, %v8338_v59  ;;  %v3918_v57 = vsel %vm866_vm5, %v3914_v2, %v3916_v20 }
0x10de   :  { %v3957_v16 = vsel %vm871_vm8, %v3937_v24, %v3939_v63  ;;  %v3940_v17 = vrot.slane %v3705_v9, 1  ;;  %v8343_v24 = vadd.f32 %v3919_v58, %v3646_v53 }
0x10df   :  { %v8329_v4 = vadd.f32 %v8258_v61, %v4032_v15  ;;  %v4033_v60 = vadd.f32 %v4017_v21, %v3957_v16  ;;  %v3709_v6 = vpop.f32.mrf.mxu0  ;;  %v3917_v21 = vsel %vm866_vm5, %v3913_v7, %v3915_v29  ;;  %v4074_v48 = vadd.f32 %v8326_v8, %v8338_v59 }
0x10e0   :  { %v3958_v3 = vsel %vm871_vm8, %v3938_v46, %v3940_v17  ;;  %v3941_v55 = vrot.slane %v3709_v6, 1  ;;  %v4102_v46 = vmul.f32 %v8326_v8, %v8326_v8  ;;  %v4027_v56 = vadd.f32 %v3917_v21, %v3650_v37 }
0x10e1   :  { %v3711_v44 = vpop.f32.mrf.mxu0  ;;  %v8350_v27 = vadd.f32 %v8255_v43, %v4033_v60  ;;  %v4034_v26 = vadd.f32 %v4018_v36, %v3958_v3  ;;  %v4103_v53 = vmul.f32 %v8329_v4, %v8329_v4  ;;  %v4087_v22 = vadd.f32 %v8329_v4, %v8341_v41 }
0x10e2   :  { %v3955_v28 = vsel %vm871_vm8, %v3939_v63, %v3941_v55  ;;  %v3942_v34 = vrot.slane %v3711_v44, 1  ;;  %v4116_v20 = vadd.f32 %v4102_v46, %v4100_v54  ;;  %v3652_v44 = vpop.f32.mrf.mxu1 }
0x10e3   :  { %v4003_v29 = vsel %vm8280_vm6, 0.0, %v3955_v28  ;;  %v3713_v7 = vpop.f32.mrf.mxu0  ;;  %v8363_v49 = vadd.f32 %v8258_v61, %v4034_v26  ;;  %v4104_v14 = vmul.f32 %v8350_v27, %v8350_v27  ;;  %v4075_v3 = vadd.f32 %v4074_v48, %v8350_v27 }
0x10e4   :  { %v4035_v36 = vadd.f32 %v4019_v18, %v4003_v29  ;;  %v3956_v45 = vsel %vm871_vm8, %v3940_v17, %v3942_v34  ;;  %v3943_v51 = vrot.slane %v3713_v7, 1  ;;  %v4101_v18 = vmul.f32 %v8341_v41, %v8341_v41 }
0x10e5   :  { %v4004_v39 = vsel %vm8280_vm6, 0.0, %v3956_v45  ;;  %v3715_v63 = vpop.f32.mrf.mxu0  ;;  %v4105_v35 = vmul.f32 %v8363_v49, %v8363_v49  ;;  %v4088_v21 = vadd.f32 %v4087_v22, %v8363_v49  ;;  %v4028_v54 = vadd.f32 %v3918_v57, %v3652_v44 }
0x10e6   :  { %v8380_v1 = vadd.f32 %v8255_v43, %v4035_v36  ;;  %v4036_v31 = vadd.f32 %v8291_v32, %v4004_v39  ;;  %v3953_v2 = vsel %vm871_vm8, %v3941_v55, %v3943_v51  ;;  %v3944_v9 = vrot.slane %v3715_v63, 1 }
0x10e7   :  { %v3719_v58 = vpop.f32.mrf.mxu0  ;;  %v4129_v16 = vadd.f32 %v4103_v53, %v4101_v18  ;;  %v4037_v17 = vadd.f32 %v8293_v33, %v3953_v2  ;;  %v4117_v55 = vadd.f32 %v4116_v20, %v4104_v14 }
0x10e8   :  { %v8398_v42 = vadd.f32 %v8258_v61, %v4036_v31  ;;  %v4106_v32 = vmul.f32 %v8380_v1, %v8380_v1  ;;  %v3954_v60 = vsel %vm871_vm8, %v3942_v34, %v3944_v9  ;;  %v3945_v6 = vrot.slane %v3719_v58, 1 }
0x10e9   :  { %v3721_v25 = vpop.f32.mrf.mxu0  ;;  %v4038_v26 = vadd.f32 %v4022_v62, %v3954_v60  ;;  %v8410_v37 = vadd.f32 %v8255_v43, %v4037_v17  ;;  %v4076_v53 = vadd.f32 %v4075_v3, %v8380_v1  ;;  %v4130_v62 = vadd.f32 %v4129_v16, %v4105_v35 }
0x10ea   :  { %v4107_v28 = vmul.f32 %v8398_v42, %v8398_v42  ;;  %v3951_v33 = vsel %vm871_vm8, %v3943_v51, %v3945_v6  ;;  %v3946_v46 = vrot.slane %v3721_v25, 1  ;;  %v4118_v45 = vadd.f32 %v4117_v55, %v4106_v32 }
0x10eb   :  { %v3723_v34 = vpop.f32.mrf.mxu0  ;;  %v8416_v29 = vadd.f32 %v8258_v61, %v4038_v26  ;;  %v4039_v7 = vadd.f32 %v8323_v19, %v3951_v33  ;;  %v4089_v18 = vadd.f32 %v4088_v21, %v8398_v42  ;;  %v4108_v51 = vmul.f32 %v8410_v37, %v8410_v37 }
0x10ec   :  { %v3947_v36 = vrot.slane %v3723_v34, 1  ;;  %v3952_v39 = vsel %vm871_vm8, %v3944_v9, %v3946_v46  ;;  %v4131_v48 = vadd.f32 %v4130_v62, %v4107_v28  ;;  %v4077_v2 = vadd.f32 %v4076_v53, %v8410_v37 }
0x10ed   :  { %v3725_v63 = vpop.f32.mrf.mxu0  ;;  %v8425_v14 = vadd.f32 %v8255_v43, %v4039_v7  ;;  %v4040_v31 = vadd.f32 %v8331_v23, %v3952_v39  ;;  %v4109_v9 = vmul.f32 %v8416_v29, %v8416_v29  ;;  %v4119_v35 = vadd.f32 %v4118_v45, %v4108_v51 }
0x10ee   :  { %v3949_v19 = vsel %vm871_vm8, %v3945_v6, %v3947_v36  ;;  %v3963_v57 = vsel %vm871_vm8, %v3947_v36, %v3933_v52  ;;  %v3948_v20 = vrot.slane %v3725_v63, 1  ;;  %v4090_v32 = vadd.f32 %v4089_v18, %v8416_v29 }
0x10ef   :  { %v4110_v58 = vmul.f32 %v8425_v14, %v8425_v14  ;;  %v8440_v23 = vadd.f32 %v8258_v61, %v4040_v31  ;;  %v4011_v22 = vsel %vm8385_vm7, 0.0, %v3963_v57  ;;  %v4041_v30 = vadd.f32 %v8343_v24, %v3949_v19 }
0x10f0   :  { %v3950_v52 = vsel %vm871_vm8, %v3946_v46, %v3948_v20  ;;  %v3964_v16 = vsel %vm871_vm8, %v3948_v20, %v3934_v13  ;;  %v4043_v60 = vadd.f32 %v4027_v56, %v4011_v22  ;;  %v4078_v6 = vadd.f32 %v4077_v2, %v8425_v14 }
0x10f1   :  { %v4111_v17 = vmul.f32 %v8440_v23, %v8440_v23  ;;  %v8456_v25 = vadd.f32 %v8255_v43, %v4041_v30  ;;  %v4012_v24 = vsel %vm8385_vm7, 0.0, %v3964_v16  ;;  %v4042_v40 = vadd.f32 %v8358_v47, %v3950_v52 }
0x10f2   :  { %v4132_v3 = vadd.f32 %v4131_v48, %v4109_v9  ;;  %v4120_v55 = vadd.f32 %v4119_v35, %v4110_v58  ;;  %v8462_v13 = vadd.f32 %v8255_v43, %v4043_v60  ;;  %v4044_v21 = vadd.f32 %v4028_v54, %v4012_v24 }
0x10f3   :  { %v4091_v44 = vadd.f32 %v4090_v32, %v8440_v23  ;;  %v4079_v56 = vadd.f32 %v4078_v6, %v8456_v25  ;;  %v4112_v26 = vmul.f32 %v8456_v25, %v8456_v25  ;;  %v8469_v28 = vadd.f32 %v8258_v61, %v4042_v40 }
0x10f4   :  { %v4133_v33 = vadd.f32 %v4132_v3, %v4111_v17  ;;  %v4114_v47 = vmul.f32 %v8462_v13, %v8462_v13  ;;  %v8474_v46 = vadd.f32 %v8258_v61, %v4044_v21 }
0x10f5   :  { %v4080_v43 = vadd.f32 %v4079_v56, %v8462_v13  ;;  %v4121_v34 = vadd.f32 %v4120_v55, %v4112_v26  ;;  %v4092_v53 = vadd.f32 %v4091_v44, %v8469_v28  ;;  %v4113_v7 = vmul.f32 %v8469_v28, %v8469_v28  ;;  %v4332_v26 = vld [vmem:[#allocation6 + $0x50] sm:$0xff] }
0x10f6   :  { %v4115_v36 = vmul.f32 %v8474_v46, %v8474_v46 }
0x10f7   :  { %v4081_v62 = vrot.slane %v4080_v43, 4  ;;  %v4122_v45 = vadd.f32 %v4121_v34, %v4114_v47  ;;  %v4093_v54 = vadd.f32 %v4092_v53, %v8474_v46  ;;  %v4134_v39 = vadd.f32 %v4133_v33, %v4113_v7  ;;  %v4495_v34 = vld [vmem:[#allocation2 + $0xdc0] sm:$0xff]  ;;  %v8488_v7 = vld [vmem:[#allocation2 + $0xdc8] sm:$0xff] }
0x10f8   :  { %v6680_v33 = vcombine.high %v4332_v26, %v4332_v26  ;;  %v6679_v47 = vcombine.low %v4332_v26, %v4332_v26  ;;  %v4498_v53 = vld [vmem:[#allocation2 + $0xde0] sm:$0xff] }
0x10f9   :  { %v4082_v63 = vadd.f32 %v4081_v62, %v4080_v43  ;;  %v4123_v18 = vrot.slane %v4122_v45, 4  ;;  %v4094_v61 = vrot.slane %v4093_v54, 4  ;;  %v4135_v51 = vadd.f32 %v4134_v39, %v4115_v36  ;;  %v4492_v39 = vld [vmem:[#allocation2 + $0xda0] sm:$0xff] }
0x10fa   :  { %6681 = vmatprep.subr.msk.bf16.mxu0 %vm738_vm3, %v6680_v33  ;;  %v4343_v43 = vsel %vm738_vm3, %v6679_v47, 0  ;;  %v6725_v36 = vcombine.low %v4495_v34, %v4498_v53  ;;  %v6726_v62 = vcombine.high %v4495_v34, %v4498_v53  ;;  %v4543_v26 = vld [vmem:[#allocation2 + $0xfc0] sm:$0xff] }
0x10fb   :  { %v4083_v31 = vrot.slane %v4082_v63, 2  ;;  %v4124_v48 = vadd.f32 %v4123_v18, %v4122_v45  ;;  %v4095_v19 = vadd.f32 %v4094_v61, %v4093_v54  ;;  %v4136_v57 = vrot.slane %v4135_v51, 4  ;;  %v8490_v45 = vld [vmem:[#allocation2 + $0xde8] sm:$0xff]  ;;  %v4489_v54 = vld [vmem:[#allocation2 + $0xd80] sm:$0xff] }
0x10fc   :  { %v6728_v18 = vcombine.high %v8488_v7, %v8490_v45  ;;  %v6720_v61 = vcombine.high %v4489_v54, %v4492_v39  ;;  %5037 = vmatprep.subr.bf16.mxu1 %v6726_v62  ;;  %v4546_v33 = vld [vmem:[#allocation2 + $0xfe0] sm:$0xff] }
0x10fd   :  { %v4084_v20 = vadd.f32 %v4083_v31, %v4082_v63  ;;  %v4125_v2 = vrot.slane %v4124_v48, 2  ;;  %v4096_v9 = vrot.slane %v4095_v19, 2  ;;  %v4137_v58 = vadd.f32 %v4136_v57, %v4135_v51  ;;  %5038 = vmatpush1.bf16.msra.mxu1 %v6725_v36  ;;  %v4483_v31 = vld [vmem:[#allocation2 + $0xd40] sm:$0xff] }
0x10fe   :  { %v6727_v63 = vcombine.low %v8488_v7, %v8490_v45  ;;  %v6719_v51 = vcombine.low %v4489_v54, %v4492_v39  ;;  %5039 = vmatprep.subr.bf16.mxu1 %v6720_v61  ;;  %v6774_v47 = vcombine.high %v4543_v26, %v4546_v33  ;;  %v4537_v34 = vld [vmem:[#allocation2 + $0xf80] sm:$0xff] }
0x10ff   :  { %v4097_v22 = vadd.f32 %v4096_v9, %v4095_v19  ;;  %v4138_v30 = vrot.slane %v4137_v58, 2  ;;  %v4126_v52 = vadd.f32 %v4125_v2, %v4124_v48  ;;  %v4085_v16 = vrot.slane %v4084_v20, 1  ;;  %v4486_v48 = vld [vmem:[#allocation2 + $0xd60] sm:$0xff] }
0x1100   :  { %v6714_v19 = vcombine.high %v4483_v31, %v4486_v48  ;;  %v6713_v57 = vcombine.low %v4483_v31, %v4486_v48  ;;  %v4480_v2 = vld [vmem:[#allocation2 + $0xd20] sm:$0xff] }
0x1101   :  { %v4098_v35 = vrot.slane %v4097_v22, 1  ;;  %v4139_v32 = vadd.f32 %v4138_v30, %v4137_v58  ;;  %v4127_v17 = vrot.slane %v4126_v52, 1  ;;  %v4086_v24 = vadd.f32 %v4085_v16, %v4084_v20  ;;  %5040 = vmatpush1.bf16.msra.mxu1 %v6719_v51  ;;  %v4477_v20 = vld [vmem:[#allocation2 + $0xd00] sm:$0xff] }
0x1102   :  { %5041 = vmatprep.subr.bf16.mxu1 %v6714_v19  ;;  %v6708_v9 = vcombine.high %v4477_v20, %v4480_v2  ;;  %v6707_v58 = vcombine.low %v4477_v20, %v4480_v2  ;;  %v4474_v30 = vld [vmem:[#allocation2 + $0xce0] sm:$0xff] }
0x1103   :  { %v4140_v60 = vrot.slane %v4139_v32, 1  ;;  %v4128_v6 = vadd.f32 %v4127_v17, %v4126_v52  ;;  %v4099_v40 = vadd.f32 %v4098_v35, %v4097_v22  ;;  %v4471_v22 = vld [vmem:[#allocation2 + $0xcc0] sm:$0xff] }
0x1104   :  { %v6702_v52 = vcombine.high %v4471_v22, %v4474_v30  ;;  %v6701_v16 = vcombine.low %v4471_v22, %v4474_v30  ;;  %v4465_v35 = vld [vmem:[#allocation2 + $0xc80] sm:$0xff] }
0x1105   :  { %v4141_v3 = vadd.f32 %v4140_v60, %v4139_v32  ;;  %v4142_v55 = vsel %vm243_vm1, %v4086_v24, %v4128_v6  ;;  %5042 = vmatpush1.bf16.msra.mxu1 %v6713_v57  ;;  %v4468_v32 = vld [vmem:[#allocation2 + $0xca0] sm:$0xff] }
0x1106   :  { %v4176_v56 = vpack.c.bf16 %v4142_v55, %v4142_v55  ;;  %5043 = vmatprep.subr.bf16.mxu1 %v6708_v9  ;;  %v6696_v17 = vcombine.high %v4465_v35, %v4468_v32  ;;  %v6695_v60 = vcombine.low %v4465_v35, %v4468_v32  ;;  %v4459_v6 = vld [vmem:[#allocation2 + $0xc40] sm:$0xff] }
0x1107   :  { %v4143_v21 = vsel %vm243_vm1, %v4099_v40, %v4141_v3  ;;  %v4462_v24 = vld [vmem:[#allocation2 + $0xc60] sm:$0xff] }
0x1108   :  { %v4177_v44 = vpack.c.bf16 %v4143_v21, %v4143_v21  ;;  %v6690_v40 = vcombine.high %v4459_v6, %v4462_v24  ;;  %v6689_v3 = vcombine.low %v4459_v6, %v4462_v24  ;;  %v4453_v55 = vld [vmem:[#allocation2 + $0xc00] sm:$0xff] }
0x1109   :  { %5044 = vmatpush1.bf16.msra.mxu1 %v6707_v58  ;;  %v4456_v21 = vld [vmem:[#allocation2 + $0xc20] sm:$0xff] }
0x110a   :  { %4306 = vmatprep.mubr.bf16.mxu0 %v4177_v44  ;;  %5045 = vmatprep.subr.bf16.mxu1 %v6702_v52  ;;  %v6684_v44 = vcombine.high %v4453_v55, %v4456_v21  ;;  %v4540_v53 = vld [vmem:[#allocation2 + $0xfa0] sm:$0xff] }
0x110b   :  { %4307 = vmatmul.mubr.bf16.vlgmr.msra.gmra.mxu0 %v4176_v56  ;;  %v6683_v56 = vcombine.low %v4453_v55, %v4456_v21  ;;  %v6768_v36 = vcombine.high %v4537_v34, %v4540_v53  ;;  %v6767_v62 = vcombine.low %v4537_v34, %v4540_v53  ;;  %v4531_v54 = vld [vmem:[#allocation2 + $0xf40] sm:$0xff]  ;;  %v4484_v34 = vld [vmem:[#allocation2 + $0xd48] sm:$0xff] }
0x110c   :  { %4380 = vmatprep.mubr.bf16.mxu0 %v9074_v5  ;;  %4363 = vmatpush1.bf16.msra.mxu0 %v4343_v43  ;;  %v6773_v43 = vcombine.low %v4543_v26, %v4546_v33  ;;  %v4534_v39 = vld [vmem:[#allocation2 + $0xf60] sm:$0xff]  ;;  %v4493_v26 = vld [vmem:[#allocation2 + $0xda8] sm:$0xff] }
0x110d   :  { %5110 = vmatprep.subr.bf16.mxu0 %v6728_v18  ;;  %5046 = vmatpush1.bf16.msra.mxu1 %v6701_v16  ;;  %v6762_v18 = vcombine.high %v4531_v54, %v4534_v39  ;;  %v6761_v61 = vcombine.low %v4531_v54, %v4534_v39  ;;  %v4525_v51 = vld [vmem:[#allocation2 + $0xf00] sm:$0xff]  ;;  %v4487_v53 = vld [vmem:[#allocation2 + $0xd68] sm:$0xff] }
0x110e   :  { %5047 = vmatprep.subr.bf16.mxu1 %v6696_v17  ;;  %v4528_v31 = vld [vmem:[#allocation2 + $0xf20] sm:$0xff]  ;;  %v4478_v54 = vld [vmem:[#allocation2 + $0xd08] sm:$0xff] }
0x110f   :  { %v6756_v48 = vcombine.high %v4525_v51, %v4528_v31  ;;  %v6755_v19 = vcombine.low %v4525_v51, %v4528_v31  ;;  %v4519_v57 = vld [vmem:[#allocation2 + $0xec0] sm:$0xff]  ;;  %v4481_v39 = vld [vmem:[#allocation2 + $0xd28] sm:$0xff] }
0x1110   :  { %v4522_v20 = vld [vmem:[#allocation2 + $0xee0] sm:$0xff]  ;;  %v4472_v51 = vld [vmem:[#allocation2 + $0xcc8] sm:$0xff] }
0x1111   :  { %5048 = vmatpush1.bf16.msra.mxu1 %v6695_v60  ;;  %v6750_v2 = vcombine.high %v4519_v57, %v4522_v20  ;;  %v6749_v9 = vcombine.low %v4519_v57, %v4522_v20  ;;  %v4475_v31 = vld [vmem:[#allocation2 + $0xce8] sm:$0xff] }
0x1112   :  { %5049 = vmatprep.subr.bf16.mxu1 %v6690_v40  ;;  %v4466_v57 = vld [vmem:[#allocation2 + $0xc88] sm:$0xff]  ;;  %v6703_v7 = vcombine.low %v4472_v51, %v4475_v31 }
0x1113   :  { %v4469_v20 = vld [vmem:[#allocation2 + $0xca8] sm:$0xff] }
0x1114   :  { %v6698_v45 = vcombine.high %v4466_v57, %v4469_v20 }
0x1115   :  { %5050 = vmatpush1.bf16.msra.mxu1 %v6689_v3 }
0x1116   :  { %5051 = vmatprep.subr.bf16.mxu1 %v6684_v44 }
0x1119   :  { %5052 = vmatpush1.bf16.msra.mxu1 %v6683_v56  ;;  %v4490_v56 = vld [vmem:[#allocation2 + $0xd88] sm:$0xff] }
0x111a   :  { %5053 = vmatprep.subr.bf16.mxu1 %v6774_v47 }
0x111d   :  { %5054 = vmatpush2.bf16.msra.mxu1 %v6773_v43  ;;  %v6722_v43 = vcombine.high %v4490_v56, %v4493_v26 }
0x111e   :  { %5055 = vmatprep.subr.bf16.mxu1 %v6768_v36  ;;  %v6721_v36 = vcombine.low %v4490_v56, %v4493_v26  ;;  %v4526_v26 = vld [vmem:[#allocation2 + $0xf08] sm:$0xff] }
0x1121   :  { %5056 = vmatpush2.bf16.msra.mxu1 %v6767_v62  ;;  %v6716_v62 = vcombine.high %v4484_v34, %v4487_v53 }
0x1122   :  { %5057 = vmatprep.subr.bf16.mxu1 %v6762_v18  ;;  %v6715_v18 = vcombine.low %v4484_v34, %v4487_v53  ;;  %v4520_v34 = vld [vmem:[#allocation2 + $0xec8] sm:$0xff] }
0x1123   :  { %v4523_v53 = vld [vmem:[#allocation2 + $0xee8] sm:$0xff] }
0x1125   :  { %5058 = vmatpush2.bf16.msra.mxu1 %v6761_v61  ;;  %v6710_v61 = vcombine.high %v4478_v54, %v4481_v39 }
0x1126   :  { %5059 = vmatprep.subr.bf16.mxu1 %v6756_v48  ;;  %v6709_v48 = vcombine.low %v4478_v54, %v4481_v39  ;;  %v6751_v54 = vcombine.low %v4520_v34, %v4523_v53  ;;  %v4513_v39 = vld [vmem:[#allocation2 + $0xe80] sm:$0xff] }
0x1129   :  { %5060 = vmatpush2.bf16.msra.mxu1 %v6755_v19  ;;  %v6704_v19 = vcombine.high %v4472_v51, %v4475_v31  ;;  %v4514_v51 = vld [vmem:[#allocation2 + $0xe88] sm:$0xff] }
0x112a   :  { %5061 = vmatprep.subr.bf16.mxu1 %v6750_v2  ;;  %v4463_v2 = vld [vmem:[#allocation2 + $0xc68] sm:$0xff] }
0x112b   :  { %v4517_v31 = vld [vmem:[#allocation2 + $0xea8] sm:$0xff] }
0x112d   :  { %5062 = vmatpush2.bf16.msra.mxu1 %v6749_v9  ;;  %v6697_v9 = vcombine.low %v4466_v57, %v4469_v20  ;;  %v6745_v57 = vcombine.low %v4514_v51, %v4517_v31  ;;  %v4507_v20 = vld [vmem:[#allocation2 + $0xe40] sm:$0xff] }
0x11cb   :  { %v6983_v58 = vpop.f32.mrf.mxu0 }
0x11cd   :  { %v6984_v22 = vpop.f32.mrf.mxu0 }
0x11ce   :  { %v6985_v30 = vadd.f32 %v6984_v22, %v6983_v58  ;;  %v4454_v22 = vld [vmem:[#allocation2 + $0xc08] sm:$0xff] }
0x11cf   :  { %v6986_v52 = vpop.f32.mrf.mxu0 }
0x11d0   :  { %v4314_v16 = vmul.f32 0.00048828125, %v6985_v30  ;;  %v4457_v30 = vld [vmem:[#allocation2 + $0xc28] sm:$0xff] }
0x11d1   :  { %v6987_v35 = vpop.f32.mrf.mxu0 }
0x11d2   :  { %v4315_v32 = vmul.f32 %v4314_v16, %v4314_v16  ;;  %v4323_v3 = vsub.f32 0.0, %v4314_v16  ;;  %v4544_v35 = vld [vmem:[#allocation2 + $0xfc8] sm:$0xff] }
0x11d4   :  { %v4317_v17 = vrot.slane %v4315_v32, 7  ;;  %v4547_v32 = vld [vmem:[#allocation2 + $0xfe8] sm:$0xff] }
0x11d6   :  { %v4319_v60 = vsub.f32 %v4314_v16, %v4317_v17  ;;  %v6686_v16 = vcombine.high %v4454_v22, %v4457_v30  ;;  %v6685_v17 = vcombine.low %v4454_v22, %v4457_v30  ;;  %v4501_v30 = vld [vmem:[#allocation2 + $0xe00] sm:$0xff] }
0x11d8   :  { %v4320_v6 = vmax.f32 %v4319_v60, 0.0  ;;  %v6776_v60 = vcombine.high %v4544_v35, %v4547_v32 }
0x11da   :  { %v4321_v24 = vadd.f32 1e-05, %v4320_v6  ;;  %v4538_v6 = vld [vmem:[#allocation2 + $0xf88] sm:$0xff] }
0x11dc   :  { %7436 = vrsqrt.f32 %v4321_v24  ;;  %v4541_v24 = vld [vmem:[#allocation2 + $0xfa8] sm:$0xff] }
0x11e9   :  { %v7437_v40 = vpop.eup %7436 }
0x11ea   :  { %v4325_v55 = vrot.slane %v7437_v40, 1  ;;  %v6775_v40 = vcombine.low %v4544_v35, %v4547_v32 }
0x11ec   :  { %v4327_v21 = vmul.f32 %v4325_v55, %v4323_v3  ;;  %v6770_v3 = vcombine.high %v4538_v6, %v4541_v24 }
0x11ee   :  { %v4329_v44 = vrot.slane %v4327_v21, 7  ;;  %v4535_v21 = vld [vmem:[#allocation2 + $0xf68] sm:$0xff] }
0x11f0   :  { %v4331_v33 = vsel %vm243_vm1, %v4325_v55, %v4329_v44  ;;  %v4532_v55 = vld [vmem:[#allocation2 + $0xf48] sm:$0xff]  ;;  %v6769_v44 = vcombine.low %v4538_v6, %v4541_v24  ;;  %v4497_v24 = vld [vmem:[#allocation2 + $0xdd0] sm:$0xff] }
0x11f1   :  { %v4333_v47 = vpack.c.bf16 %v4331_v33, %v4331_v33  ;;  %v6764_v56 = vcombine.high %v4532_v55, %v4535_v21  ;;  %v4529_v33 = vld [vmem:[#allocation2 + $0xf28] sm:$0xff] }
0x11f3   :  { %6682 = vmatmul.mubr.msk.bf16.vlgmr.msra.gmra.mxu0 %vm734_vm4, %v4333_v47  ;;  %v6763_v47 = vcombine.low %v4532_v55, %v4535_v21 }
0x11f4   :  { %5111 = vmatpush1.bf16.msra.mxu0 %v6727_v63  ;;  %v4460_v63 = vld [vmem:[#allocation2 + $0xc48] sm:$0xff] }
0x11f5   :  { %5112 = vmatprep.subr.bf16.mxu0 %v6722_v43  ;;  %v6692_v58 = vcombine.high %v4460_v63, %v4463_v2  ;;  %v6691_v52 = vcombine.low %v4460_v63, %v4463_v2  ;;  %v6758_v43 = vcombine.high %v4526_v26, %v4529_v33  ;;  %v4508_v63 = vld [vmem:[#allocation2 + $0xe48] sm:$0xff] }
0x11f6   :  { %v4511_v2 = vld [vmem:[#allocation2 + $0xe68] sm:$0xff] }
0x11f7   :  { %v6739_v22 = vcombine.low %v4508_v63, %v4511_v2 }
0x11f8   :  { %5113 = vmatpush1.bf16.msra.mxu0 %v6721_v36  ;;  %v6757_v36 = vcombine.low %v4526_v26, %v4529_v33 }
0x11f9   :  { %5114 = vmatprep.subr.bf16.mxu0 %v6716_v62  ;;  %v6752_v62 = vcombine.high %v4520_v34, %v4523_v53 }
0x11fc   :  { %5115 = vmatpush1.bf16.msra.mxu0 %v6715_v18  ;;  %v4516_v18 = vld [vmem:[#allocation2 + $0xea0] sm:$0xff] }
0x11fd   :  { %5116 = vmatprep.subr.bf16.mxu0 %v6710_v61  ;;  %v6744_v61 = vcombine.high %v4513_v39, %v4516_v18 }
0x11ff   :  { %5063 = vmatprep.subr.bf16.mxu1 %v6744_v61 }
0x1200   :  { %5117 = vmatpush1.bf16.msra.mxu0 %v6709_v48  ;;  %v6743_v48 = vcombine.low %v4513_v39, %v4516_v18 }
0x1201   :  { %5118 = vmatprep.subr.bf16.mxu0 %v6704_v19  ;;  %v6746_v19 = vcombine.high %v4514_v51, %v4517_v31 }
0x1202   :  { %5064 = vmatpush2.bf16.msra.mxu1 %v6743_v48 }
0x1204   :  { %5119 = vmatpush1.bf16.msra.mxu0 %v6703_v7  ;;  %v4510_v7 = vld [vmem:[#allocation2 + $0xe60] sm:$0xff] }
0x1205   :  { %5120 = vmatprep.subr.bf16.mxu0 %v6698_v45  ;;  %v6738_v45 = vcombine.high %v4507_v20, %v4510_v7 }
0x1207   :  { %5065 = vmatprep.subr.bf16.mxu1 %v6738_v45 }
0x1208   :  { %5121 = vmatpush1.bf16.msra.mxu0 %v6697_v9  ;;  %v6737_v9 = vcombine.low %v4507_v20, %v4510_v7  ;;  %v4491_v7 = vld [vmem:[#allocation2 + $0xd90] sm:$0xff] }
0x1209   :  { %5122 = vmatprep.subr.bf16.mxu0 %v6692_v58  ;;  %v6740_v58 = vcombine.high %v4508_v63, %v4511_v2 }
0x120a   :  { %5066 = vmatpush2.bf16.msra.mxu1 %v6737_v9 }
0x120c   :  { %5123 = vmatpush1.bf16.msra.mxu0 %v6691_v52  ;;  %v4504_v52 = vld [vmem:[#allocation2 + $0xe20] sm:$0xff] }
0x120d   :  { %5124 = vmatprep.subr.bf16.mxu0 %v6686_v16  ;;  %v4502_v16 = vld [vmem:[#allocation2 + $0xe08] sm:$0xff]  ;;  %v6731_v35 = vcombine.low %v4501_v30, %v4504_v52  ;;  %v6732_v32 = vcombine.high %v4501_v30, %v4504_v52  ;;  %v4488_v30 = vld [vmem:[#allocation2 + $0xd70] sm:$0xff] }
0x120f   :  { %5067 = vmatprep.subr.bf16.mxu1 %v6732_v32 }
0x1210   :  { %5125 = vmatpush1.bf16.msra.mxu0 %v6685_v17  ;;  %v4505_v17 = vld [vmem:[#allocation2 + $0xe28] sm:$0xff]  ;;  %5068 = vmatpush2.bf16.msra.mxu1 %v6731_v35 }
0x1211   :  { %5126 = vmatprep.subr.bf16.mxu0 %v6776_v60  ;;  %v6733_v60 = vcombine.low %v4502_v16, %v4505_v17  ;;  %v6734_v6 = vcombine.high %v4502_v16, %v4505_v17 }
0x1214   :  { %5127 = vmatpush2.bf16.msra.mxu0 %v6775_v40  ;;  %v4500_v40 = vld [vmem:[#allocation2 + $0xdf0] sm:$0xff] }
0x1215   :  { %5128 = vmatprep.subr.bf16.mxu0 %v6770_v3  ;;  %v6730_v3 = vcombine.high %v4497_v24, %v4500_v40  ;;  %v6729_v55 = vcombine.low %v4497_v24, %v4500_v40 }
0x1217   :  { %5183 = vmatprep.subr.bf16.mxu1 %v6730_v3 }
0x1218   :  { %5129 = vmatpush2.bf16.msra.mxu0 %v6769_v44 }
0x1219   :  { %5130 = vmatprep.subr.bf16.mxu0 %v6764_v56 }
0x121c   :  { %5131 = vmatpush2.bf16.msra.mxu0 %v6763_v47 }
0x121d   :  { %5132 = vmatprep.subr.bf16.mxu0 %v6758_v43 }
0x1220   :  { %5133 = vmatpush2.bf16.msra.mxu0 %v6757_v36 }
0x1221   :  { %5134 = vmatprep.subr.bf16.mxu0 %v6752_v62 }
0x1224   :  { %5135 = vmatpush2.bf16.msra.mxu0 %v6751_v54 }
0x1225   :  { %5136 = vmatprep.subr.bf16.mxu0 %v6746_v19 }
0x1228   :  { %5137 = vmatpush2.bf16.msra.mxu0 %v6745_v57 }
0x1229   :  { %5138 = vmatprep.subr.bf16.mxu0 %v6740_v58 }
0x122c   :  { %5139 = vmatpush2.bf16.msra.mxu0 %v6739_v22  ;;  %v4485_v22 = vld [vmem:[#allocation2 + $0xd50] sm:$0xff] }
0x122d   :  { %5140 = vmatprep.subr.bf16.mxu0 %v6734_v6  ;;  %v6718_v17 = vcombine.high %v4485_v22, %v4488_v30 }
0x1230   :  { %5141 = vmatpush2.bf16.msra.mxu0 %v6733_v60 }
0x12b3   :  { %v4382_v21 = vpop.f32.mrf.mxu0 }
0x12b4   :  { %v8502_v44 = vrot.slane %v4382_v21, %v7717_v11  ;;  %v8505_v26 = vrot.slane %v4382_v21, %v7720_v12 }
0x12b5   :  { %v4384_v56 = vpop.f32.mrf.mxu0 }
0x12b6   :  { %v4396_v33 = vrot.slane %v4384_v56, %v7717_v11  ;;  %v4397_v47 = vmul.f32 %v8502_v44, %v8338_v59  ;;  %v4399_v43 = vmul.f32 %v8502_v44, %v8326_v8  ;;  %v8513_v34 = vrot.slane %v4384_v56, %v7720_v12  ;;  %v4479_v56 = vld [vmem:[#allocation2 + $0xd10] sm:$0xff] }
0x12b7   :  { %v4386_v53 = vpop.f32.mrf.mxu0  ;;  %v4401_v31 = vmul.f32 %v8502_v44, %v8350_v27  ;;  %v4405_v24 = vmul.f32 %v8502_v44, %v8410_v37  ;;  %v4407_v40 = vmul.f32 %v8502_v44, %v8425_v14 }
0x12b8   :  { %v4398_v36 = vmul.f32 %v4396_v33, %v8341_v41  ;;  %v4400_v62 = vmul.f32 %v4396_v33, %v8329_v4  ;;  %v4421_v54 = vadd.f32 %v8505_v26, %v4397_v47  ;;  %v4423_v39 = vadd.f32 %v8505_v26, %v4399_v43  ;;  %v4482_v47 = vld [vmem:[#allocation2 + $0xd30] sm:$0xff] }
0x12b9   :  { %v4387_v18 = vpop.f32.mrf.mxu0  ;;  %v4402_v61 = vmul.f32 %v4396_v33, %v8363_v49  ;;  %v4404_v59 = vmul.f32 %v4396_v33, %v8398_v42  ;;  %v4403_v41 = vmul.f32 %v8502_v44, %v8380_v1  ;;  %v4494_v42 = vld [vmem:[#allocation2 + $0xdb0] sm:$0xff]  ;;  %v4406_v45 = vmul.f32 %v4396_v33, %v8416_v29 }
0x12ba   :  { %v4422_v51 = vadd.f32 %v8513_v34, %v4398_v36  ;;  %v4424_v8 = vadd.f32 %v8513_v34, %v4400_v62  ;;  %v4437_v4 = vmax.f32 %v4421_v54, 0.0  ;;  %v4439_v48 = vmax.f32 %v4423_v39, 0.0  ;;  %v4473_v54 = vld [vmem:[#allocation2 + $0xcd0] sm:$0xff] }
0x12bb   :  { %v4426_v19 = vadd.f32 %v8513_v34, %v4402_v61  ;;  %v4428_v57 = vadd.f32 %v8513_v34, %v4404_v59  ;;  %v4408_v9 = vmul.f32 %v4396_v33, %v8440_v23  ;;  %v6724_v1 = vcombine.high %v4491_v7, %v4494_v42  ;;  %v4476_v39 = vld [vmem:[#allocation2 + $0xcf0] sm:$0xff] }
0x12bc   :  { %v4438_v20 = vmax.f32 %v4422_v51, 0.0  ;;  %v4440_v49 = vmax.f32 %v4424_v8, 0.0  ;;  %v8533_v58 = vpack.c.bf16 %v4439_v48, %v4437_v4  ;;  %v4425_v52 = vadd.f32 %v8505_v26, %v4401_v31  ;;  %v4467_v4 = vld [vmem:[#allocation2 + $0xc90] sm:$0xff] }
0x12bd   :  { %v4442_v63 = vmax.f32 %v4426_v19, 0.0  ;;  %v4444_v2 = vmax.f32 %v4428_v57, 0.0  ;;  %v4427_v16 = vadd.f32 %v8505_v26, %v4403_v41  ;;  %v4430_v35 = vadd.f32 %v8513_v34, %v4406_v45  ;;  %v4470_v48 = vld [vmem:[#allocation2 + $0xcb0] sm:$0xff] }
0x12be   :  { %v8531_v27 = vpack.c.bf16 %v4440_v49, %v4438_v20  ;;  %v4432_v23 = vadd.f32 %v8513_v34, %v4408_v9  ;;  %v6723_v32 = vcombine.low %v4491_v7, %v4494_v42  ;;  %v4441_v60 = vmax.f32 %v4425_v52, 0.0  ;;  %v4464_v45 = vld [vmem:[#allocation2 + $0xc70] sm:$0xff] }
0x12bf   :  { %v8539_v29 = vpack.c.bf16 %v4444_v2, %v4442_v63  ;;  %v4443_v6 = vmax.f32 %v4427_v16, 0.0  ;;  %v4446_v3 = vmax.f32 %v4430_v35, 0.0  ;;  %v4412_v43 = vmul.f32 %v4396_v33, %v8474_v46  ;;  %v4455_v9 = vld [vmem:[#allocation2 + $0xc10] sm:$0xff] }
0x12c0   :  { %5069 = vmatprep.mubr.bf16.mxu1 %v8531_v27  ;;  %5142 = vmatprep.mubr.bf16.mxu0 %v8531_v27  ;;  %v4448_v21 = vmax.f32 %v4432_v23, 0.0  ;;  %v6717_v53 = vcombine.low %v4485_v22, %v4488_v30  ;;  %v6712_v62 = vcombine.high %v4479_v56, %v4482_v47  ;;  %v4429_v37 = vadd.f32 %v8505_v26, %v4405_v24  ;;  %v4545_v52 = vld [vmem:[#allocation2 + $0xfd0] sm:$0xff] }
0x12c1   :  { %5070 = vmatmul.mubr.bf16.vlgmr.msra.gmra.mxu1 %v8533_v58  ;;  %5143 = vmatmul.mubr.bf16.vlgmr.msra.gmra.mxu0 %v8533_v58  ;;  %v8553_v36 = vpack.c.bf16 %v4443_v6, %v4441_v60  ;;  %v4431_v14 = vadd.f32 %v8505_v26, %v4407_v40  ;;  %v6711_v46 = vcombine.low %v4479_v56, %v4482_v47  ;;  %v4548_v16 = vld [vmem:[#allocation2 + $0xff0] sm:$0xff] }
0x12c2   :  { %5184 = vmatpush1.bf16.msra.mxu1 %v6729_v55  ;;  %5079 = vmatprep.mubr.bf16.mxu1 %v8539_v29  ;;  %v4410_v55 = vmul.f32 %v4396_v33, %v8469_v28  ;;  %v8557_v18 = vpack.c.bf16 %v4448_v21, %v4446_v3  ;;  %v4436_v28 = vadd.f32 %v8513_v34, %v4412_v43  ;;  %v4445_v59 = vmax.f32 %v4429_v37, 0.0  ;;  %v4533_v24 = vld [vmem:[#allocation2 + $0xf50] sm:$0xff] }
0x12c3   :  { %5152 = vmatprep.mubr.bf16.mxu0 %v8539_v29  ;;  %5185 = vmatprep.subr.bf16.mxu1 %v6724_v1  ;;  %v6706_v33 = vcombine.high %v4473_v54, %v4476_v39  ;;  %v4447_v51 = vmax.f32 %v4431_v14, 0.0  ;;  %v4409_v8 = vmul.f32 %v8502_v44, %v8456_v25  ;;  %v6705_v19 = vcombine.low %v4473_v54, %v4476_v39  ;;  %v4461_v25 = vld [vmem:[#allocation2 + $0xc50] sm:$0xff] }
0x12c4   :  { %v4434_v61 = vadd.f32 %v8513_v34, %v4410_v55  ;;  %v4411_v34 = vmul.f32 %v8502_v44, %v8462_v13  ;;  %v4452_v41 = vmax.f32 %v4436_v28, 0.0  ;;  %v6700_v20 = vcombine.high %v4467_v4, %v4470_v48  ;;  %v4536_v40 = vld [vmem:[#allocation2 + $0xf70] sm:$0xff] }
0x12c5   :  { %v8569_v57 = vpack.c.bf16 %v4447_v51, %v4445_v59  ;;  %v4433_v49 = vadd.f32 %v8505_v26, %v4409_v8  ;;  %v6699_v13 = vcombine.low %v4467_v4, %v4470_v48  ;;  %v6694_v44 = vcombine.high %v4461_v25, %v4464_v45  ;;  %v4527_v56 = vld [vmem:[#allocation2 + $0xf10] sm:$0xff]  ;;  %v8586_v4 = vpop.f32.mrf.mxu1 }
0x12c6   :  { %5186 = vmatpush1.bf16.msra.mxu1 %v6723_v32  ;;  %v4450_v31 = vmax.f32 %v4434_v61, 0.0  ;;  %v4435_v7 = vadd.f32 %v8505_v26, %v4411_v34  ;;  %v4458_v26 = vld [vmem:[#allocation2 + $0xc30] sm:$0xff]  ;;  %v6693_v1 = vcombine.low %v4461_v25, %v4464_v45  ;;  %v6778_v23 = vcombine.high %v4545_v52, %v4548_v16 }
0x12c7   :  { %5187 = vmatprep.subr.bf16.mxu1 %v6718_v17  ;;  %v4449_v63 = vmax.f32 %v4433_v49, 0.0  ;;  %v6688_v30 = vcombine.high %v4455_v9, %v4458_v26  ;;  %v6687_v35 = vcombine.low %v4455_v9, %v4458_v26  ;;  %v4539_v32 = vld [vmem:[#allocation2 + $0xf90] sm:$0xff]  ;;  %v6777_v60 = vcombine.low %v4545_v52, %v4548_v16  ;;  %v8588_v48 = vpop.f32.mrf.mxu1  ;;  %v7414_v26 = vld [vmem:[#allocation4 + $0x220] sm:$0xff]   ;;  %v7417_v52 = vld [vmem:[#allocation4 + $0x1d8] sm:$0xff]  }
0x12c8   :  { %v8573_v42 = vpack.c.bf16 %v4452_v41, %v4450_v31  ;;  %v4451_v2 = vmax.f32 %v4435_v7, 0.0  ;;  %v4542_v17 = vld [vmem:[#allocation2 + $0xfb0] sm:$0xff]  ;;  %v6766_v21 = vcombine.high %v4533_v24, %v4536_v40  ;;  %v6765_v55 = vcombine.low %v4533_v24, %v4536_v40  ;;  %v7408_v7 = vld [vmem:[#allocation4 + $0x238] sm:$0xff]   ;;  %v7422_v24 = vld [vmem:[#allocation4 + $0x200] sm:$0xff]  }
0x12c9   :  { %5080 = vmatmul.mubr.bf16.gmra.mxu1 %v8553_v36  ;;  %5153 = vmatmul.mubr.bf16.gmra.mxu0 %v8553_v36  ;;  %v6772_v6 = vcombine.high %v4539_v32, %v4542_v17  ;;  %v6771_v3 = vcombine.low %v4539_v32, %v4542_v17  ;;  %v4530_v47 = vld [vmem:[#allocation2 + $0xf30] sm:$0xff]  ;;  %v7420_v32 = vld [vmem:[#allocation4 + $0x208] sm:$0xff]  }
0x12ca   :  { %5188 = vmatpush1.bf16.msra.mxu1 %v6717_v53  ;;  %5089 = vmatprep.mubr.bf16.mxu1 %v8557_v18  ;;  %v4555_v22 = vpack.c.bf16 %v4451_v2, %v4449_v63  ;;  %v4521_v43 = vld [vmem:[#allocation2 + $0xed0] sm:$0xff]  ;;  %v7412_v63 = vld [vmem:[#allocation4 + $0x228] sm:$0xff]  }
0x12cb   :  { %5162 = vmatprep.mubr.bf16.mxu0 %v8557_v18  ;;  %5189 = vmatprep.subr.bf16.mxu1 %v6712_v62  ;;  %v4524_v53 = vld [vmem:[#allocation2 + $0xef0] sm:$0xff]  ;;  %v6759_v62 = vcombine.low %v4527_v56, %v4530_v47  ;;  %v7413_v2 = vld [vmem:[#allocation4 + $0x1e8] sm:$0xff]  }
0x12cc   :  { %v6754_v54 = vcombine.high %v4521_v43, %v4524_v53  ;;  %v4515_v39 = vld [vmem:[#allocation2 + $0xe90] sm:$0xff]  ;;  %v6753_v14 = vcombine.low %v4521_v43, %v4524_v53  ;;  %6989 = vmatprep.subr.bf16.mxu0 %v7408_v7 }
0x12cd   :  { %v4518_v37 = vld [vmem:[#allocation2 + $0xeb0] sm:$0xff] }
0x12ce   :  { %5190 = vmatpush1.bf16.msra.mxu1 %v6711_v46  ;;  %v6748_v61 = vcombine.high %v4515_v39, %v4518_v37  ;;  %v4509_v28 = vld [vmem:[#allocation2 + $0xe50] sm:$0xff] }
0x12cf   :  { %5191 = vmatprep.subr.bf16.mxu1 %v6706_v33  ;;  %v4512_v46 = vld [vmem:[#allocation2 + $0xe70] sm:$0xff]  ;;  %v6747_v33 = vcombine.low %v4515_v39, %v4518_v37 }
0x12d0   :  { %v6742_v59 = vcombine.high %v4509_v28, %v4512_v46  ;;  %v4503_v51 = vld [vmem:[#allocation2 + $0xe10] sm:$0xff]  ;;  %v6741_v34 = vcombine.low %v4509_v28, %v4512_v46 }
0x12d1   :  { %5090 = vmatmul.mubr.bf16.gmra.mxu1 %v8569_v57  ;;  %5163 = vmatmul.mubr.bf16.gmra.mxu0 %v8569_v57  ;;  %v4506_v8 = vld [vmem:[#allocation2 + $0xe30] sm:$0xff] }
0x12d2   :  { %5192 = vmatpush1.bf16.msra.mxu1 %v6705_v19  ;;  %5099 = vmatprep.mubr.bf16.mxu1 %v8573_v42  ;;  %v6736_v31 = vcombine.high %v4503_v51, %v4506_v8  ;;  %v6735_v41 = vcombine.low %v4503_v51, %v4506_v8  ;;  %v8590_v19 = vpop.f32.mrf.mxu1  ;;  %v7410_v45 = vld [vmem:[#allocation4 + $0x230] sm:$0xff]  }
0x12d3   :  { %5172 = vmatprep.mubr.bf16.mxu0 %v8573_v42  ;;  %5193 = vmatprep.subr.bf16.mxu1 %v6700_v20  ;;  %v7418_v16 = vld [vmem:[#allocation4 + $0x210] sm:$0xff]  }
0x12d4   :  { %v8592_v20 = vpop.f32.mrf.mxu1 }
0x12d6   :  { %5194 = vmatpush1.bf16.msra.mxu1 %v6699_v13  ;;  %v7411_v13 = vld [vmem:[#allocation4 + $0x1f0] sm:$0xff]  }
0x12d7   :  { %5195 = vmatprep.subr.bf16.mxu1 %v6694_v44 }
0x12d9   :  { %5100 = vmatmul.mubr.bf16.gmra.mxu1 %v4555_v22  ;;  %5173 = vmatmul.mubr.bf16.gmra.mxu0 %v4555_v22 }
0x12da   :  { %5196 = vmatpush1.bf16.msra.mxu1 %v6693_v1  ;;  %5215 = vmatprep.mubr.bf16.mxu1 %v8531_v27  ;;  %v6760_v27 = vcombine.high %v4527_v56, %v4530_v47  ;;  %v7415_v1 = vld [vmem:[#allocation4 + $0x1e0] sm:$0xff]  }
0x12db   :  { %5197 = vmatprep.subr.bf16.mxu1 %v6688_v30  ;;  %v7416_v30 = vld [vmem:[#allocation4 + $0x218] sm:$0xff]  }
0x12de   :  { %5198 = vmatpush1.bf16.msra.mxu1 %v6687_v35 }
0x12df   :  { %5199 = vmatprep.subr.bf16.mxu1 %v6778_v23  ;;  %v7419_v23 = vld [vmem:[#allocation4 + $0x1d0] sm:$0xff]  }
0x12e2   :  { %5200 = vmatpush2.bf16.msra.mxu1 %v6777_v60  ;;  %v7421_v60 = vld [vmem:[#allocation4 + $0x1c8] sm:$0xff]  }
0x12e3   :  { %5201 = vmatprep.subr.bf16.mxu1 %v6772_v6 }
0x12e6   :  { %5202 = vmatpush2.bf16.msra.mxu1 %v6771_v3  ;;  %v7423_v3 = vld [vmem:[#allocation4 + $0x1c0] sm:$0xff]  }
0x12e7   :  { %5203 = vmatprep.subr.bf16.mxu1 %v6766_v21 }
0x12ea   :  { %5204 = vmatpush2.bf16.msra.mxu1 %v6765_v55 }
0x12eb   :  { %5205 = vmatprep.subr.bf16.mxu1 %v6760_v27 }
0x12ee   :  { %5206 = vmatpush2.bf16.msra.mxu1 %v6759_v62 }
0x12ef   :  { %5207 = vmatprep.subr.bf16.mxu1 %v6754_v54 }
0x12f2   :  { %5208 = vmatpush2.bf16.msra.mxu1 %v6753_v14 }
0x12f3   :  { %5209 = vmatprep.subr.bf16.mxu1 %v6748_v61 }
0x12f6   :  { %5210 = vmatpush2.bf16.msra.mxu1 %v6747_v33 }
0x12f7   :  { %5211 = vmatprep.subr.bf16.mxu1 %v6742_v59 }
0x12fa   :  { %5212 = vmatpush2.bf16.msra.mxu1 %v6741_v34 }
0x12fb   :  { %5213 = vmatprep.subr.bf16.mxu1 %v6736_v31 }
0x12fe   :  { %5214 = vmatpush2.bf16.msra.mxu1 %v6735_v41 }
0x1301   :  { %5216 = vmatmul.mubr.bf16.vlgmr.msra.gmra.mxu1 %v8533_v58  ;;  %v8594_v58 = vpop.f32.mrf.mxu1 }
0x1302   :  { %5225 = vmatprep.mubr.bf16.mxu1 %v8539_v29 }
0x1303   :  { %v8596_v29 = vpop.f32.mrf.mxu1 }
0x1309   :  { %5226 = vmatmul.mubr.bf16.gmra.mxu1 %v8553_v36  ;;  %v8598_v36 = vpop.f32.mrf.mxu1 }
0x130a   :  { %5235 = vmatprep.mubr.bf16.mxu1 %v8557_v18 }
0x130b   :  { %v8600_v18 = vpop.f32.mrf.mxu1 }
0x1311   :  { %5236 = vmatmul.mubr.bf16.gmra.mxu1 %v8569_v57  ;;  %v8602_v57 = vpop.f32.mrf.mxu1 }
0x1312   :  { %5245 = vmatprep.mubr.bf16.mxu1 %v8573_v42  ;;  %v7409_v42 = vld [vmem:[#allocation4 + $0x1f8] sm:$0xff]  }
0x1313   :  { %v8604_v49 = vpop.f32.mrf.mxu1  ;;  %6990 = vmatpush3.bf16.msra.mxu0 %v7409_v42 }
0x1314   :  { %6991 = vmatprep.subr.bf16.mxu0 %v7410_v45 }
0x1315   :  { %v8606_v25 = vpop.f32.mrf.mxu1 }
0x1317   :  { %v8608_v44 = vpop.f32.mrf.mxu1  ;;  %6992 = vmatpush3.bf16.msra.mxu0 %v7411_v13 }
0x1318   :  { %6993 = vmatprep.subr.bf16.mxu0 %v7412_v63 }
0x1319   :  { %5246 = vmatmul.mubr.bf16.gmra.mxu1 %v4555_v22  ;;  %v8610_v9 = vpop.f32.mrf.mxu1 }
0x131a   :  { %9110 = vst [vmem:[#allocation16_spill] sm:$0xff] %v8610_v9 }
0x131b   :  { %6994 = vmatpush3.bf16.msra.mxu0 %v7413_v2  ;;  %v8612_v22 = vpop.f32.mrf.mxu1 }
0x131c   :  { %9111 = vst [vmem:[#allocation17_spill] sm:$0xff] %v8612_v22  ;;  %6995 = vmatprep.subr.bf16.mxu0 %v7414_v26  ;;  %v5385_v26 = vld [vmem:[#allocation9 + $0x80] ss:$8 sm:$0x3] }
0x131d   :  { %v8614_v35 = vpop.f32.mrf.mxu1 }
0x131e   :  { %9112 = vst [vmem:[#allocation18_spill] sm:$0xff] %v8614_v35 }
0x131f   :  { %6996 = vmatpush3.bf16.msra.mxu0 %v7415_v1  ;;  %v8616_v17 = vpop.f32.mrf.mxu1 }
0x1320   :  { %6997 = vmatprep.subr.bf16.mxu0 %v7416_v30  ;;  %9113 = vst [vmem:[#allocation19_spill] sm:$0xff] %v8616_v17 }
0x1323   :  { %6998 = vmatpush3.bf16.msra.mxu0 %v7417_v52 }
0x1324   :  { %6999 = vmatprep.subr.bf16.mxu0 %v7418_v16 }
0x1327   :  { %7000 = vmatpush3.bf16.msra.mxu0 %v7419_v23 }
0x1328   :  { %7001 = vmatprep.subr.bf16.mxu0 %v7420_v32  ;;  %v8655_v32 = vrot.slane %v5385_v26, %v7717_v11 }
0x132b   :  { %7002 = vmatpush3.bf16.msra.mxu0 %v7421_v60  ;;  %v5430_v60 = vld [vmem:[#allocation9 + $0x90] ss:$8 sm:$0x3] }
0x132c   :  { %7003 = vmatprep.subr.bf16.mxu0 %v7422_v24 }
0x132f   :  { %7004 = vmatpush3.bf16.msra.mxu0 %v7423_v3 }
0x1381   :  { %v5071_v6 = vpop.f32.mrf.mxu1  ;;  %v5144_v43 = vpop.f32.mrf.mxu0 }
0x1382   :  { %v5256_v1 = vrot.slane %v5071_v6, 7 }
0x1383   :  { %v5073_v40 = vpop.f32.mrf.mxu1  ;;  %v8622_v62 = vpop.f32.mrf.mxu0 }
0x1384   :  { %v5257_v52 = vrot.slane %v5073_v40, 7 }
0x1385   :  { %v5075_v21 = vpop.f32.mrf.mxu1  ;;  %v5148_v39 = vpop.f32.mrf.mxu0 }
0x1386   :  { %v5258_v45 = vrot.slane %v5075_v21, 7 }
0x1387   :  { %v5077_v56 = vpop.f32.mrf.mxu1  ;;  %v5150_v14 = vpop.f32.mrf.mxu0 }
0x1388   :  { %v5259_v13 = vrot.slane %v5077_v56, 7  ;;  %v5284_v24 = vsel %vm866_vm5, %v5256_v1, %v5258_v45 }
0x1389   :  { %v5081_v47 = vpop.f32.mrf.mxu1  ;;  %v5154_v28 = vpop.f32.mrf.mxu0 }
0x138a   :  { %v5260_v63 = vrot.slane %v5081_v47, 7  ;;  %v5285_v6 = vsel %vm866_vm5, %v5257_v52, %v5259_v13 }
0x138b   :  { %v8618_v55 = vpop.f32.mrf.mxu1  ;;  %v5156_v33 = vpop.f32.mrf.mxu0 }
0x138c   :  { %v5282_v40 = vsel %vm866_vm5, %v5258_v45, %v5260_v63  ;;  %v5261_v3 = vrot.slane %v8618_v55, 7  ;;  %v8677_v45 = vrot.slane %v5430_v60, %v7717_v11  ;;  %v8680_v55 = vrot.slane %v5385_v26, %v7720_v12 }
0x138d   :  { %v5085_v27 = vpop.f32.mrf.mxu1  ;;  %v5158_v51 = vpop.f32.mrf.mxu0  ;;  %v5356_v22 = vadd.f32 %v5282_v40, %v5154_v28 }
0x138e   :  { %v5262_v56 = vrot.slane %v5085_v27, 7  ;;  %v8683_v27 = vrot.slane %v5430_v60, %v7720_v12 }
0x138f   :  { %v8620_v53 = vpop.f32.mrf.mxu1  ;;  %v8636_v34 = vpop.f32.mrf.mxu0 }
0x1390   :  { %v5263_v35 = vrot.slane %v8620_v53, 7  ;;  %v5280_v60 = vsel %vm866_vm5, %v5260_v63, %v5262_v56 }
0x1391   :  { %v8624_v54 = vpop.f32.mrf.mxu1  ;;  %v8640_v41 = vpop.f32.mrf.mxu0  ;;  %v8707_v0 = vadd.f32 %v5280_v60, %v5158_v51 }
0x1392   :  { %v5264_v47 = vrot.slane %v8624_v54, 7  ;;  %v5354_v54 = vadd.f32 %v5284_v24, %v5148_v39  ;;  %v5281_v63 = vsel %vm866_vm5, %v5261_v3, %v5263_v35 }
0x1393   :  { %v8626_v37 = vpop.f32.mrf.mxu1  ;;  %v8645_v2 = vpop.f32.mrf.mxu0 }
0x1394   :  { %v5265_v5 = vrot.slane %v8626_v37, 7  ;;  %v5355_v37 = vadd.f32 %v5285_v6, %v5150_v14  ;;  %v5278_v39 = vsel %vm866_vm5, %v5262_v56, %v5264_v47 }
0x1395   :  { %v8628_v61 = vpop.f32.mrf.mxu1  ;;  %v8664_v21 = vpop.f32.mrf.mxu0 }
0x1396   :  { %v5279_v53 = vsel %vm866_vm5, %v5263_v35, %v5265_v5 }
0x1397   :  { %v8630_v46 = vpop.f32.mrf.mxu1  ;;  %v5170_v9 = vpop.f32.mrf.mxu0  ;;  %v5329_v35 = vsel %vm8236_vm2, 0.0, %v5279_v53 }
0x1398   :  { %v5267_v56 = vrot.slane %v8630_v46, 7 }
0x1399   :  { %v8632_v59 = vpop.f32.mrf.mxu1 }
0x139a   :  { %v5277_v60 = vsel %vm866_vm5, %v5265_v5, %v5267_v56 }
0x139b   :  { %v8634_v8 = vpop.f32.mrf.mxu1 }
0x139c   :  { %v5269_v5 = vrot.slane %v8634_v8, 7 }
0x139d   :  { %v8638_v31 = vpop.f32.mrf.mxu1 }
0x139e   :  { %v9075_v42 = vrot.slane %v8638_v31, 7 }
0x139f   :  { %v8642_v7 = vpop.f32.mrf.mxu1 }
0x13a0   :  { %v9076_v30 = vrot.slane %v8642_v7, 7  ;;  %v5286_v16 = vsel %vm866_vm5, %v9075_v42, %v5256_v1 }
0x13a1   :  { %v5320_v17 = vsel %vm8231_vm0, 0.0, %v5286_v16 }
0x13a2   :  { %v5287_v1 = vsel %vm866_vm5, %v9076_v30, %v5257_v52  ;;  %v5283_v30 = vsel %vm866_vm5, %v5259_v13, %v5261_v3  ;;  %v5352_v14 = vadd.f32 %v5320_v17, %v5144_v43  ;;  %v5266_v13 = vrot.slane %v8628_v61, 7  ;;  %v5174_v61 = vpop.f32.mrf.mxu0 }
0x13a3   :  { %v5321_v16 = vsel %vm8231_vm0, 0.0, %v5287_v1  ;;  %v5357_v43 = vadd.f32 %v5283_v30, %v5156_v33  ;;  %v8719_v33 = vadd.f32 %v5281_v63, %v8636_v34  ;;  %v8731_v34 = vadd.f32 %v5329_v35, %v8645_v2 }
0x13a4   :  { %v5353_v1 = vadd.f32 %v5321_v16, %v8622_v62  ;;  %v5268_v62 = vrot.slane %v8632_v59, 7  ;;  %v5276_v51 = vsel %vm866_vm5, %v5264_v47, %v5266_v13 }
0x13a6   :  { %v5274_v63 = vsel %vm866_vm5, %v5266_v13, %v5268_v62 }
0x13c1   :  { %v8652_v23 = vpop.f32.mrf.mxu1 }
0x13c2   :  { %v9082_v11 = vrot.slane %v8652_v23, 1 }
0x13c3   :  { %v8672_v42 = vpop.f32.mrf.mxu1 }
0x13c4   :  { %v5289_v24 = vrot.slane %v8672_v42, 1 }
0x13c5   :  { %v5221_v52 = vpop.f32.mrf.mxu1 }
0x13c6   :  { %v5290_v26 = vrot.slane %v5221_v52, 1 }
0x13c7   :  { %v5223_v28 = vpop.f32.mrf.mxu1 }
0x13c8   :  { %v5316_v6 = vsel %vm871_vm8, %v9082_v11, %v5290_v26  ;;  %v5291_v40 = vrot.slane %v5223_v28, 1  ;;  %v5328_v28 = vsel %vm8236_vm2, 0.0, %v5278_v39 }
0x13c9   :  { %v5368_v52 = vadd.f32 %v5352_v14, %v5316_v6  ;;  %v5227_v17 = vpop.f32.mrf.mxu1  ;;  %v5360_v14 = vadd.f32 %v5328_v28, %v8640_v41  ;;  %v5176_v6 = vpop.f32.mrf.mxu0  ;;  %v8742_v41 = vadd.f32 %v5277_v60, %v5170_v9 }
0x13ca   :  { %v5317_v12 = vsel %vm871_vm8, %v5289_v24, %v5291_v40  ;;  %v5292_v11 = vrot.slane %v5227_v17, 1  ;;  %v8740_v17 = vadd.f32 %v5276_v51, %v8664_v21 }
0x13cb   :  { %v5369_v46 = vadd.f32 %v5353_v1, %v5317_v12  ;;  %v5229_v3 = vpop.f32.mrf.mxu1  ;;  %v5397_v39 = vadd.f32 %v8655_v32, %v5368_v52 }
0x13cc   :  { %v5314_v30 = vsel %vm871_vm8, %v5290_v26, %v5292_v11  ;;  %v5293_v16 = vrot.slane %v5229_v3, 1  ;;  %v5178_v3 = vpop.f32.mrf.mxu0 }
0x13cd   :  { %v5398_v53 = vadd.f32 %v8680_v55, %v5369_v46  ;;  %v5370_v59 = vadd.f32 %v5354_v54, %v5314_v30  ;;  %v5231_v12 = vpop.f32.mrf.mxu1 }
0x13ce   :  { %v5315_v47 = vsel %vm871_vm8, %v5291_v40, %v5293_v16  ;;  %v5294_v26 = vrot.slane %v5231_v12, 1  ;;  %v5413_v40 = vadd.f32 %v5397_v39, %v8586_v4  ;;  %v9114_v4 = vrot.slane %v8638_v31, 7 }
0x13cf   :  { %v5399_v1 = vadd.f32 %v8655_v32, %v5370_v59  ;;  %v5371_v52 = vadd.f32 %v5355_v37, %v5315_v47  ;;  %v5233_v54 = vpop.f32.mrf.mxu1  ;;  %v5414_v35 = vadd.f32 %v5398_v53, %v8588_v48  ;;  %v8750_v37 = vadd.f32 %v5274_v63, %v5174_v61  ;;  %v5180_v53 = vpop.f32.mrf.mxu0 }
0x13d0   :  { %v5312_v2 = vsel %vm871_vm8, %v5292_v11, %v5294_v26  ;;  %v5295_v28 = vrot.slane %v5233_v54, 1  ;;  %v5275_v11 = vsel %vm866_vm5, %v5267_v56, %v5269_v5  ;;  %v5272_v48 = vsel %vm866_vm5, %v5268_v62, %v9114_v4 }
0x13d1   :  { %v5415_v13 = vadd.f32 %v5399_v1, %v8590_v19  ;;  %v5400_v8 = vadd.f32 %v8680_v55, %v5371_v52  ;;  %v5237_v46 = vpop.f32.mrf.mxu1  ;;  %v5372_v21 = vadd.f32 %v5356_v22, %v5312_v2  ;;  %v9115_v61 = vrot.slane %v8642_v7, 7 }
0x13d2   :  { %v5313_v9 = vsel %vm871_vm8, %v5293_v16, %v5295_v28  ;;  %v5296_v51 = vrot.slane %v5237_v46, 1  ;;  %v8769_v31 = vadd.f32 %v8677_v45, %v5413_v40  ;;  %v8772_v62 = vadd.f32 %v8683_v27, %v5414_v35 }
0x13d3   :  { %v5416_v19 = vadd.f32 %v5400_v8, %v8592_v20  ;;  %v5373_v30 = vadd.f32 %v5357_v43, %v5313_v9  ;;  %v5239_v60 = vpop.f32.mrf.mxu1  ;;  %v5273_v22 = vsel %vm866_vm5, %v5269_v5, %v9115_v61  ;;  %v5401_v16 = vadd.f32 %v8655_v32, %v5372_v21 }
0x13d4   :  { %v5310_v39 = vsel %vm871_vm8, %v5294_v26, %v5296_v51  ;;  %v5297_v56 = vrot.slane %v5239_v60, 1  ;;  %v8775_v20 = vadd.f32 %v8677_v45, %v5415_v13  ;;  %v8783_v63 = vadd.f32 %v5275_v11, %v5176_v6 }
0x13d5   :  { %v5402_v7 = vadd.f32 %v8680_v55, %v5373_v30  ;;  %v5241_v43 = vpop.f32.mrf.mxu1  ;;  %v5417_v59 = vadd.f32 %v5401_v16, %v8594_v58  ;;  %v5342_v12 = vsel %vm8280_vm6, 0.0, %v5310_v39  ;;  %v5366_v5 = vadd.f32 %v5272_v48, %v5178_v3 }
0x13d6   :  { %v5311_v47 = vsel %vm871_vm8, %v5295_v28, %v5297_v56  ;;  %v5298_v26 = vrot.slane %v5241_v43, 1  ;;  %v8785_v1 = vadd.f32 %v5273_v22, %v5180_v53  ;;  %v8788_v52 = vadd.f32 %v8683_v27, %v5416_v19 }
0x13d7   :  { %v5243_v54 = vpop.f32.mrf.mxu1  ;;  %v5418_v2 = vadd.f32 %v5402_v7, %v8596_v29  ;;  %v5374_v58 = vadd.f32 %v8707_v0, %v5342_v12  ;;  %v5343_v40 = vsel %vm8280_vm6, 0.0, %v5311_v47  ;;  %v5484_v6 = vmul.f32 %v8769_v31, %v8769_v31 }
0x13d8   :  { %v5308_v28 = vsel %vm871_vm8, %v5296_v51, %v5298_v26  ;;  %v8799_v35 = vadd.f32 %v8677_v45, %v5417_v59  ;;  %v5375_v13 = vadd.f32 %v8719_v33, %v5343_v40  ;;  %v5485_v29 = vmul.f32 %v8772_v62, %v8772_v62 }
0x13d9   :  { %v5376_v8 = vadd.f32 %v5360_v14, %v5308_v28  ;;  %v5247_v46 = vpop.f32.mrf.mxu1  ;;  %v5458_v0 = vadd.f32 %v8775_v20, %v8769_v31  ;;  %v5403_v3 = vadd.f32 %v8655_v32, %v5374_v58  ;;  %v5299_v21 = vrot.slane %v5243_v54, 1 }
0x13da   :  { %v5486_v9 = vmul.f32 %v8775_v20, %v8775_v20  ;;  %v5487_v51 = vmul.f32 %v8788_v52, %v8788_v52  ;;  %v5404_v11 = vadd.f32 %v8680_v55, %v5375_v13  ;;  %v8814_v4 = vadd.f32 %v8683_v27, %v5418_v2 }
0x13db   :  { %v5405_v33 = vadd.f32 %v8655_v32, %v5376_v8  ;;  %v5249_v14 = vpop.f32.mrf.mxu1  ;;  %v5419_v48 = vadd.f32 %v5403_v3, %v8598_v36  ;;  %v5309_v19 = vsel %vm871_vm8, %v5297_v56, %v5299_v21  ;;  %v5300_v30 = vrot.slane %v5247_v46, 1 }
0x13dc   :  { %v5488_v60 = vmul.f32 %v8799_v35, %v8799_v35  ;;  %v5420_v61 = vadd.f32 %v5404_v11, %v8600_v18  ;;  %v5377_v16 = vadd.f32 %v8731_v34, %v5309_v19  ;;  %v5301_v43 = vrot.slane %v5249_v14, 1 }
0x13dd   :  { %v5421_v22 = vadd.f32 %v5405_v33, %v8602_v57  ;;  %v5251_v39 = vpop.f32.mrf.mxu1  ;;  %v8825_v7 = vadd.f32 %v8677_v45, %v5419_v48  ;;  %v5306_v36 = vsel %vm871_vm8, %v5298_v26, %v5300_v30  ;;  %v5500_v56 = vadd.f32 %v5486_v9, %v5484_v6 }
0x13de   :  { %v5302_v53 = vrot.slane %v5251_v39, 1  ;;  %v5406_v12 = vadd.f32 %v8680_v55, %v5377_v16  ;;  %v5378_v18 = vadd.f32 %v8740_v17, %v5306_v36  ;;  %v5459_v57 = vadd.f32 %v5458_v0, %v8799_v35 }
0x13df   :  { %v8830_v59 = vadd.f32 %v8677_v45, %v5421_v22  ;;  %v5490_v34 = vmul.f32 %v8825_v7, %v8825_v7  ;;  %v5307_v47 = vsel %vm871_vm8, %v5299_v21, %v5301_v43  ;;  %v5471_v54 = vadd.f32 %v8788_v52, %v8772_v62  ;;  %v5253_v21 = vpop.f32.mrf.mxu1  ;;  %v9117_v22 = vld [vmem:[#allocation16_spill] sm:$0xff] }
0x13e0   :  { %v5304_v26 = vsel %vm871_vm8, %v5300_v30, %v5302_v53  ;;  %v5513_v2 = vadd.f32 %v5487_v51, %v5485_v29  ;;  %v5501_v58 = vadd.f32 %v5500_v56, %v5488_v60  ;;  %v5489_v40 = vmul.f32 %v8814_v4, %v8814_v4 }
0x13e1   :  { %v5460_v17 = vadd.f32 %v5459_v57, %v8825_v7  ;;  %v8847_v28 = vadd.f32 %v8683_v27, %v5420_v61  ;;  %v5407_v6 = vadd.f32 %v8655_v32, %v5378_v18  ;;  %v5379_v13 = vadd.f32 %v8742_v41, %v5307_v47 }
0x13e2   :  { %v5492_v8 = vmul.f32 %v8830_v59, %v8830_v59  ;;  %v5422_v46 = vadd.f32 %v5406_v12, %v8604_v49  ;;  %v9116_v29 = vrot.slane %v8652_v23, 1  ;;  %v5380_v3 = vadd.f32 %v8750_v37, %v5304_v26 }
0x13e3   :  { %v5502_v9 = vadd.f32 %v5501_v58, %v5490_v34  ;;  %v5423_v51 = vadd.f32 %v5407_v6, %v8606_v25  ;;  %v5408_v11 = vadd.f32 %v8680_v55, %v5379_v13  ;;  %v5472_v33 = vadd.f32 %v5471_v54, %v8814_v4 }
0x13e4   :  { %v5318_v0 = vsel %vm871_vm8, %v5302_v53, %v9116_v29  ;;  %v5514_v14 = vadd.f32 %v5513_v2, %v5489_v40  ;;  %v5409_v23 = vadd.f32 %v8655_v32, %v5380_v3  ;;  %v5461_v48 = vadd.f32 %v5460_v17, %v8830_v59  ;;  %v9118_v53 = vld [vmem:[#allocation18_spill] sm:$0xff]  ;;  %v9120_v3 = vld [vmem:[#allocation19_spill] sm:$0xff] }
0x13e5   :  { %v5350_v41 = vsel %vm8385_vm7, 0.0, %v5318_v0  ;;  %v8867_v19 = vadd.f32 %v8677_v45, %v5423_v51  ;;  %v5424_v37 = vadd.f32 %v5408_v11, %v8608_v44  ;;  %v5303_v30 = vrot.slane %v5253_v21, 1 }
0x13e6   :  { %v5382_v49 = vadd.f32 %v5366_v5, %v5350_v41  ;;  %v5491_v25 = vmul.f32 %v8847_v28, %v8847_v28  ;;  %v8873_v60 = vadd.f32 %v8683_v27, %v5422_v46  ;;  %v5425_v5 = vadd.f32 %v5409_v23, %v9117_v22 }
0x13e7   :  { %v5503_v16 = vadd.f32 %v5502_v9, %v5492_v8  ;;  %v5462_v39 = vadd.f32 %v5461_v48, %v8867_v19  ;;  %v5494_v36 = vmul.f32 %v8867_v19, %v8867_v19  ;;  %v5305_v44 = vsel %vm871_vm8, %v5301_v43, %v5303_v30 }
0x13e8   :  { %v5411_v61 = vadd.f32 %v8655_v32, %v5382_v49  ;;  %v8884_v12 = vadd.f32 %v8677_v45, %v5425_v5  ;;  %v5319_v32 = vsel %vm871_vm8, %v5303_v30, %v5289_v24  ;;  %v5381_v18 = vadd.f32 %v8783_v63, %v5305_v44 }
0x13e9   :  { %v5473_v57 = vadd.f32 %v5472_v33, %v8847_v28  ;;  %v5504_v34 = vadd.f32 %v5503_v16, %v5494_v36  ;;  %v8893_v47 = vadd.f32 %v8683_v27, %v5424_v37  ;;  %v5351_v43 = vsel %vm8385_vm7, 0.0, %v5319_v32 }
0x13ea   :  { %v5427_v56 = vadd.f32 %v5411_v61, %v9118_v53  ;;  %v5463_v54 = vadd.f32 %v5462_v39, %v8884_v12  ;;  %v5496_v42 = vmul.f32 %v8884_v12, %v8884_v12  ;;  %v5383_v24 = vadd.f32 %v8785_v1, %v5351_v43  ;;  %v9119_v1 = vld [vmem:[#allocation17_spill] sm:$0xff] }
0x13eb   :  { %v5515_v63 = vadd.f32 %v5514_v14, %v5491_v25  ;;  %v5493_v2 = vmul.f32 %v8873_v60, %v8873_v60  ;;  %v5410_v58 = vadd.f32 %v8680_v55, %v5381_v18  ;;  %v5474_v13 = vadd.f32 %v5473_v57, %v8873_v60 }
0x13ec   :  { %v8898_v26 = vadd.f32 %v8677_v45, %v5427_v56  ;;  %v5505_v45 = vadd.f32 %v5504_v34, %v5496_v42  ;;  %v5412_v6 = vadd.f32 %v8680_v55, %v5383_v24  ;;  %v5495_v8 = vmul.f32 %v8893_v47, %v8893_v47 }
0x13ed   :  { %v5426_v46 = vadd.f32 %v5410_v58, %v9119_v1  ;;  %v5516_v9 = vadd.f32 %v5515_v63, %v5493_v2  ;;  %v5475_v51 = vadd.f32 %v5474_v13, %v8893_v47  ;;  %v9121_v13 = vmov 0  }
0x13ee   :  { %v5464_v40 = vadd.f32 %v5463_v54, %v8898_v26  ;;  %v5498_v17 = vmul.f32 %v8898_v26, %v8898_v26  ;;  %v5428_v21 = vadd.f32 %v5412_v6, %v9120_v3  ;;  %v5867_v3 = vld [vmem:[#allocation2 + $0x11e0] sm:$0xff] }
0x13ef   :  { %v8918_v11 = vadd.f32 %v8683_v27, %v5426_v46  ;;  %v5517_v14 = vadd.f32 %v5516_v9, %v5495_v8  ;;  %v5716_v8 = vld [vmem:[#allocation6 + $0x58] sm:$0xff] }
0x13f0   :  { %v5465_v29 = vrot.slane %v5464_v40, 4  ;;  %v5506_v0 = vadd.f32 %v5505_v45, %v5498_v17  ;;  %v8921_v55 = vadd.f32 %v8683_v27, %v5428_v21  ;;  %v6796_v1 = vcombine.high %v5716_v8, %v5716_v8  ;;  %v5861_v21 = vld [vmem:[#allocation2 + $0x1180] sm:$0xff] }
0x13f1   :  { %v5476_v49 = vadd.f32 %v5475_v51, %v8918_v11  ;;  %v5497_v23 = vmul.f32 %v8918_v11, %v8918_v11  ;;  %v6795_v46 = vcombine.low %v5716_v8, %v5716_v8 }
0x13f2   :  { %v5466_v41 = vadd.f32 %v5465_v29, %v5464_v40  ;;  %v5507_v33 = vrot.slane %v5506_v0, 4  ;;  %v5499_v37 = vmul.f32 %v8921_v55, %v8921_v55  ;;  %6797 = vmatprep.subr.msk.bf16.mxu0 %vm738_vm3, %v6796_v1 }
0x13f3   :  { %v5477_v30 = vadd.f32 %v5476_v49, %v8921_v55  ;;  %v5518_v25 = vadd.f32 %v5517_v14, %v5497_v23  ;;  %v5727_v29 = vsel %vm738_vm3, %v6795_v46, 0  ;;  %v5857_v14 = vld [vmem:[#allocation2 + $0x1140] sm:$0xff] }
0x13f4   :  { %v5508_v48 = vadd.f32 %v5507_v33, %v5506_v0  ;;  %v5467_v61 = vrot.slane %v5466_v41, 2  ;;  %v5865_v0 = vld [vmem:[#allocation2 + $0x11c0] sm:$0xff] }
0x13f5   :  { %v5478_v5 = vrot.slane %v5477_v30, 4  ;;  %v5519_v16 = vadd.f32 %v5518_v25, %v5499_v37  ;;  %v6820_v9 = vcombine.low %v5865_v0, %v5867_v3  ;;  %v6821_v51 = vcombine.high %v5865_v0, %v5867_v3  ;;  %v5859_v49 = vld [vmem:[#allocation2 + $0x1160] sm:$0xff]  ;;  %v5898_v25 = vld [vmem:[#allocation2 + $0x13c8] sm:$0xf] }
0x13f6   :  { %v5509_v22 = vrot.slane %v5508_v48, 2  ;;  %v5468_v44 = vadd.f32 %v5467_v61, %v5466_v41  ;;  %v5863_v41 = vld [vmem:[#allocation2 + $0x11a0] sm:$0xff]  ;;  %v5900_v61 = vld [vmem:[#allocation2 + $0x13e8] sm:$0xf] }
0x13f7   :  { %v5479_v27 = vadd.f32 %v5478_v5, %v5477_v30  ;;  %v5520_v36 = vrot.slane %v5519_v16, 4  ;;  %v6818_v33 = vcombine.high %v5861_v21, %v5863_v41  ;;  %6165 = vmatprep.subr.bf16.mxu1 %v6821_v51  ;;  %v6817_v23 = vcombine.low %v5861_v21, %v5863_v41  ;;  %v5853_v37 = vld [vmem:[#allocation2 + $0x1100] sm:$0xff] }
0x13f8   :  { %v5510_v39 = vadd.f32 %v5509_v22, %v5508_v48  ;;  %v5469_v34 = vrot.slane %v5468_v44, 1  ;;  %6166 = vmatpush1.bf16.msra.mxu1 %v6820_v9  ;;  %v6815_v48 = vcombine.high %v5857_v14, %v5859_v49  ;;  %v5855_v30 = vld [vmem:[#allocation2 + $0x1120] sm:$0xff]  ;;  %v6846_v22 = vcombine.low %v5898_v25, %v5900_v61 }
0x13f9   :  { %v5480_v53 = vrot.slane %v5479_v27, 2  ;;  %v5521_v56 = vadd.f32 %v5520_v36, %v5519_v16  ;;  %6167 = vmatprep.subr.bf16.mxu1 %v6818_v33  ;;  %v6814_v5 = vcombine.low %v5857_v14, %v5859_v49  ;;  %v6812_v16 = vcombine.high %v5853_v37, %v5855_v30  ;;  %v5889_v46 = vld [vmem:[#allocation2 + $0x1340] sm:$0xff] }
0x13fa   :  { %v5511_v32 = vrot.slane %v5510_v39, 1  ;;  %v5470_v63 = vadd.f32 %v5469_v34, %v5468_v44  ;;  %v6811_v36 = vcombine.low %v5853_v37, %v5855_v30  ;;  %v5843_v34 = vld [vmem:[#allocation2 + $0x1060] sm:$0xff] }
0x13fb   :  { %v5481_v18 = vadd.f32 %v5480_v53, %v5479_v27  ;;  %v5522_v57 = vrot.slane %v5521_v56, 2  ;;  %v5851_v27 = vld [vmem:[#allocation2 + $0x10e0] sm:$0xff] }
0x13fc   :  { %v5512_v42 = vadd.f32 %v5511_v32, %v5510_v39  ;;  %6168 = vmatpush1.bf16.msra.mxu1 %v6817_v23  ;;  %v5849_v39 = vld [vmem:[#allocation2 + $0x10c0] sm:$0xff] }
0x13fd   :  { %v5482_v43 = vrot.slane %v5481_v18, 1  ;;  %v5523_v54 = vadd.f32 %v5522_v57, %v5521_v56  ;;  %6169 = vmatprep.subr.bf16.mxu1 %v6815_v48  ;;  %v6809_v44 = vcombine.high %v5849_v39, %v5851_v27  ;;  %v5845_v53 = vld [vmem:[#allocation2 + $0x1080] sm:$0xff]  ;;  %v6808_v32 = vcombine.low %v5849_v39, %v5851_v27 }
0x13fe   :  { %v5526_v40 = vsel %vm243_vm1, %v5470_v63, %v5512_v42  ;;  %v5847_v56 = vld [vmem:[#allocation2 + $0x10a0] sm:$0xff] }
0x13ff   :  { %v5524_v24 = vrot.slane %v5523_v54, 1  ;;  %v5483_v2 = vadd.f32 %v5482_v43, %v5481_v18  ;;  %v5560_v6 = vpack.c.bf16 %v5526_v40, %v5526_v40  ;;  %v6806_v18 = vcombine.high %v5845_v53, %v5847_v56  ;;  %v5841_v57 = vld [vmem:[#allocation2 + $0x1040] sm:$0xff] }
0x1400   :  { %6170 = vmatpush1.bf16.msra.mxu1 %v6814_v5  ;;  %v6805_v43 = vcombine.low %v5845_v53, %v5847_v56  ;;  %v5837_v42 = vld [vmem:[#allocation2 + $0x1000] sm:$0xff]  ;;  %v6802_v63 = vcombine.low %v5841_v57, %v5843_v34 }
0x1401   :  { %v5525_v58 = vadd.f32 %v5524_v24, %v5523_v54  ;;  %6171 = vmatprep.subr.bf16.mxu1 %v6812_v16  ;;  %v6803_v54 = vcombine.high %v5841_v57, %v5843_v34  ;;  %v5839_v24 = vld [vmem:[#allocation2 + $0x1020] sm:$0xff]  ;;  %v5866_v57 = vld [vmem:[#allocation2 + $0x11c8] sm:$0xf] }
0x1402   :  { %v5899_v40 = vld [vmem:[#allocation2 + $0x13e0] sm:$0xff]  ;;  %v5868_v34 = vld [vmem:[#allocation2 + $0x11e8] sm:$0xf] }
0x1403   :  { %v5527_v17 = vsel %vm243_vm1, %v5483_v2, %v5525_v58  ;;  %v6800_v2 = vcombine.high %v5837_v42, %v5839_v24  ;;  %v5897_v58 = vld [vmem:[#allocation2 + $0x13c0] sm:$0xff] }
0x1404   :  { %v5561_v45 = vpack.c.bf16 %v5527_v17, %v5527_v17  ;;  %6172 = vmatpush1.bf16.msra.mxu1 %v6811_v36  ;;  %v6799_v17 = vcombine.low %v5837_v42, %v5839_v24  ;;  %v6844_v8 = vcombine.low %v5897_v58, %v5899_v40  ;;  %v5885_v21 = vld [vmem:[#allocation2 + $0x1300] sm:$0xff]  ;;  %v5896_v42 = vld [vmem:[#allocation2 + $0x13a8] sm:$0xf] }
0x1405   :  { %6173 = vmatprep.subr.bf16.mxu1 %v6809_v44  ;;  %v5887_v9 = vld [vmem:[#allocation2 + $0x1320] sm:$0xff] }
0x1406   :  { %5690 = vmatprep.mubr.bf16.mxu0 %v5561_v45  ;;  %v6845_v45 = vcombine.high %v5897_v58, %v5899_v40  ;;  %v6836_v41 = vcombine.high %v5885_v21, %v5887_v9  ;;  %v5881_v33 = vld [vmem:[#allocation2 + $0x12c0] sm:$0xff]  ;;  %v6835_v49 = vcombine.low %v5885_v21, %v5887_v9  ;;  %v5862_v40 = vld [vmem:[#allocation2 + $0x1188] sm:$0xf] }
0x1407   :  { %5691 = vmatmul.mubr.bf16.vlgmr.msra.gmra.mxu0 %v5560_v6  ;;  %v5893_v6 = vld [vmem:[#allocation2 + $0x1380] sm:$0xff]  ;;  %v5854_v9 = vld [vmem:[#allocation2 + $0x1108] sm:$0xf] }
0x1408   :  { %5764 = vmatprep.mubr.bf16.mxu0 %v9121_v13  ;;  %5747 = vmatpush1.bf16.msra.mxu0 %v5727_v29  ;;  %v5895_v13 = vld [vmem:[#allocation2 + $0x13a0] sm:$0xff] }
0x1409   :  { %7011 = vmatprep.subr.bf16.mxu0 %v6846_v22  ;;  %6174 = vmatpush1.bf16.msra.mxu1 %v6808_v32  ;;  %v6842_v1 = vcombine.high %v5893_v6, %v5895_v13  ;;  %v5891_v29 = vld [vmem:[#allocation2 + $0x1360] sm:$0xff]  ;;  %v6841_v0 = vcombine.low %v5893_v6, %v5895_v13  ;;  %v5892_v6 = vld [vmem:[#allocation2 + $0x1368] sm:$0xf] }
0x140a   :  { %6175 = vmatprep.subr.bf16.mxu1 %v6806_v18  ;;  %v6839_v3 = vcombine.high %v5889_v46, %v5891_v29  ;;  %v6838_v51 = vcombine.low %v5889_v46, %v5891_v29  ;;  %v5883_v14 = vld [vmem:[#allocation2 + $0x12e0] sm:$0xff]  ;;  %v5860_v46 = vld [vmem:[#allocation2 + $0x1168] sm:$0xf] }
0x140b   :  { %v6833_v23 = vcombine.high %v5881_v33, %v5883_v14  ;;  %v6832_v48 = vcombine.low %v5881_v33, %v5883_v14  ;;  %v5886_v29 = vld [vmem:[#allocation2 + $0x1308] sm:$0xf] }
0x140c   :  { %v5884_v33 = vld [vmem:[#allocation2 + $0x12e8] sm:$0xf] }
0x140d   :  { %6176 = vmatpush1.bf16.msra.mxu1 %v6805_v43 }
0x140e   :  { %6177 = vmatprep.subr.bf16.mxu1 %v6803_v54  ;;  %v5894_v54 = vld [vmem:[#allocation2 + $0x1388] sm:$0xf] }
0x140f   :  { %v6843_v58 = vcombine.low %v5894_v54, %v5896_v42  ;;  %v5844_v54 = vld [vmem:[#allocation2 + $0x1068] sm:$0xf] }
0x1411   :  { %6178 = vmatpush1.bf16.msra.mxu1 %v6802_v63  ;;  %v6822_v63 = vcombine.low %v5866_v57, %v5868_v34  ;;  %v5876_v34 = vld [vmem:[#allocation2 + $0x1268] sm:$0xf] }
0x1412   :  { %6179 = vmatprep.subr.bf16.mxu1 %v6800_v2 }
0x1415   :  { %6180 = vmatpush1.bf16.msra.mxu1 %v6799_v17  ;;  %v5864_v17 = vld [vmem:[#allocation2 + $0x11a8] sm:$0xf] }
0x1416   :  { %6181 = vmatprep.subr.bf16.mxu1 %v6845_v45  ;;  %v5890_v45 = vld [vmem:[#allocation2 + $0x1348] sm:$0xf]  ;;  %v6819_v13 = vcombine.low %v5862_v40, %v5864_v17 }
0x1417   :  { %v5872_v17 = vld [vmem:[#allocation2 + $0x1228] sm:$0xf] }
0x1419   :  { %6182 = vmatpush2.bf16.msra.mxu1 %v6844_v8  ;;  %v6840_v8 = vcombine.low %v5890_v45, %v5892_v6  ;;  %v5838_v45 = vld [vmem:[#allocation2 + $0x1008] sm:$0xf] }
0x141a   :  { %6183 = vmatprep.subr.bf16.mxu1 %v6842_v1  ;;  %v5858_v1 = vld [vmem:[#allocation2 + $0x1148] sm:$0xf] }
0x141b   :  { %v5840_v6 = vld [vmem:[#allocation2 + $0x1028] sm:$0xf] }
0x141d   :  { %6184 = vmatpush2.bf16.msra.mxu1 %v6841_v0  ;;  %v5888_v0 = vld [vmem:[#allocation2 + $0x1328] sm:$0xf] }
0x141e   :  { %6185 = vmatprep.subr.bf16.mxu1 %v6839_v3  ;;  %v6816_v3 = vcombine.low %v5858_v1, %v5860_v46  ;;  %v6837_v21 = vcombine.low %v5886_v29, %v5888_v0  ;;  %v6801_v1 = vcombine.low %v5838_v45, %v5840_v6  ;;  %v9122_v29 = vld [vmem:[#allocation13_spill] sm:$0xff] }
0x1421   :  { %6186 = vmatpush2.bf16.msra.mxu1 %v6838_v51  ;;  %v5856_v51 = vld [vmem:[#allocation2 + $0x1128] sm:$0xf] }
0x1422   :  { %6187 = vmatprep.subr.bf16.mxu1 %v6836_v41  ;;  %v5882_v41 = vld [vmem:[#allocation2 + $0x12c8] sm:$0xf]  ;;  %v6813_v14 = vcombine.low %v5854_v9, %v5856_v51 }
0x1425   :  { %6188 = vmatpush2.bf16.msra.mxu1 %v6835_v49  ;;  %v6834_v49 = vcombine.low %v5882_v41, %v5884_v33 }
0x1426   :  { %6189 = vmatprep.subr.bf16.mxu1 %v6833_v23  ;;  %v5850_v23 = vld [vmem:[#allocation2 + $0x10c8] sm:$0xf] }
0x1429   :  { %6190 = vmatpush2.bf16.msra.mxu1 %v6832_v48  ;;  %v5852_v48 = vld [vmem:[#allocation2 + $0x10e8] sm:$0xf] }
0x14c7   :  { %v7005_v37 = vpop.f32.mrf.mxu0 }
0x14c9   :  { %v7006_v30 = vpop.f32.mrf.mxu0 }
0x14ca   :  { %v7007_v25 = vadd.f32 %v7006_v30, %v7005_v37  ;;  %v6810_v37 = vcombine.low %v5850_v23, %v5852_v48  ;;  %v5877_v30 = vld [vmem:[#allocation2 + $0x1280] sm:$0xff] }
0x14cb   :  { %v7008_v61 = vpop.f32.mrf.mxu0 }
0x14cc   :  { %v5698_v22 = vmul.f32 0.00048828125, %v7007_v25  ;;  %v5879_v25 = vld [vmem:[#allocation2 + $0x12a0] sm:$0xff]  ;;  %v5878_v61 = vld [vmem:[#allocation2 + $0x1288] sm:$0xf] }
0x14cd   :  { %v7009_v5 = vpop.f32.mrf.mxu0 }
0x14ce   :  { %v5699_v16 = vmul.f32 %v5698_v22, %v5698_v22  ;;  %v5707_v56 = vsub.f32 0.0, %v5698_v22  ;;  %v6830_v5 = vcombine.high %v5877_v30, %v5879_v25 }
0x14d0   :  { %v5701_v39 = vrot.slane %v5699_v16, 7  ;;  %v5880_v16 = vld [vmem:[#allocation2 + $0x12a8] sm:$0xf]  ;;  %6191 = vmatprep.subr.bf16.mxu1 %v6830_v5 }
0x14d2   :  { %v5703_v27 = vsub.f32 %v5698_v22, %v5701_v39  ;;  %v6829_v22 = vcombine.low %v5877_v30, %v5879_v25  ;;  %v5846_v39 = vld [vmem:[#allocation2 + $0x1088] sm:$0xf] }
0x14d4   :  { %v5704_v36 = vmax.f32 %v5703_v27, 0.0  ;;  %v5848_v27 = vld [vmem:[#allocation2 + $0x10a8] sm:$0xf]  ;;  %6192 = vmatpush2.bf16.msra.mxu1 %v6829_v22 }
0x14d6   :  { %v5705_v44 = vadd.f32 1e-05, %v5704_v36  ;;  %v6831_v36 = vcombine.low %v5878_v61, %v5880_v16 }
0x14d8   :  { %7438 = vrsqrt.f32 %v5705_v44  ;;  %v6807_v44 = vcombine.low %v5846_v39, %v5848_v27 }
0x14e5   :  { %v7439_v53 = vpop.eup %7438 }
0x14e6   :  { %v5709_v32 = vrot.slane %v7439_v53, 1  ;;  %v5873_v53 = vld [vmem:[#allocation2 + $0x1240] sm:$0xff] }
0x14e8   :  { %v5711_v18 = vmul.f32 %v5709_v32, %v5707_v56  ;;  %v5875_v56 = vld [vmem:[#allocation2 + $0x1260] sm:$0xff] }
0x14e9   :  { %v6827_v57 = vcombine.high %v5873_v53, %v5875_v56 }
0x14ea   :  { %v5713_v43 = vrot.slane %v5711_v18, 7  ;;  %v6826_v18 = vcombine.low %v5873_v53, %v5875_v56 }
0x14eb   :  { %6193 = vmatprep.subr.bf16.mxu1 %v6827_v57 }
0x14ec   :  { %v5715_v24 = vsel %vm243_vm1, %v5709_v32, %v5713_v43  ;;  %v5874_v32 = vld [vmem:[#allocation2 + $0x1248] sm:$0xf]  ;;  %6194 = vmatpush2.bf16.msra.mxu1 %v6826_v18 }
0x14ed   :  { %v5717_v2 = vpack.c.bf16 %v5715_v24, %v5715_v24  ;;  %v5842_v43 = vld [vmem:[#allocation2 + $0x1048] sm:$0xf]  ;;  %v6828_v42 = vcombine.low %v5874_v32, %v5876_v34 }
0x14ee   :  { %v6804_v24 = vcombine.low %v5842_v43, %v5844_v54 }
0x14ef   :  { %6798 = vmatmul.mubr.msk.bf16.vlgmr.msra.gmra.mxu0 %vm734_vm4, %v5717_v2  ;;  %v5871_v2 = vld [vmem:[#allocation2 + $0x1220] sm:$0xff] }
0x14f0   :  { %7012 = vmatpush3.bf16.msra.mxu0 %v6822_v63  ;;  %v5869_v63 = vld [vmem:[#allocation2 + $0x1200] sm:$0xff] }
0x14f1   :  { %7013 = vmatprep.subr.bf16.mxu0 %v6843_v58  ;;  %v5870_v58 = vld [vmem:[#allocation2 + $0x1208] sm:$0xf]  ;;  %v6824_v40 = vcombine.high %v5869_v63, %v5871_v2 }
0x14f3   :  { %6195 = vmatprep.subr.bf16.mxu1 %v6824_v40 }
0x14f4   :  { %7014 = vmatpush3.bf16.msra.mxu0 %v6819_v13  ;;  %v6823_v13 = vcombine.low %v5869_v63, %v5871_v2 }
0x14f5   :  { %7015 = vmatprep.subr.bf16.mxu0 %v6840_v8  ;;  %v6825_v8 = vcombine.low %v5870_v58, %v5872_v17 }
0x14f6   :  { %6196 = vmatpush2.bf16.msra.mxu1 %v6823_v13 }
0x14f8   :  { %7016 = vmatpush3.bf16.msra.mxu0 %v6816_v3 }
0x14f9   :  { %7017 = vmatprep.subr.bf16.mxu0 %v6837_v21  ;;  %v9123_v21 = vld [vmem:[#allocation14_spill] sm:$0xff] }
0x14fc   :  { %7018 = vmatpush3.bf16.msra.mxu0 %v6813_v14 }
0x14fd   :  { %7019 = vmatprep.subr.bf16.mxu0 %v6834_v49 }
0x1500   :  { %7020 = vmatpush3.bf16.msra.mxu0 %v6810_v37 }
0x1501   :  { %7021 = vmatprep.subr.bf16.mxu0 %v6831_v36 }
0x1504   :  { %7022 = vmatpush3.bf16.msra.mxu0 %v6807_v44 }
0x1505   :  { %7023 = vmatprep.subr.bf16.mxu0 %v6828_v42 }
0x1508   :  { %7024 = vmatpush3.bf16.msra.mxu0 %v6804_v24 }
0x1509   :  { %7025 = vmatprep.subr.bf16.mxu0 %v6825_v8 }
0x150c   :  { %7026 = vmatpush3.bf16.msra.mxu0 %v6801_v1 }
0x15af   :  { %v5766_v46 = vpop.f32.mrf.mxu0 }
0x15b0   :  { %v8937_v0 = vrot.slane %v5766_v46, %v9122_v29  ;;  %v8940_v9 = vrot.slane %v5766_v46, %v9123_v21 }
0x15b1   :  { %v5768_v3 = vpop.f32.mrf.mxu0 }
0x15b2   :  { %v5780_v51 = vrot.slane %v5768_v3, %v9122_v29  ;;  %v5781_v41 = vmul.f32 %v8937_v0, %v8769_v31  ;;  %v5783_v33 = vmul.f32 %v8937_v0, %v8775_v20  ;;  %v5804_v14 = vrot.slane %v5768_v3, %v9123_v21 }
0x15b3   :  { %v5770_v49 = vpop.f32.mrf.mxu0  ;;  %v5785_v20 = vmul.f32 %v8937_v0, %v8799_v35  ;;  %v5787_v16 = vmul.f32 %v8937_v0, %v8825_v7  ;;  %v5791_v42 = vmul.f32 %v8937_v0, %v8867_v19  ;;  %v5793_v1 = vmul.f32 %v8937_v0, %v8884_v12 }
0x15b4   :  { %v5782_v23 = vmul.f32 %v5780_v51, %v8772_v62  ;;  %v5784_v48 = vmul.f32 %v5780_v51, %v8788_v52  ;;  %v5805_v37 = vadd.f32 %v8940_v9, %v5781_v41  ;;  %v5807_v30 = vadd.f32 %v8940_v9, %v5783_v33 }
0x15b5   :  { %v5771_v25 = vpop.f32.mrf.mxu0  ;;  %v5786_v61 = vmul.f32 %v5780_v51, %v8814_v4  ;;  %v5788_v22 = vmul.f32 %v5780_v51, %v8847_v28  ;;  %v5790_v53 = vmul.f32 %v5780_v51, %v8873_v60  ;;  %v5792_v28 = vmul.f32 %v5780_v51, %v8893_v47 }
0x15b6   :  { %v5806_v31 = vadd.f32 %v5804_v14, %v5782_v23  ;;  %v5808_v5 = vadd.f32 %v5804_v14, %v5784_v48  ;;  %v5821_v62 = vmax.f32 %v5805_v37, 0.0  ;;  %v5823_v39 = vmax.f32 %v5807_v30, 0.0 }
0x15b7   :  { %v5810_v52 = vadd.f32 %v5804_v14, %v5786_v61  ;;  %v5812_v27 = vadd.f32 %v5804_v14, %v5788_v22  ;;  %v5809_v57 = vadd.f32 %v8940_v9, %v5785_v20  ;;  %v5811_v35 = vadd.f32 %v8940_v9, %v5787_v16 }
0x15b8   :  { %v5822_v36 = vmax.f32 %v5806_v31, 0.0  ;;  %v5824_v44 = vmax.f32 %v5808_v5, 0.0  ;;  %v5901_v18 = vpack.c.bf16 %v5823_v39, %v5821_v62  ;;  %v5814_v34 = vadd.f32 %v5804_v14, %v5790_v53 }
0x15b9   :  { %v5826_v56 = vmax.f32 %v5810_v52, 0.0  ;;  %v5828_v4 = vmax.f32 %v5812_v27, 0.0  ;;  %v5816_v43 = vadd.f32 %v5804_v14, %v5792_v28  ;;  %v5825_v60 = vmax.f32 %v5809_v57, 0.0 }
0x15ba   :  { %v5902_v32 = vpack.c.bf16 %v5824_v44, %v5822_v36  ;;  %v5827_v54 = vmax.f32 %v5811_v35, 0.0  ;;  %v5789_v47 = vmul.f32 %v8937_v0, %v8830_v59  ;;  %v5830_v24 = vmax.f32 %v5814_v34, 0.0 }
0x15bb   :  { %v5904_v7 = vpack.c.bf16 %v5828_v4, %v5826_v56  ;;  %v5832_v63 = vmax.f32 %v5816_v43, 0.0  ;;  %v5794_v2 = vmul.f32 %v5780_v51, %v8918_v11  ;;  %v5796_v58 = vmul.f32 %v5780_v51, %v8921_v55 }
0x15bc   :  { %6197 = vmatprep.mubr.bf16.mxu1 %v5902_v32  ;;  %6270 = vmatprep.mubr.bf16.mxu0 %v5902_v32  ;;  %v5903_v40 = vpack.c.bf16 %v5827_v54, %v5825_v60  ;;  %v5813_v17 = vadd.f32 %v8940_v9, %v5789_v47  ;;  %v5815_v45 = vadd.f32 %v8940_v9, %v5791_v42 }
0x15bd   :  { %6198 = vmatmul.mubr.bf16.vlgmr.msra.gmra.mxu1 %v5901_v18  ;;  %6271 = vmatmul.mubr.bf16.vlgmr.msra.gmra.mxu0 %v5901_v18  ;;  %v5906_v6 = vpack.c.bf16 %v5832_v63, %v5830_v24  ;;  %v5818_v13 = vadd.f32 %v5804_v14, %v5794_v2  ;;  %v5820_v8 = vadd.f32 %v5804_v14, %v5796_v58  ;;  %v8994_v18 = vld [vmem:[#allocation9 + $0xa0] ss:$0 sm:$0xff] }
0x15be   :  { %6207 = vmatprep.mubr.bf16.mxu1 %v5904_v7  ;;  %6278 = vmatprep.mubr.bf16.mxu0 %v5904_v7  ;;  %v5829_v59 = vmax.f32 %v5813_v17, 0.0  ;;  %v5831_v19 = vmax.f32 %v5815_v45, 0.0  ;;  %v5795_v11 = vmul.f32 %v8937_v0, %v8898_v26  ;;  %v5817_v3 = vadd.f32 %v8940_v9, %v5793_v1 }
0x15bf   :  { %v5834_v55 = vmax.f32 %v5818_v13, 0.0  ;;  %v5836_v46 = vmax.f32 %v5820_v8, 0.0 }
0x15c0   :  { %v5905_v29 = vpack.c.bf16 %v5831_v19, %v5829_v59  ;;  %v5819_v21 = vadd.f32 %v8940_v9, %v5795_v11  ;;  %v5833_v41 = vmax.f32 %v5817_v3, 0.0 }
0x15c1   :  { %v5908_v51 = vpack.c.bf16 %v5836_v46, %v5834_v55 }
0x15c2   :  { %v5835_v33 = vmax.f32 %v5819_v21, 0.0 }
0x15c4   :  { %v5907_v14 = vpack.c.bf16 %v5835_v33, %v5833_v41 }
0x15c5   :  { %6208 = vmatmul.mubr.bf16.gmra.mxu1 %v5903_v40  ;;  %6279 = vmatmul.mubr.bf16.gmra.mxu0 %v5903_v40 }
0x15c6   :  { %6217 = vmatprep.mubr.bf16.mxu1 %v5906_v6  ;;  %6286 = vmatprep.mubr.bf16.mxu0 %v5906_v6 }
0x15cd   :  { %6218 = vmatmul.mubr.bf16.gmra.mxu1 %v5905_v29  ;;  %6287 = vmatmul.mubr.bf16.gmra.mxu0 %v5905_v29 }
0x15ce   :  { %6227 = vmatprep.mubr.bf16.mxu1 %v5908_v51  ;;  %6294 = vmatprep.mubr.bf16.mxu0 %v5908_v51 }
0x15d5   :  { %6228 = vmatmul.mubr.bf16.gmra.mxu1 %v5907_v14  ;;  %6295 = vmatmul.mubr.bf16.gmra.mxu0 %v5907_v14 }
0x167d   :  { %v8976_v12 = vpop.f32.mrf.mxu1  ;;  %v7027_v26 = vpop.f32.mrf.mxu0 }
0x167e   :  { %v6303_v22 = vrot.slane %v8976_v12, 7 }
0x167f   :  { %v8978_v0 = vpop.f32.mrf.mxu1  ;;  %v7028_v49 = vpop.f32.mrf.mxu0 }
0x1681   :  { %v6203_v23 = vpop.f32.mrf.mxu1  ;;  %v7030_v48 = vpop.f32.mrf.mxu0 }
0x1682   :  { %v6304_v30 = vrot.slane %v6203_v23, 7  ;;  %v7029_v23 = vadd.f32 %v7028_v49, %v7027_v26 }
0x1683   :  { %v6205_v37 = vpop.f32.mrf.mxu1  ;;  %v7031_v9 = vpop.f32.mrf.mxu0 }
0x1684   :  { %v8981_v31 = vadd.f32 %v7031_v9, %v7030_v48  ;;  %v6317_v16 = vsel %vm866_vm5, %v6303_v22, %v6304_v30  ;;  %v6319_v26 = vrot.slane %v7029_v23, 1 }
0x1685   :  { %v6209_v25 = vpop.f32.mrf.mxu1  ;;  %v7033_v61 = vpop.f32.mrf.mxu0  ;;  %v6352_v53 = vadd.f32 %v6317_v16, %v6205_v37 }
0x1686   :  { %v6305_v62 = vrot.slane %v6209_v25, 7  ;;  %v6320_v36 = vrot.slane %v8981_v31, 1 }
0x1687   :  { %v6211_v5 = vpop.f32.mrf.mxu1  ;;  %v7034_v20 = vpop.f32.mrf.mxu0 }
0x1688   :  { %v7035_v39 = vadd.f32 %v7034_v20, %v7033_v61  ;;  %v6316_v28 = vsel %vm866_vm5, %v6304_v30, %v6305_v62  ;;  %v6333_v12 = vsel %vm871_vm8, %v6319_v26, %v6320_v36 }
0x1689   :  { %v6213_v52 = vpop.f32.mrf.mxu1  ;;  %v7036_v27 = vpop.f32.mrf.mxu0  ;;  %v6353_v47 = vadd.f32 %v6316_v28, %v6211_v5 }
0x168a   :  { %v6321_v44 = vrot.slane %v7035_v39, 1  ;;  %v6306_v7 = vrot.slane %v6213_v52, 7 }
0x168b   :  { %v6215_v56 = vpop.f32.mrf.mxu1  ;;  %v7037_v4 = vpop.f32.mrf.mxu0 }
0x168c   :  { %v6332_v32 = vsel %vm871_vm8, %v6320_v36, %v6321_v44  ;;  %v7038_v57 = vadd.f32 %v7037_v4, %v7036_v27  ;;  %v6315_v40 = vsel %vm866_vm5, %v6305_v62, %v6306_v7 }
0x168d   :  { %v6360_v35 = vadd.f32 %v6352_v53, %v6332_v32  ;;  %v6219_v34 = vpop.f32.mrf.mxu1  ;;  %v7039_v43 = vpop.f32.mrf.mxu0  ;;  %v6354_v55 = vadd.f32 %v6315_v40, %v6215_v56 }
0x168e   :  { %v6322_v60 = vrot.slane %v7038_v57, 1  ;;  %v6307_v54 = vrot.slane %v6219_v34, 7 }
0x168f   :  { %v6369_v42 = vadd.f32 %v8994_v18, %v6360_v35  ;;  %v6221_v24 = vpop.f32.mrf.mxu1  ;;  %v7040_v63 = vpop.f32.mrf.mxu0 }
0x1690   :  { %v6331_v2 = vsel %vm871_vm8, %v6321_v44, %v6322_v60  ;;  %v7041_v58 = vadd.f32 %v7040_v63, %v7039_v43  ;;  %v6314_v45 = vsel %vm866_vm5, %v6306_v7, %v6307_v54 }
0x1691   :  { %7440 = vtanh.f32 %v6369_v42  ;;  %v6361_v17 = vadd.f32 %v6353_v47, %v6331_v2  ;;  %v6223_v6 = vpop.f32.mrf.mxu1  ;;  %v7042_v13 = vpop.f32.mrf.mxu0  ;;  %v6339_v46 = vsel %vm8236_vm2, 0.0, %v6314_v45 }
0x1692   :  { %v6323_v8 = vrot.slane %v7041_v58, 1  ;;  %v6308_v19 = vrot.slane %v6223_v6, 7  ;;  %v6355_v48 = vadd.f32 %v6339_v46, %v6221_v24 }
0x1693   :  { %v6370_v59 = vadd.f32 %v8994_v18, %v6361_v17  ;;  %v6225_v1 = vpop.f32.mrf.mxu1  ;;  %v7043_v11 = vpop.f32.mrf.mxu0 }
0x1694   :  { %v6330_v29 = vsel %vm871_vm8, %v6322_v60, %v6323_v8  ;;  %v7044_v3 = vadd.f32 %v7043_v11, %v7042_v13  ;;  %v6313_v37 = vsel %vm866_vm5, %v6307_v54, %v6308_v19 }
0x1695   :  { %7442 = vtanh.f32 %v6370_v59  ;;  %v6346_v21 = vsel %vm8280_vm6, 0.0, %v6330_v29  ;;  %v6229_v51 = vpop.f32.mrf.mxu1  ;;  %v7045_v41 = vpop.f32.mrf.mxu0  ;;  %v6356_v49 = vadd.f32 %v6313_v37, %v6225_v1 }
0x1696   :  { %v6362_v33 = vadd.f32 %v6354_v55, %v6346_v21  ;;  %v6324_v14 = vrot.slane %v7044_v3, 1  ;;  %v6309_v61 = vrot.slane %v6229_v51, 7 }
0x1697   :  { %v6231_v9 = vpop.f32.mrf.mxu1  ;;  %v7046_v38 = vpop.f32.mrf.mxu0 }
0x1698   :  { %v6371_v30 = vadd.f32 %v8994_v18, %v6362_v33  ;;  %v6329_v25 = vsel %vm871_vm8, %v6323_v8, %v6324_v14  ;;  %v7047_v5 = vadd.f32 %v7046_v38, %v7045_v41  ;;  %v6312_v44 = vsel %vm866_vm5, %v6308_v19, %v6309_v61 }
0x1699   :  { %v6363_v50 = vadd.f32 %v6355_v48, %v6329_v25  ;;  %v6233_v20 = vpop.f32.mrf.mxu1  ;;  %v7048_v16 = vpop.f32.mrf.mxu0 }
0x169a   :  { %7444 = vtanh.f32 %v6371_v30  ;;  %v6325_v62 = vrot.slane %v7047_v5, 1  ;;  %v6310_v39 = vrot.slane %v6233_v20, 7 }
0x169b   :  { %v6372_v52 = vadd.f32 %v8994_v18, %v6363_v50  ;;  %v7049_v27 = vpop.f32.mrf.mxu0  ;;  %v6235_v35 = vpop.f32.mrf.mxu1 }
0x169c   :  { %v6328_v53 = vsel %vm871_vm8, %v6324_v14, %v6325_v62  ;;  %v6318_v56 = vsel %vm866_vm5, %v6310_v39, %v6303_v22  ;;  %v7050_v4 = vadd.f32 %v7049_v27, %v7048_v16  ;;  %v6311_v7 = vsel %vm866_vm5, %v6309_v61, %v6310_v39 }
0x169d   :  { %7446 = vtanh.f32 %v6372_v52  ;;  %v6364_v28 = vadd.f32 %v6356_v49, %v6328_v53  ;;  %v6335_v57 = vsel %vm8231_vm0, 0.0, %v6318_v56  ;;  %v6357_v22 = vadd.f32 %v6312_v44, %v6231_v9 }
0x169e   :  { %v7441_v34 = vpop.eup %7440  ;;  %v6351_v43 = vadd.f32 %v6335_v57, %v8978_v0  ;;  %v6326_v60 = vrot.slane %v7050_v4, 1  ;;  %v6358_v42 = vadd.f32 %v6311_v7, %v6235_v35 }
0x169f   :  { %6385 = vst [vmem:[%s9073_s6 + $0x8] sm:$0xff] %v7441_v34  ;;  %v6373_v54 = vadd.f32 %v8994_v18, %v6364_v28 }
0x16a0   :  { %v6359_v47 = vadd.f32 %v6351_v43, %v6333_v12  ;;  %v6327_v24 = vsel %vm871_vm8, %v6325_v62, %v6326_v60  ;;  %v6334_v0 = vsel %vm871_vm8, %v6326_v60, %v6319_v26 }
0x16a1   :  { %7448 = vtanh.f32 %v6373_v54  ;;  %v6350_v31 = vsel %vm8385_vm7, 0.0, %v6334_v0  ;;  %v6365_v36 = vadd.f32 %v6357_v22, %v6327_v24 }
0x16a2   :  { %v7443_v63 = vpop.eup %7442  ;;  %v6368_v2 = vadd.f32 %v8994_v18, %v6359_v47  ;;  %v6366_v58 = vadd.f32 %v6358_v42, %v6350_v31 }
0x16a3   :  { %6386 = vst [vmem:[%s9073_s6 + $0x10] sm:$0xff] %v7443_v63  ;;  %v6374_v40 = vadd.f32 %v8994_v18, %v6365_v36 }
0x16a4   :  { %7450 = vtanh.f32 %v6368_v2  ;;  %v6375_v17 = vadd.f32 %v8994_v18, %v6366_v58 }
0x16a5   :  { %7452 = vtanh.f32 %v6374_v40 }
0x16a6   :  { %7454 = vtanh.f32 %v6375_v17 }
0x16a7   :  { %v7445_v10 = vpop.eup %7444 }
0x16a8   :  { %6387 = vst [vmem:[%s9073_s6 + $0x18] sm:$0xff] %v7445_v10 }
0x16aa   :  { %v7447_v15 = vpop.eup %7446 }
0x16ab   :  { %6388 = vst [vmem:[%s9073_s6 + $0x20] sm:$0xff] %v7447_v15 }
0x16ae   :  { %v7449_v45 = vpop.eup %7448 }
0x16af   :  { %6389 = vst [vmem:[%s9073_s6 + $0x28] sm:$0xff] %v7449_v45 }
0x16b1   :  { %v7451_v6 = vpop.eup %7450 }
0x16b2   :  { %v7453_v13 = vpop.eup %7452  ;;  %6384 = vst [vmem:[%s9073_s6] sm:$0xff] %v7451_v6 }
0x16b3   :  { %v7455_v18 = vpop.eup %7454  ;;  %6390 = vst [vmem:[%s9073_s6 + $0x30] sm:$0xff] %v7453_v13 }
0x16b4   :  { %6391 = vst [vmem:[%s9073_s6 + $0x38] sm:$0xff] %v7455_v18 }
0x16b5   :  { %6396 = vsyncpa [#allocation3], 1 }
0x16b6   :  { %6397 = vsyncpa [#allocation5], 1 }
0x16b7   :  { %6398 = vsyncpa [#allocation8], 1 }

</bundles_post_ra>
